<compile_context>
chip_gen: v7x
topology: tpu7x:2x2x1
jax: 0.10.0
libtpu: 0.0.40
codegen_flags: <defaults>
</compile_context>

<pallas_src>
import functools

import jax
import jax.numpy as jnp
import numpy as np
from jax.experimental import pallas as pl
from jax.experimental.pallas import tpu as pltpu


def _log2(v: int) -> int:
    assert v > 0 and (v & (v - 1)) == 0, f"{v} must be a power of two"
    return v.bit_length() - 1


def _round_up(v: int, m: int) -> int:
    return (v + m - 1) // m * m


# --------------------------------------------------------------------- in-kernel helpers
def _edge_masks(H, W):
    """Horizontal-edge validity masks for a padding=1 3x3 conv on a row-major flattened
    (H*W, C) tile.  Vertical (dy) overflow is handled by the zero pad rows of the
    scratch buffer (pad >= W+1), so only dx=+/-1 taps need masking."""
    m = jax.lax.broadcasted_iota(jnp.int32, (H * W, 1), 0)
    x = jnp.bitwise_and(m, W - 1)                                    # x = m % W (W pow2)
    left = jnp.where(x >= 1, 1.0, 0.0)                               # tap dx=-1 valid
    right = jnp.where(x <= W - 2, 1.0, 0.0)                          # tap dx=+1 valid
    return (left, None, right)                                       # indexed by dx in {0,1,2}


def _conv3x3(pad_ref, w_ref, b_ref, *, H, W, cin, cout, pad, relu):
    """3x3 conv, stride 1, padding 1, on a VMEM-resident zero-padded activation.

    pad_ref: (H*W + 2*pad, cin), rows [pad, pad+H*W) valid, pad rows are zero.
    w_ref: (9*cin, cout), row order (dy, dx, ci).   b_ref: (1, cout).
    Returns (H*W, cout) f32.
    """
    M = H * W
    masks = _edge_masks(H, W)
    acc = jnp.zeros((M, cout), jnp.float32)
    for dy in range(3):
        for dx in range(3):
            delta = (dy - 1) * W + (dx - 1)
            view = pad_ref[pl.ds(pad + delta, M), :]                 # (M, cin)
            if masks[dx] is not None:
                view = view * masks[dx]                              # lane-broadcast mask
            wk = w_ref[pl.ds((dy * 3 + dx) * cin, cin), :]           # (cin, cout)
            if cin == 1:
                acc = acc + view * wk                                # (M,1)*(1,cout) outer
            else:
                acc = acc + jnp.dot(view, wk, preferred_element_type=jnp.float32)
    acc = acc + b_ref[...]
    if relu:
        acc = jnp.maximum(acc, 0.0)
    return acc


def _conv3x3_per_channel(pad_ref, w_ref, *, H, W, cin, pad):
    """Cout=1 3x3 conv, returning per-input-channel partials (H*W, cin); no reduction,
    no bias.  Keeps downstream matmuls free of unit dimensions."""
    M = H * W
    masks = _edge_masks(H, W)
    acc = jnp.zeros((M, cin), jnp.float32)
    for dy in range(3):
        for dx in range(3):
            delta = (dy - 1) * W + (dx - 1)
            view = pad_ref[pl.ds(pad + delta, M), :]                 # (M, cin)
            if masks[dx] is not None:
                view = view * masks[dx]
            wk = w_ref[pl.ds(dy * 3 + dx, 1), :]                     # (1, cin)
            acc = acc + view * wk
    return acc


def _maxpool2x2(act, *, H, W):
    """MaxPool2d(2,2) on a flattened (H*W, C) tile -> (H*W/4, C) via selection matmuls."""
    Ho, Wo = H // 2, W // 2
    Mo, Mi = Ho * Wo, H * W
    mo = jax.lax.broadcasted_iota(jnp.int32, (Mo, 1), 0)
    xo = jnp.bitwise_and(mo, Wo - 1)
    yo = jnp.right_shift(mo, _log2(Wo))
    base = (2 * yo) * W + (2 * xo)                                   # (Mo, 1)
    mi = jax.lax.broadcasted_iota(jnp.int32, (1, Mi), 1)             # (1, Mi)
    out = None
    for dy in range(2):
        for dx in range(2):
            sel = jnp.where(mi == base + (dy * W + dx), 1.0, 0.0)    # (Mo, Mi) 0/1
            cand = jnp.dot(sel, act, preferred_element_type=jnp.float32)
            out = cand if out is None else jnp.maximum(out, cand)
    return out


def _upsample2x(act, *, H, W):
    """Nearest 2x upsample of a flattened (H*W, C) tile -> (4*H*W, C)."""
    Ho, Wo = 2 * H, 2 * W
    Mo, Mi = Ho * Wo, H * W
    mo = jax.lax.broadcasted_iota(jnp.int32, (Mo, 1), 0)
    xo = jnp.bitwise_and(mo, Wo - 1)
    yo = jnp.right_shift(mo, _log2(Wo))
    src = jnp.right_shift(yo, 1) * W + jnp.right_shift(xo, 1)        # (Mo, 1)
    mi = jax.lax.broadcasted_iota(jnp.int32, (1, Mi), 1)
    sel = jnp.where(mi == src, 1.0, 0.0)                             # (Mo, Mi) 0/1
    return jnp.dot(sel, act, preferred_element_type=jnp.float32)


def _upsample2x_rhs(act_t, *, H, W):
    """Nearest 2x upsample in (C, H*W) orientation -> (C, 4*H*W): selector applied on
    the RHS so the spatial axis stays on lanes (lane-dense output path)."""
    Ho, Wo = 2 * H, 2 * W
    Mo, Mi = Ho * Wo, H * W
    mo = jax.lax.broadcasted_iota(jnp.int32, (1, Mo), 1)
    xo = jnp.bitwise_and(mo, Wo - 1)
    yo = jnp.right_shift(mo, _log2(Wo))
    src = jnp.right_shift(yo, 1) * W + jnp.right_shift(xo, 1)        # (1, Mo)
    k = jax.lax.broadcasted_iota(jnp.int32, (Mi, 1), 0)              # (Mi, 1)
    sel = jnp.where(k == src, 1.0, 0.0)                              # (Mi, Mo) 0/1
    return jnp.dot(act_t, sel, preferred_element_type=jnp.float32)   # (C, Mo)


# --------------------------------------------------------------------- fused kernel
def _autoencoder_kernel(x_ref, w1, b1, w2, b2, w3, b3, w4, b4, o_ref,
                        pad1, pad2, pad3, pad4, *, H, W, P1, P2, P3, P4):
    H2, W2 = H // 2, W // 2
    H4, W4 = H // 4, W // 4
    HW = H * W

    def fill(pad_ref, P, value):
        M = value.shape[0]
        zeros_pad = jnp.zeros((P,) + value.shape[1:], jnp.float32)
        pad_ref[pl.ds(0, P), :] = zeros_pad                    # top pad rows
        pad_ref[pl.ds(P + M, P), :] = zeros_pad                # bottom pad rows
        pad_ref[pl.ds(P, M), :] = value                        # valid region

    # ------------------------------ encoder ------------------------------
    fill(pad1, P1, x_ref[...])
    h1 = _conv3x3(pad1, w1, b1, H=H, W=W, cin=1, cout=16, pad=P1, relu=True)      # (HW, 16)
    p1 = _maxpool2x2(h1, H=H, W=W)                                                # (HW/4, 16)

    fill(pad2, P2, p1)
    h2 = _conv3x3(pad2, w2, b2, H=H2, W=W2, cin=16, cout=4, pad=P2, relu=True)    # (HW/4, 4)
    p2 = _maxpool2x2(h2, H=H2, W=W2)                                              # (HW/16, 4)

    # ------------------------------ decoder ------------------------------
    fill(pad3, P3, p2)
    h3 = _conv3x3(pad3, w3, b3, H=H4, W=W4, cin=4, cout=16, pad=P3, relu=False)   # (HW/16, 16)
    u1 = jnp.maximum(_upsample2x(h3, H=H4, W=W4), 0.0)                            # (HW/4, 16)

    fill(pad4, P4, u1)
    part = _conv3x3_per_channel(pad4, w4, H=H2, W=W2, cin=16, pad=P4)             # (HW/4, 16)

    # Final upsample + channel reduction in (C, M) orientation so the result is a
    # lane-dense (1, HW) row -> single unmasked vst per image on the output store.
    part_t = jnp.transpose(part)                                                  # (16, HW/4)
    u2_t = _upsample2x_rhs(part_t, H=H2, W=W2)                                    # (16, HW)
    out_row = jnp.sum(u2_t, axis=0, keepdims=True) + b4[...]                      # (1, HW)
    o_ref[0] = jnp.tanh(out_row)                                                  # (1, 1, HW) block


def _build_forward(N, H, W):
    for v in (H, W):
        assert v % 4 == 0 and (v & (v - 1)) == 0, "H, W must be powers of two divisible by 4"
    HW = H * W
    H2, W2, H4, W4 = H // 2, W // 2, H // 4, W // 4
    # pad rows >= W+1 so every 3x3 tap shift stays in-bounds AND vertical overflow
    # lands in zero pad (lets us drop the dy validity masks).
    P1 = _round_up(W + 1, 8)
    P2 = _round_up(W2 + 1, 8)
    P3 = _round_up(W4 + 1, 8)
    P4 = P2

    kernel = functools.partial(_autoencoder_kernel, H=H, W=W, P1=P1, P2=P2, P3=P3, P4=P4)
    const = lambda n: (0, 0)

    return pl.pallas_call(
        kernel,
        out_shape=jax.ShapeDtypeStruct((N, 1, HW), jnp.float32),   # lane-dense output
        grid=(N,),
        in_specs=[
            pl.BlockSpec((HW, 1), lambda n: (n, 0)),   # x: one image per grid step
            pl.BlockSpec((9, 16), const),              # w1 (K=9*1, Cout=16)
            pl.BlockSpec((1, 16), const),              # b1
            pl.BlockSpec((144, 4), const),             # w2
            pl.BlockSpec((1, 4), const),               # b2
            pl.BlockSpec((36, 16), const),             # w3
            pl.BlockSpec((1, 16), const),              # b3
            pl.BlockSpec((9, 16), const),              # w4 (tap-major; Cout=1 folded away)
            pl.BlockSpec((1, 1), const),               # b4
        ],
        out_specs=pl.BlockSpec((1, 1, HW), lambda n: (n, 0, 0)),
        scratch_shapes=[
            pltpu.VMEM((HW + 2 * P1, 1), jnp.float32),        # padded conv1 input
            pltpu.VMEM((H2 * W2 + 2 * P2, 16), jnp.float32),  # padded conv2 input
            pltpu.VMEM((H4 * W4 + 2 * P3, 4), jnp.float32),   # padded conv3 input
            pltpu.VMEM((H2 * W2 + 2 * P4, 16), jnp.float32),  # padded conv4 input
        ],
        compiler_params=pltpu.CompilerParams(
            dimension_semantics=("parallel",),         # batch shards across TCs on v7x
        ),
    )


# --------------------------------------------------------------------- model wrapper
def init_params(key):
    """Deterministic parameter init with the shapes from the nn.Module __init__."""
    def conv_init(k, cout, cin):
        kw, kb = jax.random.split(k)
        bound = 1.0 / np.sqrt(cin * 3 * 3)
        w = jax.random.uniform(kw, (cout, cin, 3, 3), jnp.float32, -bound, bound)
        b = jax.random.uniform(kb, (cout,), jnp.float32, -bound, bound)
        return w, b

    k1, k2, k3, k4 = jax.random.split(key, 4)
    return {
        "enc_conv1": conv_init(k1, 16, 1),
        "enc_conv2": conv_init(k2, 4, 16),
        "dec_conv1": conv_init(k3, 16, 4),
        "dec_conv2": conv_init(k4, 1, 16),
    }


def imprvd_cnn_autoencoder_forward(params, x_nchw):
    """Matches ImprvdCnnAutoencoder.forward. Input/output are NCHW like PyTorch."""
    N, C, H, W = x_nchw.shape
    assert C == 1, "first conv expects a single input channel"
    call = _build_forward(N, H, W)

    def to2d(w):                       # (Cout,Cin,3,3) -> (9*Cin, Cout), row order (dy,dx,ci)
        cout, cin = w.shape[0], w.shape[1]
        return jnp.transpose(w, (2, 3, 1, 0)).reshape(9 * cin, cout)

    w1, b1 = params["enc_conv1"]
    w2, b2 = params["enc_conv2"]
    w3, b3 = params["dec_conv1"]
    w4, b4 = params["dec_conv2"]
    w4_tap = jnp.transpose(w4, (2, 3, 1, 0)).reshape(9, 16)   # [dy*3+dx, ci] for Cout=1

    x2d = x_nchw.reshape(N * H * W, 1)                        # (n, y, x) row order
    out3d = call(
        x2d,
        to2d(w1), b1.reshape(1, -1),
        to2d(w2), b2.reshape(1, -1),
        to2d(w3), b3.reshape(1, -1),
        w4_tap, b4.reshape(1, -1),
    )
    return out3d.reshape(N, 1, H, W)


# --------------------------------------------------------------------- pure-JAX reference
def _ref_conv(x_nchw, w, b):
    out = jax.lax.conv_general_dilated(
        x_nchw, w, window_strides=(1, 1), padding="SAME",
        dimension_numbers=("NCHW", "OIHW", "NCHW"))
    return out + b[None, :, None, None]


def _ref_forward(params, x):
    w, b = params["enc_conv1"]; x = jnp.maximum(_ref_conv(x, w, b), 0.0)
    x = jax.lax.reduce_window(x, -jnp.inf, jax.lax.max, (1, 1, 2, 2), (1, 1, 2, 2), "VALID")
    w, b = params["enc_conv2"]; x = jnp.maximum(_ref_conv(x, w, b), 0.0)
    x = jax.lax.reduce_window(x, -jnp.inf, jax.lax.max, (1, 1, 2, 2), (1, 1, 2, 2), "VALID")
    w, b = params["dec_conv1"]; x = _ref_conv(x, w, b)
    x = jnp.repeat(jnp.repeat(x, 2, axis=2), 2, axis=3)
    x = jnp.maximum(x, 0.0)
    w, b = params["dec_conv2"]; x = _ref_conv(x, w, b)
    x = jnp.repeat(jnp.repeat(x, 2, axis=2), 2, axis=3)
    return jnp.tanh(x)


# --------------------------------------------------------------------- main
if __name__ == "__main__":
    key = jax.random.PRNGKey(0)
    k_param, k_x = jax.random.split(key)
    params = init_params(k_param)

    # Conv2d(1, 16, ...) expects one input channel; 16x16 spatial keeps pools/upsamples exact.
    x = jax.random.normal(k_x, (2, 1, 16, 16), dtype=jnp.float32)   # NCHW like PyTorch

    fwd = jax.jit(imprvd_cnn_autoencoder_forward)
    out = jax.block_until_ready(fwd(params, x))
    assert out.shape == (2, 1, 16, 16), out.shape

    ref = jax.block_until_ready(_ref_forward(params, x))
    np.testing.assert_allclose(np.asarray(out), np.asarray(ref), atol=1e-3, rtol=1e-3)

    print("KERNEL_OK")
</pallas_src>

<mosaic_0001>
module attributes {stable_mosaic.version = 11 : i64} {
  func.func @_autoencoder_kernel(%arg0: i32, %arg1: memref<256x1xf32, #tpu.memory_space<vmem>>, %arg2: memref<9x16xf32, #tpu.memory_space<vmem>>, %arg3: memref<1x16xf32, #tpu.memory_space<vmem>>, %arg4: memref<144x4xf32, #tpu.memory_space<vmem>>, %arg5: memref<1x4xf32, #tpu.memory_space<vmem>>, %arg6: memref<36x16xf32, #tpu.memory_space<vmem>>, %arg7: memref<1x16xf32, #tpu.memory_space<vmem>>, %arg8: memref<9x16xf32, #tpu.memory_space<vmem>>, %arg9: memref<1x1xf32, #tpu.memory_space<vmem>>, %arg10: memref<1x1x256xf32, #tpu.memory_space<vmem>>, %arg11: memref<304x1xf32, #tpu.memory_space<vmem>>, %arg12: memref<96x16xf32, #tpu.memory_space<vmem>>, %arg13: memref<32x4xf32, #tpu.memory_space<vmem>>, %arg14: memref<96x16xf32, #tpu.memory_space<vmem>>) attributes {dimension_semantics = [#tpu.dimension_semantics<parallel>], iteration_bounds = array<i64: 2>, scalar_prefetch = 0 : i64, scratch_operands = 4 : i64, tpu.core_type = #tpu.core_type<tc>, window_params = [{transform_indices = @transform_0, window_bounds = array<i64: 256, 1>}, {pipeline_mode = #tpu.pipeline_mode<synchronous>, transform_indices = @transform_1, window_bounds = array<i64: 9, 16>}, {pipeline_mode = #tpu.pipeline_mode<synchronous>, transform_indices = @transform_2, window_bounds = array<i64: 1, 16>}, {pipeline_mode = #tpu.pipeline_mode<synchronous>, transform_indices = @transform_3, window_bounds = array<i64: 144, 4>}, {pipeline_mode = #tpu.pipeline_mode<synchronous>, transform_indices = @transform_4, window_bounds = array<i64: 1, 4>}, {pipeline_mode = #tpu.pipeline_mode<synchronous>, transform_indices = @transform_5, window_bounds = array<i64: 36, 16>}, {pipeline_mode = #tpu.pipeline_mode<synchronous>, transform_indices = @transform_6, window_bounds = array<i64: 1, 16>}, {pipeline_mode = #tpu.pipeline_mode<synchronous>, transform_indices = @transform_7, window_bounds = array<i64: 9, 16>}, {pipeline_mode = #tpu.pipeline_mode<synchronous>, transform_indices = @transform_8, window_bounds = array<i64: 1, 1>}, {transform_indices = @transform_9, window_bounds = array<i64: 1, 1, 256>}]} {
    %c0 = arith.constant 0 : index
    %c0_0 = arith.constant 0 : index
    %0 = vector.load %arg1[%c0, %c0_0] : memref<256x1xf32, #tpu.memory_space<vmem>>, vector<256x1xf32>
    %cst = arith.constant 0.000000e+00 : f32
    %1 = vector.broadcast %cst : f32 to vector<24x1xf32>
    %c0_1 = arith.constant 0 : index
    %c0_2 = arith.constant 0 : index
    %2 = vector.load %arg11[%c0_1, %c0_2] : memref<304x1xf32, #tpu.memory_space<vmem>>, vector<24x1xf32>
    tpu.vector_store %arg11[%c0_1, %c0_2], %1 {strides = array<i32>} : memref<304x1xf32, #tpu.memory_space<vmem>>, vector<24x1xf32>,
    %c280 = arith.constant 280 : index
    %c0_3 = arith.constant 0 : index
    %3 = vector.load %arg11[%c280, %c0_3] : memref<304x1xf32, #tpu.memory_space<vmem>>, vector<24x1xf32>
    tpu.vector_store %arg11[%c280, %c0_3], %1 {strides = array<i32>} : memref<304x1xf32, #tpu.memory_space<vmem>>, vector<24x1xf32>,
    %c24 = arith.constant 24 : index
    %c0_4 = arith.constant 0 : index
    %4 = vector.load %arg11[%c24, %c0_4] : memref<304x1xf32, #tpu.memory_space<vmem>>, vector<256x1xf32>
    tpu.vector_store %arg11[%c24, %c0_4], %0 {strides = array<i32>} : memref<304x1xf32, #tpu.memory_space<vmem>>, vector<256x1xf32>,
    %5 = tpu.iota {dimensions = array<i32: 0>} : vector<256x1xi32>
    %c15_i32 = arith.constant 15 : i32
    %6 = vector.broadcast %c15_i32 : i32 to vector<256x1xi32>
    %7 = arith.andi %5, %6 : vector<256x1xi32>
    %c1_i32 = arith.constant 1 : i32
    %8 = vector.broadcast %c1_i32 : i32 to vector<256x1xi32>
    %9 = arith.cmpi sge, %7, %8 : vector<256x1xi32>
    %cst_5 = arith.constant 1.000000e+00 : f32
    %cst_6 = arith.constant 0.000000e+00 : f32
    %10 = vector.broadcast %cst_5 : f32 to vector<256x1xf32>
    %11 = vector.broadcast %cst_6 : f32 to vector<256x1xf32>
    %12 = arith.select %9, %10, %11 : vector<256x1xi1>, vector<256x1xf32>
    %c14_i32 = arith.constant 14 : i32
    %13 = vector.broadcast %c14_i32 : i32 to vector<256x1xi32>
    %14 = arith.cmpi sle, %7, %13 : vector<256x1xi32>
    %cst_7 = arith.constant 1.000000e+00 : f32
    %cst_8 = arith.constant 0.000000e+00 : f32
    %15 = vector.broadcast %cst_7 : f32 to vector<256x1xf32>
    %16 = vector.broadcast %cst_8 : f32 to vector<256x1xf32>
    %17 = arith.select %14, %15, %16 : vector<256x1xi1>, vector<256x1xf32>
    %cst_9 = arith.constant 0.000000e+00 : f32
    %18 = vector.broadcast %cst_9 : f32 to vector<256x16xf32>
    %c7 = arith.constant 7 : index
    %c0_10 = arith.constant 0 : index
    %19 = vector.load %arg11[%c7, %c0_10] : memref<304x1xf32, #tpu.memory_space<vmem>>, vector<256x1xf32>
    %20 = arith.mulf %19, %12 : vector<256x1xf32>
    %c0_11 = arith.constant 0 : index
    %c0_12 = arith.constant 0 : index
    %21 = vector.load %arg2[%c0_11, %c0_12] : memref<9x16xf32, #tpu.memory_space<vmem>>, vector<1x16xf32>
    %22 = vector.broadcast %20 : vector<256x1xf32> to vector<256x16xf32>
    %23 = vector.broadcast %21 : vector<1x16xf32> to vector<256x16xf32>
    %24 = arith.mulf %22, %23 : vector<256x16xf32>
    %25 = arith.addf %18, %24 : vector<256x16xf32>
    %c8 = arith.constant 8 : index
    %c0_13 = arith.constant 0 : index
    %26 = vector.load %arg11[%c8, %c0_13] : memref<304x1xf32, #tpu.memory_space<vmem>>, vector<256x1xf32>
    %c1 = arith.constant 1 : index
    %c0_14 = arith.constant 0 : index
    %27 = vector.load %arg2[%c1, %c0_14] : memref<9x16xf32, #tpu.memory_space<vmem>>, vector<1x16xf32>
    %28 = vector.broadcast %26 : vector<256x1xf32> to vector<256x16xf32>
    %29 = vector.broadcast %27 : vector<1x16xf32> to vector<256x16xf32>
    %30 = arith.mulf %28, %29 : vector<256x16xf32>
    %31 = arith.addf %25, %30 : vector<256x16xf32>
    %c9 = arith.constant 9 : index
    %c0_15 = arith.constant 0 : index
    %32 = vector.load %arg11[%c9, %c0_15] : memref<304x1xf32, #tpu.memory_space<vmem>>, vector<256x1xf32>
    %33 = arith.mulf %32, %17 : vector<256x1xf32>
    %c2 = arith.constant 2 : index
    %c0_16 = arith.constant 0 : index
    %34 = vector.load %arg2[%c2, %c0_16] : memref<9x16xf32, #tpu.memory_space<vmem>>, vector<1x16xf32>
    %35 = vector.broadcast %33 : vector<256x1xf32> to vector<256x16xf32>
    %36 = vector.broadcast %34 : vector<1x16xf32> to vector<256x16xf32>
    %37 = arith.mulf %35, %36 : vector<256x16xf32>
    %38 = arith.addf %31, %37 : vector<256x16xf32>
    %c23 = arith.constant 23 : index
    %c0_17 = arith.constant 0 : index
    %39 = vector.load %arg11[%c23, %c0_17] : memref<304x1xf32, #tpu.memory_space<vmem>>, vector<256x1xf32>
    %40 = arith.mulf %39, %12 : vector<256x1xf32>
    %c3 = arith.constant 3 : index
    %c0_18 = arith.constant 0 : index
    %41 = vector.load %arg2[%c3, %c0_18] : memref<9x16xf32, #tpu.memory_space<vmem>>, vector<1x16xf32>
    %42 = vector.broadcast %40 : vector<256x1xf32> to vector<256x16xf32>
    %43 = vector.broadcast %41 : vector<1x16xf32> to vector<256x16xf32>
    %44 = arith.mulf %42, %43 : vector<256x16xf32>
    %45 = arith.addf %38, %44 : vector<256x16xf32>
    %c24_19 = arith.constant 24 : index
    %c0_20 = arith.constant 0 : index
    %46 = vector.load %arg11[%c24_19, %c0_20] : memref<304x1xf32, #tpu.memory_space<vmem>>, vector<256x1xf32>
    %c4 = arith.constant 4 : index
    %c0_21 = arith.constant 0 : index
    %47 = vector.load %arg2[%c4, %c0_21] : memref<9x16xf32, #tpu.memory_space<vmem>>, vector<1x16xf32>
    %48 = vector.broadcast %46 : vector<256x1xf32> to vector<256x16xf32>
    %49 = vector.broadcast %47 : vector<1x16xf32> to vector<256x16xf32>
    %50 = arith.mulf %48, %49 : vector<256x16xf32>
    %51 = arith.addf %45, %50 : vector<256x16xf32>
    %c25 = arith.constant 25 : index
    %c0_22 = arith.constant 0 : index
    %52 = vector.load %arg11[%c25, %c0_22] : memref<304x1xf32, #tpu.memory_space<vmem>>, vector<256x1xf32>
    %53 = arith.mulf %52, %17 : vector<256x1xf32>
    %c5 = arith.constant 5 : index
    %c0_23 = arith.constant 0 : index
    %54 = vector.load %arg2[%c5, %c0_23] : memref<9x16xf32, #tpu.memory_space<vmem>>, vector<1x16xf32>
    %55 = vector.broadcast %53 : vector<256x1xf32> to vector<256x16xf32>
    %56 = vector.broadcast %54 : vector<1x16xf32> to vector<256x16xf32>
    %57 = arith.mulf %55, %56 : vector<256x16xf32>
    %58 = arith.addf %51, %57 : vector<256x16xf32>
    %c39 = arith.constant 39 : index
    %c0_24 = arith.constant 0 : index
    %59 = vector.load %arg11[%c39, %c0_24] : memref<304x1xf32, #tpu.memory_space<vmem>>, vector<256x1xf32>
    %60 = arith.mulf %59, %12 : vector<256x1xf32>
    %c6 = arith.constant 6 : index
    %c0_25 = arith.constant 0 : index
    %61 = vector.load %arg2[%c6, %c0_25] : memref<9x16xf32, #tpu.memory_space<vmem>>, vector<1x16xf32>
    %62 = vector.broadcast %60 : vector<256x1xf32> to vector<256x16xf32>
    %63 = vector.broadcast %61 : vector<1x16xf32> to vector<256x16xf32>
    %64 = arith.mulf %62, %63 : vector<256x16xf32>
    %65 = arith.addf %58, %64 : vector<256x16xf32>
    %c40 = arith.constant 40 : index
    %c0_26 = arith.constant 0 : index
    %66 = vector.load %arg11[%c40, %c0_26] : memref<304x1xf32, #tpu.memory_space<vmem>>, vector<256x1xf32>
    %c7_27 = arith.constant 7 : index
    %c0_28 = arith.constant 0 : index
    %67 = vector.load %arg2[%c7_27, %c0_28] : memref<9x16xf32, #tpu.memory_space<vmem>>, vector<1x16xf32>
    %68 = vector.broadcast %66 : vector<256x1xf32> to vector<256x16xf32>
    %69 = vector.broadcast %67 : vector<1x16xf32> to vector<256x16xf32>
    %70 = arith.mulf %68, %69 : vector<256x16xf32>
    %71 = arith.addf %65, %70 : vector<256x16xf32>
    %c41 = arith.constant 41 : index
    %c0_29 = arith.constant 0 : index
    %72 = vector.load %arg11[%c41, %c0_29] : memref<304x1xf32, #tpu.memory_space<vmem>>, vector<256x1xf32>
    %73 = arith.mulf %72, %17 : vector<256x1xf32>
    %c8_30 = arith.constant 8 : index
    %c0_31 = arith.constant 0 : index
    %74 = vector.load %arg2[%c8_30, %c0_31] : memref<9x16xf32, #tpu.memory_space<vmem>>, vector<1x16xf32>
    %75 = vector.broadcast %73 : vector<256x1xf32> to vector<256x16xf32>
    %76 = vector.broadcast %74 : vector<1x16xf32> to vector<256x16xf32>
    %77 = arith.mulf %75, %76 : vector<256x16xf32>
    %78 = arith.addf %71, %77 : vector<256x16xf32>
    %c0_32 = arith.constant 0 : index
    %c0_33 = arith.constant 0 : index
    %79 = vector.load %arg3[%c0_32, %c0_33] : memref<1x16xf32, #tpu.memory_space<vmem>>, vector<1x16xf32>
    %80 = vector.broadcast %79 : vector<1x16xf32> to vector<256x16xf32>
    %81 = arith.addf %78, %80 : vector<256x16xf32>
    %cst_34 = arith.constant 0.000000e+00 : f32
    %82 = vector.broadcast %cst_34 : f32 to vector<256x16xf32>
    %83 = arith.maximumf %81, %82 : vector<256x16xf32>
    %84 = tpu.iota {dimensions = array<i32: 0>} : vector<64x1xi32>
    %c7_i32 = arith.constant 7 : i32
    %85 = vector.broadcast %c7_i32 : i32 to vector<64x1xi32>
    %86 = arith.andi %84, %85 : vector<64x1xi32>
    %c3_i32 = arith.constant 3 : i32
    %87 = vector.broadcast %c3_i32 : i32 to vector<64x1xi32>
    %88 = arith.shrsi %84, %87 : vector<64x1xi32>
    %c2_i32 = arith.constant 2 : i32
    %89 = vector.broadcast %c2_i32 : i32 to vector<64x1xi32>
    %90 = arith.muli %89, %88 : vector<64x1xi32>
    %c16_i32 = arith.constant 16 : i32
    %91 = vector.broadcast %c16_i32 : i32 to vector<64x1xi32>
    %92 = arith.muli %90, %91 : vector<64x1xi32>
    %c2_i32_35 = arith.constant 2 : i32
    %93 = vector.broadcast %c2_i32_35 : i32 to vector<64x1xi32>
    %94 = arith.muli %93, %86 : vector<64x1xi32>
    %95 = arith.addi %92, %94 : vector<64x1xi32>
    %96 = tpu.iota {dimensions = array<i32: 1>} : vector<1x256xi32>
    %c0_i32 = arith.constant 0 : i32
    %97 = vector.broadcast %c0_i32 : i32 to vector<64x1xi32>
    %98 = arith.addi %95, %97 : vector<64x1xi32>
    %99 = vector.broadcast %96 : vector<1x256xi32> to vector<64x256xi32>
    %100 = vector.broadcast %98 : vector<64x1xi32> to vector<64x256xi32>
    %101 = arith.cmpi eq, %99, %100 : vector<64x256xi32>
    %cst_36 = arith.constant 1.000000e+00 : f32
    %cst_37 = arith.constant 0.000000e+00 : f32
    %102 = vector.broadcast %cst_36 : f32 to vector<64x256xf32>
    %103 = vector.broadcast %cst_37 : f32 to vector<64x256xf32>
    %104 = arith.select %101, %102, %103 : vector<64x256xi1>, vector<64x256xf32>
    %cst_38 = arith.constant dense<0.000000e+00> : vector<64x16xf32>
    %105 = tpu.matmul %104, %83, %cst_38 {dimension_numbers = #tpu.dot_dimension_numbers<[1], [0], [0], [1], [0, 0, 1, 1], [], []>} : vector<64x256xf32>, vector<256x16xf32>, vector<64x16xf32> -> vector<64x16xf32>
    %c1_i32_39 = arith.constant 1 : i32
    %106 = vector.broadcast %c1_i32_39 : i32 to vector<64x1xi32>
    %107 = arith.addi %95, %106 : vector<64x1xi32>
    %108 = vector.broadcast %96 : vector<1x256xi32> to vector<64x256xi32>
    %109 = vector.broadcast %107 : vector<64x1xi32> to vector<64x256xi32>
    %110 = arith.cmpi eq, %108, %109 : vector<64x256xi32>
    %cst_40 = arith.constant 1.000000e+00 : f32
    %cst_41 = arith.constant 0.000000e+00 : f32
    %111 = vector.broadcast %cst_40 : f32 to vector<64x256xf32>
    %112 = vector.broadcast %cst_41 : f32 to vector<64x256xf32>
    %113 = arith.select %110, %111, %112 : vector<64x256xi1>, vector<64x256xf32>
    %cst_42 = arith.constant dense<0.000000e+00> : vector<64x16xf32>
    %114 = tpu.matmul %113, %83, %cst_42 {dimension_numbers = #tpu.dot_dimension_numbers<[1], [0], [0], [1], [0, 0, 1, 1], [], []>} : vector<64x256xf32>, vector<256x16xf32>, vector<64x16xf32> -> vector<64x16xf32>
    %115 = arith.maximumf %105, %114 : vector<64x16xf32>
    %c16_i32_43 = arith.constant 16 : i32
    %116 = vector.broadcast %c16_i32_43 : i32 to vector<64x1xi32>
    %117 = arith.addi %95, %116 : vector<64x1xi32>
    %118 = vector.broadcast %96 : vector<1x256xi32> to vector<64x256xi32>
    %119 = vector.broadcast %117 : vector<64x1xi32> to vector<64x256xi32>
    %120 = arith.cmpi eq, %118, %119 : vector<64x256xi32>
    %cst_44 = arith.constant 1.000000e+00 : f32
    %cst_45 = arith.constant 0.000000e+00 : f32
    %121 = vector.broadcast %cst_44 : f32 to vector<64x256xf32>
    %122 = vector.broadcast %cst_45 : f32 to vector<64x256xf32>
    %123 = arith.select %120, %121, %122 : vector<64x256xi1>, vector<64x256xf32>
    %cst_46 = arith.constant dense<0.000000e+00> : vector<64x16xf32>
    %124 = tpu.matmul %123, %83, %cst_46 {dimension_numbers = #tpu.dot_dimension_numbers<[1], [0], [0], [1], [0, 0, 1, 1], [], []>} : vector<64x256xf32>, vector<256x16xf32>, vector<64x16xf32> -> vector<64x16xf32>
    %125 = arith.maximumf %115, %124 : vector<64x16xf32>
    %c17_i32 = arith.constant 17 : i32
    %126 = vector.broadcast %c17_i32 : i32 to vector<64x1xi32>
    %127 = arith.addi %95, %126 : vector<64x1xi32>
    %128 = vector.broadcast %96 : vector<1x256xi32> to vector<64x256xi32>
    %129 = vector.broadcast %127 : vector<64x1xi32> to vector<64x256xi32>
    %130 = arith.cmpi eq, %128, %129 : vector<64x256xi32>
    %cst_47 = arith.constant 1.000000e+00 : f32
    %cst_48 = arith.constant 0.000000e+00 : f32
    %131 = vector.broadcast %cst_47 : f32 to vector<64x256xf32>
    %132 = vector.broadcast %cst_48 : f32 to vector<64x256xf32>
    %133 = arith.select %130, %131, %132 : vector<64x256xi1>, vector<64x256xf32>
    %cst_49 = arith.constant dense<0.000000e+00> : vector<64x16xf32>
    %134 = tpu.matmul %133, %83, %cst_49 {dimension_numbers = #tpu.dot_dimension_numbers<[1], [0], [0], [1], [0, 0, 1, 1], [], []>} : vector<64x256xf32>, vector<256x16xf32>, vector<64x16xf32> -> vector<64x16xf32>
    %135 = arith.maximumf %125, %134 : vector<64x16xf32>
    %cst_50 = arith.constant 0.000000e+00 : f32
    %136 = vector.broadcast %cst_50 : f32 to vector<16x16xf32>
    %c0_51 = arith.constant 0 : index
    %c0_52 = arith.constant 0 : index
    %137 = vector.load %arg12[%c0_51, %c0_52] : memref<96x16xf32, #tpu.memory_space<vmem>>, vector<16x16xf32>
    tpu.vector_store %arg12[%c0_51, %c0_52], %136 {strides = array<i32>} : memref<96x16xf32, #tpu.memory_space<vmem>>, vector<16x16xf32>,
    %c80 = arith.constant 80 : index
    %c0_53 = arith.constant 0 : index
    %138 = vector.load %arg12[%c80, %c0_53] : memref<96x16xf32, #tpu.memory_space<vmem>>, vector<16x16xf32>
    tpu.vector_store %arg12[%c80, %c0_53], %136 {strides = array<i32>} : memref<96x16xf32, #tpu.memory_space<vmem>>, vector<16x16xf32>,
    %c16 = arith.constant 16 : index
    %c0_54 = arith.constant 0 : index
    %139 = vector.load %arg12[%c16, %c0_54] : memref<96x16xf32, #tpu.memory_space<vmem>>, vector<64x16xf32>
    tpu.vector_store %arg12[%c16, %c0_54], %135 {strides = array<i32>} : memref<96x16xf32, #tpu.memory_space<vmem>>, vector<64x16xf32>,
    %140 = tpu.iota {dimensions = array<i32: 0>} : vector<64x1xi32>
    %c7_i32_55 = arith.constant 7 : i32
    %141 = vector.broadcast %c7_i32_55 : i32 to vector<64x1xi32>
    %142 = arith.andi %140, %141 : vector<64x1xi32>
    %c1_i32_56 = arith.constant 1 : i32
    %143 = vector.broadcast %c1_i32_56 : i32 to vector<64x1xi32>
    %144 = arith.cmpi sge, %142, %143 : vector<64x1xi32>
    %cst_57 = arith.constant 1.000000e+00 : f32
    %cst_58 = arith.constant 0.000000e+00 : f32
    %145 = vector.broadcast %cst_57 : f32 to vector<64x1xf32>
    %146 = vector.broadcast %cst_58 : f32 to vector<64x1xf32>
    %147 = arith.select %144, %145, %146 : vector<64x1xi1>, vector<64x1xf32>
    %c6_i32 = arith.constant 6 : i32
    %148 = vector.broadcast %c6_i32 : i32 to vector<64x1xi32>
    %149 = arith.cmpi sle, %142, %148 : vector<64x1xi32>
    %cst_59 = arith.constant 1.000000e+00 : f32
    %cst_60 = arith.constant 0.000000e+00 : f32
    %150 = vector.broadcast %cst_59 : f32 to vector<64x1xf32>
    %151 = vector.broadcast %cst_60 : f32 to vector<64x1xf32>
    %152 = arith.select %149, %150, %151 : vector<64x1xi1>, vector<64x1xf32>
    %cst_61 = arith.constant 0.000000e+00 : f32
    %153 = vector.broadcast %cst_61 : f32 to vector<64x4xf32>
    %c7_62 = arith.constant 7 : index
    %c0_63 = arith.constant 0 : index
    %154 = vector.load %arg12[%c7_62, %c0_63] : memref<96x16xf32, #tpu.memory_space<vmem>>, vector<64x16xf32>
    %155 = vector.broadcast %147 : vector<64x1xf32> to vector<64x16xf32>
    %156 = arith.mulf %154, %155 : vector<64x16xf32>
    %c0_64 = arith.constant 0 : index
    %c0_65 = arith.constant 0 : index
    %157 = vector.load %arg4[%c0_64, %c0_65] : memref<144x4xf32, #tpu.memory_space<vmem>>, vector<16x4xf32>
    %cst_66 = arith.constant dense<0.000000e+00> : vector<64x4xf32>
    %158 = tpu.matmul %156, %157, %cst_66 {dimension_numbers = #tpu.dot_dimension_numbers<[1], [0], [0], [1], [0, 0, 1, 1], [], []>} : vector<64x16xf32>, vector<16x4xf32>, vector<64x4xf32> -> vector<64x4xf32>
    %159 = arith.addf %153, %158 : vector<64x4xf32>
    %c8_67 = arith.constant 8 : index
    %c0_68 = arith.constant 0 : index
    %160 = vector.load %arg12[%c8_67, %c0_68] : memref<96x16xf32, #tpu.memory_space<vmem>>, vector<64x16xf32>
    %c16_69 = arith.constant 16 : index
    %c0_70 = arith.constant 0 : index
    %161 = vector.load %arg4[%c16_69, %c0_70] : memref<144x4xf32, #tpu.memory_space<vmem>>, vector<16x4xf32>
    %cst_71 = arith.constant dense<0.000000e+00> : vector<64x4xf32>
    %162 = tpu.matmul %160, %161, %cst_71 {dimension_numbers = #tpu.dot_dimension_numbers<[1], [0], [0], [1], [0, 0, 1, 1], [], []>} : vector<64x16xf32>, vector<16x4xf32>, vector<64x4xf32> -> vector<64x4xf32>
    %163 = arith.addf %159, %162 : vector<64x4xf32>
    %c9_72 = arith.constant 9 : index
    %c0_73 = arith.constant 0 : index
    %164 = vector.load %arg12[%c9_72, %c0_73] : memref<96x16xf32, #tpu.memory_space<vmem>>, vector<64x16xf32>
    %165 = vector.broadcast %152 : vector<64x1xf32> to vector<64x16xf32>
    %166 = arith.mulf %164, %165 : vector<64x16xf32>
    %c32 = arith.constant 32 : index
    %c0_74 = arith.constant 0 : index
    %167 = vector.load %arg4[%c32, %c0_74] : memref<144x4xf32, #tpu.memory_space<vmem>>, vector<16x4xf32>
    %cst_75 = arith.constant dense<0.000000e+00> : vector<64x4xf32>
    %168 = tpu.matmul %166, %167, %cst_75 {dimension_numbers = #tpu.dot_dimension_numbers<[1], [0], [0], [1], [0, 0, 1, 1], [], []>} : vector<64x16xf32>, vector<16x4xf32>, vector<64x4xf32> -> vector<64x4xf32>
    %169 = arith.addf %163, %168 : vector<64x4xf32>
    %c15 = arith.constant 15 : index
    %c0_76 = arith.constant 0 : index
    %170 = vector.load %arg12[%c15, %c0_76] : memref<96x16xf32, #tpu.memory_space<vmem>>, vector<64x16xf32>
    %171 = vector.broadcast %147 : vector<64x1xf32> to vector<64x16xf32>
    %172 = arith.mulf %170, %171 : vector<64x16xf32>
    %c48 = arith.constant 48 : index
    %c0_77 = arith.constant 0 : index
    %173 = vector.load %arg4[%c48, %c0_77] : memref<144x4xf32, #tpu.memory_space<vmem>>, vector<16x4xf32>
    %cst_78 = arith.constant dense<0.000000e+00> : vector<64x4xf32>
    %174 = tpu.matmul %172, %173, %cst_78 {dimension_numbers = #tpu.dot_dimension_numbers<[1], [0], [0], [1], [0, 0, 1, 1], [], []>} : vector<64x16xf32>, vector<16x4xf32>, vector<64x4xf32> -> vector<64x4xf32>
    %175 = arith.addf %169, %174 : vector<64x4xf32>
    %c16_79 = arith.constant 16 : index
    %c0_80 = arith.constant 0 : index
    %176 = vector.load %arg12[%c16_79, %c0_80] : memref<96x16xf32, #tpu.memory_space<vmem>>, vector<64x16xf32>
    %c64 = arith.constant 64 : index
    %c0_81 = arith.constant 0 : index
    %177 = vector.load %arg4[%c64, %c0_81] : memref<144x4xf32, #tpu.memory_space<vmem>>, vector<16x4xf32>
    %cst_82 = arith.constant dense<0.000000e+00> : vector<64x4xf32>
    %178 = tpu.matmul %176, %177, %cst_82 {dimension_numbers = #tpu.dot_dimension_numbers<[1], [0], [0], [1], [0, 0, 1, 1], [], []>} : vector<64x16xf32>, vector<16x4xf32>, vector<64x4xf32> -> vector<64x4xf32>
    %179 = arith.addf %175, %178 : vector<64x4xf32>
    %c17 = arith.constant 17 : index
    %c0_83 = arith.constant 0 : index
    %180 = vector.load %arg12[%c17, %c0_83] : memref<96x16xf32, #tpu.memory_space<vmem>>, vector<64x16xf32>
    %181 = vector.broadcast %152 : vector<64x1xf32> to vector<64x16xf32>
    %182 = arith.mulf %180, %181 : vector<64x16xf32>
    %c80_84 = arith.constant 80 : index
    %c0_85 = arith.constant 0 : index
    %183 = vector.load %arg4[%c80_84, %c0_85] : memref<144x4xf32, #tpu.memory_space<vmem>>, vector<16x4xf32>
    %cst_86 = arith.constant dense<0.000000e+00> : vector<64x4xf32>
    %184 = tpu.matmul %182, %183, %cst_86 {dimension_numbers = #tpu.dot_dimension_numbers<[1], [0], [0], [1], [0, 0, 1, 1], [], []>} : vector<64x16xf32>, vector<16x4xf32>, vector<64x4xf32> -> vector<64x4xf32>
    %185 = arith.addf %179, %184 : vector<64x4xf32>
    %c23_87 = arith.constant 23 : index
    %c0_88 = arith.constant 0 : index
    %186 = vector.load %arg12[%c23_87, %c0_88] : memref<96x16xf32, #tpu.memory_space<vmem>>, vector<64x16xf32>
    %187 = vector.broadcast %147 : vector<64x1xf32> to vector<64x16xf32>
    %188 = arith.mulf %186, %187 : vector<64x16xf32>
    %c96 = arith.constant 96 : index
    %c0_89 = arith.constant 0 : index
    %189 = vector.load %arg4[%c96, %c0_89] : memref<144x4xf32, #tpu.memory_space<vmem>>, vector<16x4xf32>
    %cst_90 = arith.constant dense<0.000000e+00> : vector<64x4xf32>
    %190 = tpu.matmul %188, %189, %cst_90 {dimension_numbers = #tpu.dot_dimension_numbers<[1], [0], [0], [1], [0, 0, 1, 1], [], []>} : vector<64x16xf32>, vector<16x4xf32>, vector<64x4xf32> -> vector<64x4xf32>
    %191 = arith.addf %185, %190 : vector<64x4xf32>
    %c24_91 = arith.constant 24 : index
    %c0_92 = arith.constant 0 : index
    %192 = vector.load %arg12[%c24_91, %c0_92] : memref<96x16xf32, #tpu.memory_space<vmem>>, vector<64x16xf32>
    %c112 = arith.constant 112 : index
    %c0_93 = arith.constant 0 : index
    %193 = vector.load %arg4[%c112, %c0_93] : memref<144x4xf32, #tpu.memory_space<vmem>>, vector<16x4xf32>
    %cst_94 = arith.constant dense<0.000000e+00> : vector<64x4xf32>
    %194 = tpu.matmul %192, %193, %cst_94 {dimension_numbers = #tpu.dot_dimension_numbers<[1], [0], [0], [1], [0, 0, 1, 1], [], []>} : vector<64x16xf32>, vector<16x4xf32>, vector<64x4xf32> -> vector<64x4xf32>
    %195 = arith.addf %191, %194 : vector<64x4xf32>
    %c25_95 = arith.constant 25 : index
    %c0_96 = arith.constant 0 : index
    %196 = vector.load %arg12[%c25_95, %c0_96] : memref<96x16xf32, #tpu.memory_space<vmem>>, vector<64x16xf32>
    %197 = vector.broadcast %152 : vector<64x1xf32> to vector<64x16xf32>
    %198 = arith.mulf %196, %197 : vector<64x16xf32>
    %c128 = arith.constant 128 : index
    %c0_97 = arith.constant 0 : index
    %199 = vector.load %arg4[%c128, %c0_97] : memref<144x4xf32, #tpu.memory_space<vmem>>, vector<16x4xf32>
    %cst_98 = arith.constant dense<0.000000e+00> : vector<64x4xf32>
    %200 = tpu.matmul %198, %199, %cst_98 {dimension_numbers = #tpu.dot_dimension_numbers<[1], [0], [0], [1], [0, 0, 1, 1], [], []>} : vector<64x16xf32>, vector<16x4xf32>, vector<64x4xf32> -> vector<64x4xf32>
    %201 = arith.addf %195, %200 : vector<64x4xf32>
    %c0_99 = arith.constant 0 : index
    %c0_100 = arith.constant 0 : index
    %202 = vector.load %arg5[%c0_99, %c0_100] : memref<1x4xf32, #tpu.memory_space<vmem>>, vector<1x4xf32>
    %203 = vector.broadcast %202 : vector<1x4xf32> to vector<64x4xf32>
    %204 = arith.addf %201, %203 : vector<64x4xf32>
    %cst_101 = arith.constant 0.000000e+00 : f32
    %205 = vector.broadcast %cst_101 : f32 to vector<64x4xf32>
    %206 = arith.maximumf %204, %205 : vector<64x4xf32>
    %207 = tpu.iota {dimensions = array<i32: 0>} : vector<16x1xi32>
    %c3_i32_102 = arith.constant 3 : i32
    %208 = vector.broadcast %c3_i32_102 : i32 to vector<16x1xi32>
    %209 = arith.andi %207, %208 : vector<16x1xi32>
    %c2_i32_103 = arith.constant 2 : i32
    %210 = vector.broadcast %c2_i32_103 : i32 to vector<16x1xi32>
    %211 = arith.shrsi %207, %210 : vector<16x1xi32>
    %c2_i32_104 = arith.constant 2 : i32
    %212 = vector.broadcast %c2_i32_104 : i32 to vector<16x1xi32>
    %213 = arith.muli %212, %211 : vector<16x1xi32>
    %c8_i32 = arith.constant 8 : i32
    %214 = vector.broadcast %c8_i32 : i32 to vector<16x1xi32>
    %215 = arith.muli %213, %214 : vector<16x1xi32>
    %c2_i32_105 = arith.constant 2 : i32
    %216 = vector.broadcast %c2_i32_105 : i32 to vector<16x1xi32>
    %217 = arith.muli %216, %209 : vector<16x1xi32>
    %218 = arith.addi %215, %217 : vector<16x1xi32>
    %219 = tpu.iota {dimensions = array<i32: 1>} : vector<1x64xi32>
    %c0_i32_106 = arith.constant 0 : i32
    %220 = vector.broadcast %c0_i32_106 : i32 to vector<16x1xi32>
    %221 = arith.addi %218, %220 : vector<16x1xi32>
    %222 = vector.broadcast %219 : vector<1x64xi32> to vector<16x64xi32>
    %223 = vector.broadcast %221 : vector<16x1xi32> to vector<16x64xi32>
    %224 = arith.cmpi eq, %222, %223 : vector<16x64xi32>
    %cst_107 = arith.constant 1.000000e+00 : f32
    %cst_108 = arith.constant 0.000000e+00 : f32
    %225 = vector.broadcast %cst_107 : f32 to vector<16x64xf32>
    %226 = vector.broadcast %cst_108 : f32 to vector<16x64xf32>
    %227 = arith.select %224, %225, %226 : vector<16x64xi1>, vector<16x64xf32>
    %cst_109 = arith.constant dense<0.000000e+00> : vector<16x4xf32>
    %228 = tpu.matmul %227, %206, %cst_109 {dimension_numbers = #tpu.dot_dimension_numbers<[1], [0], [0], [1], [0, 0, 1, 1], [], []>} : vector<16x64xf32>, vector<64x4xf32>, vector<16x4xf32> -> vector<16x4xf32>
    %c1_i32_110 = arith.constant 1 : i32
    %229 = vector.broadcast %c1_i32_110 : i32 to vector<16x1xi32>
    %230 = arith.addi %218, %229 : vector<16x1xi32>
    %231 = vector.broadcast %219 : vector<1x64xi32> to vector<16x64xi32>
    %232 = vector.broadcast %230 : vector<16x1xi32> to vector<16x64xi32>
    %233 = arith.cmpi eq, %231, %232 : vector<16x64xi32>
    %cst_111 = arith.constant 1.000000e+00 : f32
    %cst_112 = arith.constant 0.000000e+00 : f32
    %234 = vector.broadcast %cst_111 : f32 to vector<16x64xf32>
    %235 = vector.broadcast %cst_112 : f32 to vector<16x64xf32>
    %236 = arith.select %233, %234, %235 : vector<16x64xi1>, vector<16x64xf32>
    %cst_113 = arith.constant dense<0.000000e+00> : vector<16x4xf32>
    %237 = tpu.matmul %236, %206, %cst_113 {dimension_numbers = #tpu.dot_dimension_numbers<[1], [0], [0], [1], [0, 0, 1, 1], [], []>} : vector<16x64xf32>, vector<64x4xf32>, vector<16x4xf32> -> vector<16x4xf32>
    %238 = arith.maximumf %228, %237 : vector<16x4xf32>
    %c8_i32_114 = arith.constant 8 : i32
    %239 = vector.broadcast %c8_i32_114 : i32 to vector<16x1xi32>
    %240 = arith.addi %218, %239 : vector<16x1xi32>
    %241 = vector.broadcast %219 : vector<1x64xi32> to vector<16x64xi32>
    %242 = vector.broadcast %240 : vector<16x1xi32> to vector<16x64xi32>
    %243 = arith.cmpi eq, %241, %242 : vector<16x64xi32>
    %cst_115 = arith.constant 1.000000e+00 : f32
    %cst_116 = arith.constant 0.000000e+00 : f32
    %244 = vector.broadcast %cst_115 : f32 to vector<16x64xf32>
    %245 = vector.broadcast %cst_116 : f32 to vector<16x64xf32>
    %246 = arith.select %243, %244, %245 : vector<16x64xi1>, vector<16x64xf32>
    %cst_117 = arith.constant dense<0.000000e+00> : vector<16x4xf32>
    %247 = tpu.matmul %246, %206, %cst_117 {dimension_numbers = #tpu.dot_dimension_numbers<[1], [0], [0], [1], [0, 0, 1, 1], [], []>} : vector<16x64xf32>, vector<64x4xf32>, vector<16x4xf32> -> vector<16x4xf32>
    %248 = arith.maximumf %238, %247 : vector<16x4xf32>
    %c9_i32 = arith.constant 9 : i32
    %249 = vector.broadcast %c9_i32 : i32 to vector<16x1xi32>
    %250 = arith.addi %218, %249 : vector<16x1xi32>
    %251 = vector.broadcast %219 : vector<1x64xi32> to vector<16x64xi32>
    %252 = vector.broadcast %250 : vector<16x1xi32> to vector<16x64xi32>
    %253 = arith.cmpi eq, %251, %252 : vector<16x64xi32>
    %cst_118 = arith.constant 1.000000e+00 : f32
    %cst_119 = arith.constant 0.000000e+00 : f32
    %254 = vector.broadcast %cst_118 : f32 to vector<16x64xf32>
    %255 = vector.broadcast %cst_119 : f32 to vector<16x64xf32>
    %256 = arith.select %253, %254, %255 : vector<16x64xi1>, vector<16x64xf32>
    %cst_120 = arith.constant dense<0.000000e+00> : vector<16x4xf32>
    %257 = tpu.matmul %256, %206, %cst_120 {dimension_numbers = #tpu.dot_dimension_numbers<[1], [0], [0], [1], [0, 0, 1, 1], [], []>} : vector<16x64xf32>, vector<64x4xf32>, vector<16x4xf32> -> vector<16x4xf32>
    %258 = arith.maximumf %248, %257 : vector<16x4xf32>
    %cst_121 = arith.constant 0.000000e+00 : f32
    %259 = vector.broadcast %cst_121 : f32 to vector<8x4xf32>
    %c0_122 = arith.constant 0 : index
    %c0_123 = arith.constant 0 : index
    %260 = vector.load %arg13[%c0_122, %c0_123] : memref<32x4xf32, #tpu.memory_space<vmem>>, vector<8x4xf32>
    tpu.vector_store %arg13[%c0_122, %c0_123], %259 {strides = array<i32>} : memref<32x4xf32, #tpu.memory_space<vmem>>, vector<8x4xf32>,
    %c24_124 = arith.constant 24 : index
    %c0_125 = arith.constant 0 : index
    %261 = vector.load %arg13[%c24_124, %c0_125] : memref<32x4xf32, #tpu.memory_space<vmem>>, vector<8x4xf32>
    tpu.vector_store %arg13[%c24_124, %c0_125], %259 {strides = array<i32>} : memref<32x4xf32, #tpu.memory_space<vmem>>, vector<8x4xf32>,
    %c8_126 = arith.constant 8 : index
    %c0_127 = arith.constant 0 : index
    %262 = vector.load %arg13[%c8_126, %c0_127] : memref<32x4xf32, #tpu.memory_space<vmem>>, vector<16x4xf32>
    tpu.vector_store %arg13[%c8_126, %c0_127], %258 {strides = array<i32>} : memref<32x4xf32, #tpu.memory_space<vmem>>, vector<16x4xf32>,
    %263 = tpu.iota {dimensions = array<i32: 0>} : vector<16x1xi32>
    %c3_i32_128 = arith.constant 3 : i32
    %264 = vector.broadcast %c3_i32_128 : i32 to vector<16x1xi32>
    %265 = arith.andi %263, %264 : vector<16x1xi32>
    %c1_i32_129 = arith.constant 1 : i32
    %266 = vector.broadcast %c1_i32_129 : i32 to vector<16x1xi32>
    %267 = arith.cmpi sge, %265, %266 : vector<16x1xi32>
    %cst_130 = arith.constant 1.000000e+00 : f32
    %cst_131 = arith.constant 0.000000e+00 : f32
    %268 = vector.broadcast %cst_130 : f32 to vector<16x1xf32>
    %269 = vector.broadcast %cst_131 : f32 to vector<16x1xf32>
    %270 = arith.select %267, %268, %269 : vector<16x1xi1>, vector<16x1xf32>
    %c2_i32_132 = arith.constant 2 : i32
    %271 = vector.broadcast %c2_i32_132 : i32 to vector<16x1xi32>
    %272 = arith.cmpi sle, %265, %271 : vector<16x1xi32>
    %cst_133 = arith.constant 1.000000e+00 : f32
    %cst_134 = arith.constant 0.000000e+00 : f32
    %273 = vector.broadcast %cst_133 : f32 to vector<16x1xf32>
    %274 = vector.broadcast %cst_134 : f32 to vector<16x1xf32>
    %275 = arith.select %272, %273, %274 : vector<16x1xi1>, vector<16x1xf32>
    %cst_135 = arith.constant 0.000000e+00 : f32
    %276 = vector.broadcast %cst_135 : f32 to vector<16x16xf32>
    %c3_136 = arith.constant 3 : index
    %c0_137 = arith.constant 0 : index
    %277 = vector.load %arg13[%c3_136, %c0_137] : memref<32x4xf32, #tpu.memory_space<vmem>>, vector<16x4xf32>
    %278 = vector.broadcast %270 : vector<16x1xf32> to vector<16x4xf32>
    %279 = arith.mulf %277, %278 : vector<16x4xf32>
    %c0_138 = arith.constant 0 : index
    %c0_139 = arith.constant 0 : index
    %280 = vector.load %arg6[%c0_138, %c0_139] : memref<36x16xf32, #tpu.memory_space<vmem>>, vector<4x16xf32>
    %cst_140 = arith.constant dense<0.000000e+00> : vector<16x16xf32>
    %281 = tpu.matmul %279, %280, %cst_140 {dimension_numbers = #tpu.dot_dimension_numbers<[1], [0], [0], [1], [0, 0, 1, 1], [], []>} : vector<16x4xf32>, vector<4x16xf32>, vector<16x16xf32> -> vector<16x16xf32>
    %282 = arith.addf %276, %281 : vector<16x16xf32>
    %c4_141 = arith.constant 4 : index
    %c0_142 = arith.constant 0 : index
    %283 = vector.load %arg13[%c4_141, %c0_142] : memref<32x4xf32, #tpu.memory_space<vmem>>, vector<16x4xf32>
    %c4_143 = arith.constant 4 : index
    %c0_144 = arith.constant 0 : index
    %284 = vector.load %arg6[%c4_143, %c0_144] : memref<36x16xf32, #tpu.memory_space<vmem>>, vector<4x16xf32>
    %cst_145 = arith.constant dense<0.000000e+00> : vector<16x16xf32>
    %285 = tpu.matmul %283, %284, %cst_145 {dimension_numbers = #tpu.dot_dimension_numbers<[1], [0], [0], [1], [0, 0, 1, 1], [], []>} : vector<16x4xf32>, vector<4x16xf32>, vector<16x16xf32> -> vector<16x16xf32>
    %286 = arith.addf %282, %285 : vector<16x16xf32>
    %c5_146 = arith.constant 5 : index
    %c0_147 = arith.constant 0 : index
    %287 = vector.load %arg13[%c5_146, %c0_147] : memref<32x4xf32, #tpu.memory_space<vmem>>, vector<16x4xf32>
    %288 = vector.broadcast %275 : vector<16x1xf32> to vector<16x4xf32>
    %289 = arith.mulf %287, %288 : vector<16x4xf32>
    %c8_148 = arith.constant 8 : index
    %c0_149 = arith.constant 0 : index
    %290 = vector.load %arg6[%c8_148, %c0_149] : memref<36x16xf32, #tpu.memory_space<vmem>>, vector<4x16xf32>
    %cst_150 = arith.constant dense<0.000000e+00> : vector<16x16xf32>
    %291 = tpu.matmul %289, %290, %cst_150 {dimension_numbers = #tpu.dot_dimension_numbers<[1], [0], [0], [1], [0, 0, 1, 1], [], []>} : vector<16x4xf32>, vector<4x16xf32>, vector<16x16xf32> -> vector<16x16xf32>
    %292 = arith.addf %286, %291 : vector<16x16xf32>
    %c7_151 = arith.constant 7 : index
    %c0_152 = arith.constant 0 : index
    %293 = vector.load %arg13[%c7_151, %c0_152] : memref<32x4xf32, #tpu.memory_space<vmem>>, vector<16x4xf32>
    %294 = vector.broadcast %270 : vector<16x1xf32> to vector<16x4xf32>
    %295 = arith.mulf %293, %294 : vector<16x4xf32>
    %c12 = arith.constant 12 : index
    %c0_153 = arith.constant 0 : index
    %296 = vector.load %arg6[%c12, %c0_153] : memref<36x16xf32, #tpu.memory_space<vmem>>, vector<4x16xf32>
    %cst_154 = arith.constant dense<0.000000e+00> : vector<16x16xf32>
    %297 = tpu.matmul %295, %296, %cst_154 {dimension_numbers = #tpu.dot_dimension_numbers<[1], [0], [0], [1], [0, 0, 1, 1], [], []>} : vector<16x4xf32>, vector<4x16xf32>, vector<16x16xf32> -> vector<16x16xf32>
    %298 = arith.addf %292, %297 : vector<16x16xf32>
    %c8_155 = arith.constant 8 : index
    %c0_156 = arith.constant 0 : index
    %299 = vector.load %arg13[%c8_155, %c0_156] : memref<32x4xf32, #tpu.memory_space<vmem>>, vector<16x4xf32>
    %c16_157 = arith.constant 16 : index
    %c0_158 = arith.constant 0 : index
    %300 = vector.load %arg6[%c16_157, %c0_158] : memref<36x16xf32, #tpu.memory_space<vmem>>, vector<4x16xf32>
    %cst_159 = arith.constant dense<0.000000e+00> : vector<16x16xf32>
    %301 = tpu.matmul %299, %300, %cst_159 {dimension_numbers = #tpu.dot_dimension_numbers<[1], [0], [0], [1], [0, 0, 1, 1], [], []>} : vector<16x4xf32>, vector<4x16xf32>, vector<16x16xf32> -> vector<16x16xf32>
    %302 = arith.addf %298, %301 : vector<16x16xf32>
    %c9_160 = arith.constant 9 : index
    %c0_161 = arith.constant 0 : index
    %303 = vector.load %arg13[%c9_160, %c0_161] : memref<32x4xf32, #tpu.memory_space<vmem>>, vector<16x4xf32>
    %304 = vector.broadcast %275 : vector<16x1xf32> to vector<16x4xf32>
    %305 = arith.mulf %303, %304 : vector<16x4xf32>
    %c20 = arith.constant 20 : index
    %c0_162 = arith.constant 0 : index
    %306 = vector.load %arg6[%c20, %c0_162] : memref<36x16xf32, #tpu.memory_space<vmem>>, vector<4x16xf32>
    %cst_163 = arith.constant dense<0.000000e+00> : vector<16x16xf32>
    %307 = tpu.matmul %305, %306, %cst_163 {dimension_numbers = #tpu.dot_dimension_numbers<[1], [0], [0], [1], [0, 0, 1, 1], [], []>} : vector<16x4xf32>, vector<4x16xf32>, vector<16x16xf32> -> vector<16x16xf32>
    %308 = arith.addf %302, %307 : vector<16x16xf32>
    %c11 = arith.constant 11 : index
    %c0_164 = arith.constant 0 : index
    %309 = vector.load %arg13[%c11, %c0_164] : memref<32x4xf32, #tpu.memory_space<vmem>>, vector<16x4xf32>
    %310 = vector.broadcast %270 : vector<16x1xf32> to vector<16x4xf32>
    %311 = arith.mulf %309, %310 : vector<16x4xf32>
    %c24_165 = arith.constant 24 : index
    %c0_166 = arith.constant 0 : index
    %312 = vector.load %arg6[%c24_165, %c0_166] : memref<36x16xf32, #tpu.memory_space<vmem>>, vector<4x16xf32>
    %cst_167 = arith.constant dense<0.000000e+00> : vector<16x16xf32>
    %313 = tpu.matmul %311, %312, %cst_167 {dimension_numbers = #tpu.dot_dimension_numbers<[1], [0], [0], [1], [0, 0, 1, 1], [], []>} : vector<16x4xf32>, vector<4x16xf32>, vector<16x16xf32> -> vector<16x16xf32>
    %314 = arith.addf %308, %313 : vector<16x16xf32>
    %c12_168 = arith.constant 12 : index
    %c0_169 = arith.constant 0 : index
    %315 = vector.load %arg13[%c12_168, %c0_169] : memref<32x4xf32, #tpu.memory_space<vmem>>, vector<16x4xf32>
    %c28 = arith.constant 28 : index
    %c0_170 = arith.constant 0 : index
    %316 = vector.load %arg6[%c28, %c0_170] : memref<36x16xf32, #tpu.memory_space<vmem>>, vector<4x16xf32>
    %cst_171 = arith.constant dense<0.000000e+00> : vector<16x16xf32>
    %317 = tpu.matmul %315, %316, %cst_171 {dimension_numbers = #tpu.dot_dimension_numbers<[1], [0], [0], [1], [0, 0, 1, 1], [], []>} : vector<16x4xf32>, vector<4x16xf32>, vector<16x16xf32> -> vector<16x16xf32>
    %318 = arith.addf %314, %317 : vector<16x16xf32>
    %c13 = arith.constant 13 : index
    %c0_172 = arith.constant 0 : index
    %319 = vector.load %arg13[%c13, %c0_172] : memref<32x4xf32, #tpu.memory_space<vmem>>, vector<16x4xf32>
    %320 = vector.broadcast %275 : vector<16x1xf32> to vector<16x4xf32>
    %321 = arith.mulf %319, %320 : vector<16x4xf32>
    %c32_173 = arith.constant 32 : index
    %c0_174 = arith.constant 0 : index
    %322 = vector.load %arg6[%c32_173, %c0_174] : memref<36x16xf32, #tpu.memory_space<vmem>>, vector<4x16xf32>
    %cst_175 = arith.constant dense<0.000000e+00> : vector<16x16xf32>
    %323 = tpu.matmul %321, %322, %cst_175 {dimension_numbers = #tpu.dot_dimension_numbers<[1], [0], [0], [1], [0, 0, 1, 1], [], []>} : vector<16x4xf32>, vector<4x16xf32>, vector<16x16xf32> -> vector<16x16xf32>
    %324 = arith.addf %318, %323 : vector<16x16xf32>
    %c0_176 = arith.constant 0 : index
    %c0_177 = arith.constant 0 : index
    %325 = vector.load %arg7[%c0_176, %c0_177] : memref<1x16xf32, #tpu.memory_space<vmem>>, vector<1x16xf32>
    %326 = vector.broadcast %325 : vector<1x16xf32> to vector<16x16xf32>
    %327 = arith.addf %324, %326 : vector<16x16xf32>
    %328 = tpu.iota {dimensions = array<i32: 0>} : vector<64x1xi32>
    %c7_i32_178 = arith.constant 7 : i32
    %329 = vector.broadcast %c7_i32_178 : i32 to vector<64x1xi32>
    %330 = arith.andi %328, %329 : vector<64x1xi32>
    %c3_i32_179 = arith.constant 3 : i32
    %331 = vector.broadcast %c3_i32_179 : i32 to vector<64x1xi32>
    %332 = arith.shrsi %328, %331 : vector<64x1xi32>
    %c1_i32_180 = arith.constant 1 : i32
    %333 = vector.broadcast %c1_i32_180 : i32 to vector<64x1xi32>
    %334 = arith.shrsi %332, %333 : vector<64x1xi32>
    %c4_i32 = arith.constant 4 : i32
    %335 = vector.broadcast %c4_i32 : i32 to vector<64x1xi32>
    %336 = arith.muli %334, %335 : vector<64x1xi32>
    %c1_i32_181 = arith.constant 1 : i32
    %337 = vector.broadcast %c1_i32_181 : i32 to vector<64x1xi32>
    %338 = arith.shrsi %330, %337 : vector<64x1xi32>
    %339 = arith.addi %336, %338 : vector<64x1xi32>
    %340 = tpu.iota {dimensions = array<i32: 1>} : vector<1x16xi32>
    %341 = vector.broadcast %340 : vector<1x16xi32> to vector<64x16xi32>
    %342 = vector.broadcast %339 : vector<64x1xi32> to vector<64x16xi32>
    %343 = arith.cmpi eq, %341, %342 : vector<64x16xi32>
    %cst_182 = arith.constant 1.000000e+00 : f32
    %cst_183 = arith.constant 0.000000e+00 : f32
    %344 = vector.broadcast %cst_182 : f32 to vector<64x16xf32>
    %345 = vector.broadcast %cst_183 : f32 to vector<64x16xf32>
    %346 = arith.select %343, %344, %345 : vector<64x16xi1>, vector<64x16xf32>
    %cst_184 = arith.constant dense<0.000000e+00> : vector<64x16xf32>
    %347 = tpu.matmul %346, %327, %cst_184 {dimension_numbers = #tpu.dot_dimension_numbers<[1], [0], [0], [1], [0, 0, 1, 1], [], []>} : vector<64x16xf32>, vector<16x16xf32>, vector<64x16xf32> -> vector<64x16xf32>
    %cst_185 = arith.constant 0.000000e+00 : f32
    %348 = vector.broadcast %cst_185 : f32 to vector<64x16xf32>
    %349 = arith.maximumf %347, %348 : vector<64x16xf32>
    %cst_186 = arith.constant 0.000000e+00 : f32
    %350 = vector.broadcast %cst_186 : f32 to vector<16x16xf32>
    %c0_187 = arith.constant 0 : index
    %c0_188 = arith.constant 0 : index
    %351 = vector.load %arg14[%c0_187, %c0_188] : memref<96x16xf32, #tpu.memory_space<vmem>>, vector<16x16xf32>
    tpu.vector_store %arg14[%c0_187, %c0_188], %350 {strides = array<i32>} : memref<96x16xf32, #tpu.memory_space<vmem>>, vector<16x16xf32>,
    %c80_189 = arith.constant 80 : index
    %c0_190 = arith.constant 0 : index
    %352 = vector.load %arg14[%c80_189, %c0_190] : memref<96x16xf32, #tpu.memory_space<vmem>>, vector<16x16xf32>
    tpu.vector_store %arg14[%c80_189, %c0_190], %350 {strides = array<i32>} : memref<96x16xf32, #tpu.memory_space<vmem>>, vector<16x16xf32>,
    %c16_191 = arith.constant 16 : index
    %c0_192 = arith.constant 0 : index
    %353 = vector.load %arg14[%c16_191, %c0_192] : memref<96x16xf32, #tpu.memory_space<vmem>>, vector<64x16xf32>
    tpu.vector_store %arg14[%c16_191, %c0_192], %349 {strides = array<i32>} : memref<96x16xf32, #tpu.memory_space<vmem>>, vector<64x16xf32>,
    %354 = tpu.iota {dimensions = array<i32: 0>} : vector<64x1xi32>
    %c7_i32_193 = arith.constant 7 : i32
    %355 = vector.broadcast %c7_i32_193 : i32 to vector<64x1xi32>
    %356 = arith.andi %354, %355 : vector<64x1xi32>
    %c1_i32_194 = arith.constant 1 : i32
    %357 = vector.broadcast %c1_i32_194 : i32 to vector<64x1xi32>
    %358 = arith.cmpi sge, %356, %357 : vector<64x1xi32>
    %cst_195 = arith.constant 1.000000e+00 : f32
    %cst_196 = arith.constant 0.000000e+00 : f32
    %359 = vector.broadcast %cst_195 : f32 to vector<64x1xf32>
    %360 = vector.broadcast %cst_196 : f32 to vector<64x1xf32>
    %361 = arith.select %358, %359, %360 : vector<64x1xi1>, vector<64x1xf32>
    %c6_i32_197 = arith.constant 6 : i32
    %362 = vector.broadcast %c6_i32_197 : i32 to vector<64x1xi32>
    %363 = arith.cmpi sle, %356, %362 : vector<64x1xi32>
    %cst_198 = arith.constant 1.000000e+00 : f32
    %cst_199 = arith.constant 0.000000e+00 : f32
    %364 = vector.broadcast %cst_198 : f32 to vector<64x1xf32>
    %365 = vector.broadcast %cst_199 : f32 to vector<64x1xf32>
    %366 = arith.select %363, %364, %365 : vector<64x1xi1>, vector<64x1xf32>
    %cst_200 = arith.constant 0.000000e+00 : f32
    %367 = vector.broadcast %cst_200 : f32 to vector<64x16xf32>
    %c7_201 = arith.constant 7 : index
    %c0_202 = arith.constant 0 : index
    %368 = vector.load %arg14[%c7_201, %c0_202] : memref<96x16xf32, #tpu.memory_space<vmem>>, vector<64x16xf32>
    %369 = vector.broadcast %361 : vector<64x1xf32> to vector<64x16xf32>
    %370 = arith.mulf %368, %369 : vector<64x16xf32>
    %c0_203 = arith.constant 0 : index
    %c0_204 = arith.constant 0 : index
    %371 = vector.load %arg8[%c0_203, %c0_204] : memref<9x16xf32, #tpu.memory_space<vmem>>, vector<1x16xf32>
    %372 = vector.broadcast %371 : vector<1x16xf32> to vector<64x16xf32>
    %373 = arith.mulf %370, %372 : vector<64x16xf32>
    %374 = arith.addf %367, %373 : vector<64x16xf32>
    %c8_205 = arith.constant 8 : index
    %c0_206 = arith.constant 0 : index
    %375 = vector.load %arg14[%c8_205, %c0_206] : memref<96x16xf32, #tpu.memory_space<vmem>>, vector<64x16xf32>
    %c1_207 = arith.constant 1 : index
    %c0_208 = arith.constant 0 : index
    %376 = vector.load %arg8[%c1_207, %c0_208] : memref<9x16xf32, #tpu.memory_space<vmem>>, vector<1x16xf32>
    %377 = vector.broadcast %376 : vector<1x16xf32> to vector<64x16xf32>
    %378 = arith.mulf %375, %377 : vector<64x16xf32>
    %379 = arith.addf %374, %378 : vector<64x16xf32>
    %c9_209 = arith.constant 9 : index
    %c0_210 = arith.constant 0 : index
    %380 = vector.load %arg14[%c9_209, %c0_210] : memref<96x16xf32, #tpu.memory_space<vmem>>, vector<64x16xf32>
    %381 = vector.broadcast %366 : vector<64x1xf32> to vector<64x16xf32>
    %382 = arith.mulf %380, %381 : vector<64x16xf32>
    %c2_211 = arith.constant 2 : index
    %c0_212 = arith.constant 0 : index
    %383 = vector.load %arg8[%c2_211, %c0_212] : memref<9x16xf32, #tpu.memory_space<vmem>>, vector<1x16xf32>
    %384 = vector.broadcast %383 : vector<1x16xf32> to vector<64x16xf32>
    %385 = arith.mulf %382, %384 : vector<64x16xf32>
    %386 = arith.addf %379, %385 : vector<64x16xf32>
    %c15_213 = arith.constant 15 : index
    %c0_214 = arith.constant 0 : index
    %387 = vector.load %arg14[%c15_213, %c0_214] : memref<96x16xf32, #tpu.memory_space<vmem>>, vector<64x16xf32>
    %388 = vector.broadcast %361 : vector<64x1xf32> to vector<64x16xf32>
    %389 = arith.mulf %387, %388 : vector<64x16xf32>
    %c3_215 = arith.constant 3 : index
    %c0_216 = arith.constant 0 : index
    %390 = vector.load %arg8[%c3_215, %c0_216] : memref<9x16xf32, #tpu.memory_space<vmem>>, vector<1x16xf32>
    %391 = vector.broadcast %390 : vector<1x16xf32> to vector<64x16xf32>
    %392 = arith.mulf %389, %391 : vector<64x16xf32>
    %393 = arith.addf %386, %392 : vector<64x16xf32>
    %c16_217 = arith.constant 16 : index
    %c0_218 = arith.constant 0 : index
    %394 = vector.load %arg14[%c16_217, %c0_218] : memref<96x16xf32, #tpu.memory_space<vmem>>, vector<64x16xf32>
    %c4_219 = arith.constant 4 : index
    %c0_220 = arith.constant 0 : index
    %395 = vector.load %arg8[%c4_219, %c0_220] : memref<9x16xf32, #tpu.memory_space<vmem>>, vector<1x16xf32>
    %396 = vector.broadcast %395 : vector<1x16xf32> to vector<64x16xf32>
    %397 = arith.mulf %394, %396 : vector<64x16xf32>
    %398 = arith.addf %393, %397 : vector<64x16xf32>
    %c17_221 = arith.constant 17 : index
    %c0_222 = arith.constant 0 : index
    %399 = vector.load %arg14[%c17_221, %c0_222] : memref<96x16xf32, #tpu.memory_space<vmem>>, vector<64x16xf32>
    %400 = vector.broadcast %366 : vector<64x1xf32> to vector<64x16xf32>
    %401 = arith.mulf %399, %400 : vector<64x16xf32>
    %c5_223 = arith.constant 5 : index
    %c0_224 = arith.constant 0 : index
    %402 = vector.load %arg8[%c5_223, %c0_224] : memref<9x16xf32, #tpu.memory_space<vmem>>, vector<1x16xf32>
    %403 = vector.broadcast %402 : vector<1x16xf32> to vector<64x16xf32>
    %404 = arith.mulf %401, %403 : vector<64x16xf32>
    %405 = arith.addf %398, %404 : vector<64x16xf32>
    %c23_225 = arith.constant 23 : index
    %c0_226 = arith.constant 0 : index
    %406 = vector.load %arg14[%c23_225, %c0_226] : memref<96x16xf32, #tpu.memory_space<vmem>>, vector<64x16xf32>
    %407 = vector.broadcast %361 : vector<64x1xf32> to vector<64x16xf32>
    %408 = arith.mulf %406, %407 : vector<64x16xf32>
    %c6_227 = arith.constant 6 : index
    %c0_228 = arith.constant 0 : index
    %409 = vector.load %arg8[%c6_227, %c0_228] : memref<9x16xf32, #tpu.memory_space<vmem>>, vector<1x16xf32>
    %410 = vector.broadcast %409 : vector<1x16xf32> to vector<64x16xf32>
    %411 = arith.mulf %408, %410 : vector<64x16xf32>
    %412 = arith.addf %405, %411 : vector<64x16xf32>
    %c24_229 = arith.constant 24 : index
    %c0_230 = arith.constant 0 : index
    %413 = vector.load %arg14[%c24_229, %c0_230] : memref<96x16xf32, #tpu.memory_space<vmem>>, vector<64x16xf32>
    %c7_231 = arith.constant 7 : index
    %c0_232 = arith.constant 0 : index
    %414 = vector.load %arg8[%c7_231, %c0_232] : memref<9x16xf32, #tpu.memory_space<vmem>>, vector<1x16xf32>
    %415 = vector.broadcast %414 : vector<1x16xf32> to vector<64x16xf32>
    %416 = arith.mulf %413, %415 : vector<64x16xf32>
    %417 = arith.addf %412, %416 : vector<64x16xf32>
    %c25_233 = arith.constant 25 : index
    %c0_234 = arith.constant 0 : index
    %418 = vector.load %arg14[%c25_233, %c0_234] : memref<96x16xf32, #tpu.memory_space<vmem>>, vector<64x16xf32>
    %419 = vector.broadcast %366 : vector<64x1xf32> to vector<64x16xf32>
    %420 = arith.mulf %418, %419 : vector<64x16xf32>
    %c8_235 = arith.constant 8 : index
    %c0_236 = arith.constant 0 : index
    %421 = vector.load %arg8[%c8_235, %c0_236] : memref<9x16xf32, #tpu.memory_space<vmem>>, vector<1x16xf32>
    %422 = vector.broadcast %421 : vector<1x16xf32> to vector<64x16xf32>
    %423 = arith.mulf %420, %422 : vector<64x16xf32>
    %424 = arith.addf %417, %423 : vector<64x16xf32>
    %425 = tpu.transpose %424, [1, 0] : vector<64x16xf32> -> vector<16x64xf32>
    %426 = tpu.iota {dimensions = array<i32: 1>} : vector<1x256xi32>
    %c15_i32_237 = arith.constant 15 : i32
    %427 = vector.broadcast %c15_i32_237 : i32 to vector<1x256xi32>
    %428 = arith.andi %426, %427 : vector<1x256xi32>
    %c4_i32_238 = arith.constant 4 : i32
    %429 = vector.broadcast %c4_i32_238 : i32 to vector<1x256xi32>
    %430 = arith.shrsi %426, %429 : vector<1x256xi32>
    %c1_i32_239 = arith.constant 1 : i32
    %431 = vector.broadcast %c1_i32_239 : i32 to vector<1x256xi32>
    %432 = arith.shrsi %430, %431 : vector<1x256xi32>
    %c8_i32_240 = arith.constant 8 : i32
    %433 = vector.broadcast %c8_i32_240 : i32 to vector<1x256xi32>
    %434 = arith.muli %432, %433 : vector<1x256xi32>
    %c1_i32_241 = arith.constant 1 : i32
    %435 = vector.broadcast %c1_i32_241 : i32 to vector<1x256xi32>
    %436 = arith.shrsi %428, %435 : vector<1x256xi32>
    %437 = arith.addi %434, %436 : vector<1x256xi32>
    %438 = tpu.iota {dimensions = array<i32: 0>} : vector<64x1xi32>
    %439 = vector.broadcast %438 : vector<64x1xi32> to vector<64x256xi32>
    %440 = vector.broadcast %437 : vector<1x256xi32> to vector<64x256xi32>
    %441 = arith.cmpi eq, %439, %440 : vector<64x256xi32>
    %cst_242 = arith.constant 1.000000e+00 : f32
    %cst_243 = arith.constant 0.000000e+00 : f32
    %442 = vector.broadcast %cst_242 : f32 to vector<64x256xf32>
    %443 = vector.broadcast %cst_243 : f32 to vector<64x256xf32>
    %444 = arith.select %441, %442, %443 : vector<64x256xi1>, vector<64x256xf32>
    %cst_244 = arith.constant dense<0.000000e+00> : vector<16x256xf32>
    %445 = tpu.matmul %425, %444, %cst_244 {dimension_numbers = #tpu.dot_dimension_numbers<[1], [0], [0], [1], [0, 0, 1, 1], [], []>} : vector<16x64xf32>, vector<64x256xf32>, vector<16x256xf32> -> vector<16x256xf32>
    %cst_245 = arith.constant dense<0.000000e+00> : vector<256xf32>
    %446 = vector.multi_reduction <add>, %445, %cst_245 [0] : vector<16x256xf32> to vector<256xf32>
    %447 = vector.shape_cast %446 : vector<256xf32> to vector<1x256xf32>
    %c0_246 = arith.constant 0 : index
    %c0_247 = arith.constant 0 : index
    %448 = vector.load %arg9[%c0_246, %c0_247] : memref<1x1xf32, #tpu.memory_space<vmem>>, vector<1x1xf32>
    %449 = vector.broadcast %448 : vector<1x1xf32> to vector<1x256xf32>
    %450 = arith.addf %447, %449 : vector<1x256xf32>
    %451 = math.tanh %450 : vector<1x256xf32>
    %c0_248 = arith.constant 0 : index
    %c0_249 = arith.constant 0 : index
    %c0_250 = arith.constant 0 : index
    %452 = vector.load %arg10[%c0_248, %c0_249, %c0_250] : memref<1x1x256xf32, #tpu.memory_space<vmem>>, vector<1x1x256xf32>
    %453 = vector.shape_cast %452 : vector<1x1x256xf32> to vector<1x256xf32>
    %454 = vector.shape_cast %451 : vector<1x256xf32> to vector<1x1x256xf32>
    tpu.vector_store %arg10[%c0_248, %c0_249, %c0_250], %454 {strides = array<i32>} : memref<1x1x256xf32, #tpu.memory_space<vmem>>, vector<1x1x256xf32>,
    return
  }
  func.func @transform_0(%arg0: i32) -> (i32, i32) {
    %c0_i32 = arith.constant 0 : i32
    %c0_i32_0 = arith.constant 0 : i32
    return %arg0, %c0_i32 : i32, i32
  }
  func.func @transform_1(%arg0: i32) -> (i32, i32) {
    %c0_i32 = arith.constant 0 : i32
    %c0_i32_0 = arith.constant 0 : i32
    %c0_i32_1 = arith.constant 0 : i32
    return %c0_i32, %c0_i32_0 : i32, i32
  }
  func.func @transform_2(%arg0: i32) -> (i32, i32) {
    %c0_i32 = arith.constant 0 : i32
    %c0_i32_0 = arith.constant 0 : i32
    %c0_i32_1 = arith.constant 0 : i32
    return %c0_i32, %c0_i32_0 : i32, i32
  }
  func.func @transform_3(%arg0: i32) -> (i32, i32) {
    %c0_i32 = arith.constant 0 : i32
    %c0_i32_0 = arith.constant 0 : i32
    %c0_i32_1 = arith.constant 0 : i32
    return %c0_i32, %c0_i32_0 : i32, i32
  }
  func.func @transform_4(%arg0: i32) -> (i32, i32) {
    %c0_i32 = arith.constant 0 : i32
    %c0_i32_0 = arith.constant 0 : i32
    %c0_i32_1 = arith.constant 0 : i32
    return %c0_i32, %c0_i32_0 : i32, i32
  }
  func.func @transform_5(%arg0: i32) -> (i32, i32) {
    %c0_i32 = arith.constant 0 : i32
    %c0_i32_0 = arith.constant 0 : i32
    %c0_i32_1 = arith.constant 0 : i32
    return %c0_i32, %c0_i32_0 : i32, i32
  }
  func.func @transform_6(%arg0: i32) -> (i32, i32) {
    %c0_i32 = arith.constant 0 : i32
    %c0_i32_0 = arith.constant 0 : i32
    %c0_i32_1 = arith.constant 0 : i32
    return %c0_i32, %c0_i32_0 : i32, i32
  }
  func.func @transform_7(%arg0: i32) -> (i32, i32) {
    %c0_i32 = arith.constant 0 : i32
    %c0_i32_0 = arith.constant 0 : i32
    %c0_i32_1 = arith.constant 0 : i32
    return %c0_i32, %c0_i32_0 : i32, i32
  }
  func.func @transform_8(%arg0: i32) -> (i32, i32) {
    %c0_i32 = arith.constant 0 : i32
    %c0_i32_0 = arith.constant 0 : i32
    %c0_i32_1 = arith.constant 0 : i32
    return %c0_i32, %c0_i32_0 : i32, i32
  }
  func.func @transform_9(%arg0: i32) -> (i32, i32, i32) {
    %c0_i32 = arith.constant 0 : i32
    %c0_i32_0 = arith.constant 0 : i32
    %c0_i32_1 = arith.constant 0 : i32
    return %arg0, %c0_i32, %c0_i32_0 : i32, i32, i32
  }
}

</mosaic_0001>

<bundles_post_ra>
// kernel: imprvd_cnn_autoencoder_forward.1
= control target key start
LH: loop header
LB: loop body
LE: loop exit
PB: predicated region body
PF: predicated region fallthrough
CT: control target
= control target key end

     0   :  { %s8536_s11 = smov 0   ;;  %s11550_s0 = inlined_call_operand.vmem [shape: f32[512,1], index: 0, kind: input, shape index: {}]   ;;  %s11551_s1 = inlined_call_operand.vmem [shape: f32[9,16], index: 1, kind: input, shape index: {}]   ;;  %s11552_s2 = inlined_call_operand.vmem [shape: f32[1,16], index: 2, kind: input, shape index: {}]   ;;  %s11553_s3 = inlined_call_operand.vmem [shape: f32[144,4], index: 3, kind: input, shape index: {}]   ;;  %s11554_s4 = inlined_call_operand.vmem [shape: f32[1,4], index: 4, kind: input, shape index: {}]   ;;  %s11555_s5 = inlined_call_operand.vmem [shape: f32[36,16], index: 5, kind: input, shape index: {}]   ;;  %s11556_s6 = inlined_call_operand.vmem [shape: f32[1,16], index: 6, kind: input, shape index: {}]   ;;  %s11557_s7 = inlined_call_operand.vmem [shape: f32[9,16], index: 7, kind: input, shape index: {}]   ;;  %s11558_s8 = inlined_call_operand.<no memory space> [shape: f32[1,1], index: 8, kind: input, shape index: {}]   ;;  %s11559_s9 = inlined_call_operand.vmem [shape: f32[2,1,256], index: 9, kind: output, shape index: {}]  }
   0x1   :  { %v14_v0 = vstv %s11558_s8 }
   0x2   :  { %15 = vst [vmem:[#allocation6] sm:$0x1] %v14_v0 }
   0x3 LB: > { %s8542_s12 = sadd.s32 4294967295, %s8476_s11   ;;  %p7209_p0 = scmp.ge.s32.totalorder %s8476_s11, 1  ;;  %s8476_s11 = sphi %s8536_s11, %s21_s11  }
   0x4   : > { %p290_p1 = scmp.lt.s32.totalorder %s8476_s11, 3 }
   0x6   : > { %p291_p2 = pnand %p7209_p0, %p290_p1 }
   0x8   : > { %294 = sbr.rel (%p291_p2) target bundleno = 2548 (0x9f4), region = 56 }
   0xf   : > { %vm367_vm0 = vcmask 7168   ;;  %v11560_v1 = vlaneseq  ;;  %s7210_s8 = sshll.u32 %s8542_s12, 5  ;;  %v8478_v2 = vmov 0   ;;  %v11562_v3 = vmov 0.0   ;;  %p331_p4 = scmp.lt.s32.totalorder %s8542_s12, 1 }
  0x10   : > { %8449 = vset.pattern.permute.xlu0 %v8478_v2  ;;  %8448 = vset.pattern.permute.xlu1 %v8478_v2  ;;  %369 = vst.msk [vmem:[#allocation2 + $0x8] sm:$0xff] %vm367_vm0, %v11562_v3  ;;  %368 = vst.msk [vmem:[#allocation2] sm:$0xff] %vm367_vm0, %v11562_v3  ;;  %p326_p3 = scmp.lt.s32.totalorder %s7210_s8, 63 }
  0x11   : > { %370 = vst.msk [vmem:[#allocation2 + $0x10] sm:$0xff] %vm367_vm0, %v11562_v3  ;;  %371 = vst.msk [vmem:[#allocation2 + $0x118] sm:$0xff] %vm367_vm0, %v11562_v3  ;;  %v8560_v4 = vshrl.u32 %v11560_v1, 7  ;;  %s11921_s12 = smov (!%p331_p4, %s8542_s12), 1 }
  0x12   : > { %372 = vst.msk [vmem:[#allocation2 + $0x120] sm:$0xff] %vm367_vm0, %v11562_v3  ;;  %373 = vst.msk [vmem:[#allocation2 + $0x128] sm:$0xff] %vm367_vm0, %v11562_v3  ;;  %s11919_s8 = smov (!%p326_p3, %s7210_s8), 63  ;;  %s7212_s25 = sshll.u32 %s11921_s12, 1 }
  0x13   : > { %11624 = vst [vmem:[#allocation7_spill] sm:$0xff] %v8560_v4  ;;  %v439_v5 = vand.u32 15, %v8560_v4  ;;  %s7211_s13 = sshll.u32 %s11919_s8, 3  ;;  %v424_v10 = vadd.s32 136, %v8560_v4  ;;  %v423_v11 = vadd.s32 128, %v8560_v4  ;;  %v8587_v23 = vadd.s32 8, %v8560_v4  ;;  %s334_s28 = scalar_lea.vmem %s11559_s9, %s7212_s25 }
  0x14   : > { %s8566_s16 = scalar_lea.vmem %s11550_s0, %s7211_s13  ;;  %v425_v34 = vadd.s32 144, %v8560_v4  ;;  %v8625_v51 = vadd.s32 16, %v8560_v4  ;;  %v426_v61 = vadd.s32 152, %v8560_v4 }
  0x15   : > { %vm471_vm1 = vcmp.ge.s32.totalorder %v439_v5, 1  ;;  %v349_v7 = vld [vmem:[%s8566_s16 + $0x70] sm:$0xff]  ;;  %v350_v8 = vld [vmem:[%s8566_s16 + $0x78] sm:$0xff]  ;;  %v351_v9 = vld [vmem:[%s8566_s16 + $0x80] sm:$0xff]  ;;  %v456_v21 = vand.u32 15, %v424_v10  ;;  %v455_v22 = vand.u32 15, %v423_v11 }
  0x16   : > { %v8569_v6 = vsel %vm471_vm1, 1.0, %v11562_v3  ;;  %388 = vst.msk [vmem:[#allocation2 + $0x88] sm:$0xff] %vm367_vm0, %v349_v7  ;;  %389 = vst.msk [vmem:[#allocation2 + $0x90] sm:$0xff] %vm367_vm0, %v350_v8  ;;  %v348_v16 = vld [vmem:[%s8566_s16 + $0x68] sm:$0xff]  ;;  %v335_v18 = vld [vmem:[%s8566_s16] sm:$0xff]  ;;  %v440_v33 = vand.u32 15, %v8587_v23 }
  0x17   : > { %v892_v12 = vld [vmem:[#allocation2 + $0x8] sm:$0xff]  ;;  %390 = vst.msk [vmem:[#allocation2 + $0x98] sm:$0xff] %vm367_vm0, %v351_v9  ;;  %387 = vst.msk [vmem:[#allocation2 + $0x80] sm:$0xff] %vm367_vm0, %v348_v16  ;;  %v353_v24 = vld [vmem:[%s8566_s16 + $0x90] sm:$0xff]  ;;  %vm552_vm2 = vcmp.le.s32.totalorder %v456_v21, 14  ;;  %vm487_vm3 = vcmp.ge.s32.totalorder %v455_v22, 1 }
  0x18   : > { %v600_v13 = vld [vmem:[#allocation2 + $0xf] sm:$0xff]  ;;  %927 = vperm.xlu0 %8449, %v892_v12   ;;  %v599_v15 = vld [vmem:[#allocation2 + $0x7] sm:$0xff]  ;;  %374 = vst.msk [vmem:[#allocation2 + $0x18] sm:$0xff] %vm367_vm0, %v335_v18  ;;  %11625 = vst [vmem:[#allocation8_spill] sm:$0xff] %v8587_v23  ;;  %v8609_v38 = vsel %vm552_vm2, 1.0, %v11562_v3  ;;  %v8612_v40 = vsel %vm487_vm3, 1.0, %v11562_v3 }
  0x19   : > { %671 = vperm.xlu1 %8448, %v600_v13   ;;  %v893_v14 = vld [vmem:[#allocation2 + $0x10] sm:$0xff]  ;;  %v631_v17 = vmul.f32 %v599_v15, %v8569_v6  ;;  %v352_v19 = vld [vmem:[%s8566_s16 + $0x88] sm:$0xff]  ;;  %v354_v26 = vld [vmem:[%s8566_s16 + $0x98] sm:$0xff]  ;;  %392 = vst.msk [vmem:[#allocation2 + $0xa8] sm:$0xff] %vm367_vm0, %v353_v24  ;;  %vm536_vm4 = vcmp.le.s32.totalorder %v440_v33, 14  ;;  %v457_v42 = vand.u32 15, %v425_v34 }
  0x1a   : > { %v336_v20 = vld [vmem:[%s8566_s16 + $0x8] sm:$0xff]  ;;  %391 = vst.msk [vmem:[#allocation2 + $0xa0] sm:$0xff] %vm367_vm0, %v352_v19  ;;  %v337_v25 = vld [vmem:[%s8566_s16 + $0x10] sm:$0xff]  ;;  %393 = vst.msk [vmem:[#allocation2 + $0xb0] sm:$0xff] %vm367_vm0, %v354_v26  ;;  %v8618_v45 = vsel %vm536_vm4, 1.0, %v11562_v3  ;;  %v441_v55 = vand.u32 15, %v8625_v51 }
  0x1b   : > { %375 = vst.msk [vmem:[#allocation2 + $0x20] sm:$0xff] %vm367_vm0, %v336_v20  ;;  %376 = vst.msk [vmem:[#allocation2 + $0x28] sm:$0xff] %vm367_vm0, %v337_v25  ;;  %v338_v27 = vld [vmem:[%s8566_s16 + $0x18] sm:$0xff]  ;;  %v355_v28 = vld [vmem:[%s8566_s16 + $0xa0] sm:$0xff]  ;;  %vm489_vm5 = vcmp.ge.s32.totalorder %v457_v42, 1  ;;  %v458_v0 = vand.u32 15, %v426_v61 }
  0x1c   : > { %666 = vperm.xlu0 %8449, %v631_v17   ;;  %377 = vst.msk [vmem:[#allocation2 + $0x30] sm:$0xff] %vm367_vm0, %v338_v27  ;;  %394 = vst.msk [vmem:[#allocation2 + $0xb8] sm:$0xff] %vm367_vm0, %v355_v28  ;;  %v339_v29 = vld [vmem:[%s8566_s16 + $0x20] sm:$0xff]  ;;  %v356_v30 = vld [vmem:[%s8566_s16 + $0xa8] sm:$0xff]  ;;  %v8622_v49 = vsel %vm489_vm5, 1.0, %v11562_v3  ;;  %vm473_vm6 = vcmp.ge.s32.totalorder %v441_v55, 1 }
  0x1d   : > { %932 = vperm.xlu1 %8448, %v893_v14   ;;  %378 = vst.msk [vmem:[#allocation2 + $0x38] sm:$0xff] %vm367_vm0, %v339_v29  ;;  %395 = vst.msk [vmem:[#allocation2 + $0xc0] sm:$0xff] %vm367_vm0, %v356_v30  ;;  %v908_v31 = vld [vmem:[#allocation2 + $0x88] sm:$0xff]  ;;  %v909_v35 = vld [vmem:[#allocation2 + $0x90] sm:$0xff]  ;;  %v8633_v59 = vsel %vm473_vm6, 1.0, %v11562_v3  ;;  %vm554_vm7 = vcmp.le.s32.totalorder %v458_v0, 14 }
  0x1e   : > { %v616_v32 = vld [vmem:[#allocation2 + $0x8f] sm:$0xff]  ;;  %v615_v41 = vld [vmem:[#allocation2 + $0x87] sm:$0xff]  ;;  %v617_v50 = vld [vmem:[#allocation2 + $0x97] sm:$0xff]  ;;  %11626 = vst [vmem:[#allocation9_spill] sm:$0xff] %v8625_v51  ;;  %v8639_v8 = vadd.s32 24, %v8560_v4  ;;  %v8644_v10 = vsel %vm554_vm7, 1.0, %v11562_v3 }
  0x1f   : > { %v340_v36 = vld [vmem:[%s8566_s16 + $0x28] sm:$0xff]  ;;  %v1170_v39 = vld [vmem:[#allocation2 + $0x91] sm:$0xff]  ;;  %v647_v44 = vmul.f32 %v615_v41, %v8612_v40  ;;  %v649_v52 = vmul.f32 %v617_v50, %v8622_v49  ;;  %v1494_v58 = vmul.f32 %v617_v50, %v8612_v40  ;;  %v427_v17 = vadd.s32 160, %v8560_v4  ;;  %v343_v0 = vld [vmem:[%s8566_s16 + $0x40] sm:$0xff] }
  0x20   : > { %751 = vperm.xlu0 %8449, %v616_v32   ;;  %v1169_v37 = vld [vmem:[#allocation2 + $0x89] sm:$0xff]  ;;  %379 = vst.msk [vmem:[#allocation2 + $0x40] sm:$0xff] %vm367_vm0, %v340_v36  ;;  %v1202_v43 = vmul.f32 %v1170_v39, %v8609_v38  ;;  %v1154_v46 = vld [vmem:[#allocation2 + $0x11] sm:$0xff]  ;;  %11627 = vst [vmem:[#allocation10_spill] sm:$0xff] %v8639_v8  ;;  %v442_v13 = vand.u32 15, %v8639_v8 }
  0x21   : > { %1007 = vperm.xlu1 %8448, %v908_v31   ;;  %v1186_v47 = vmul.f32 %v1154_v46, %v8618_v45  ;;  %v1153_v48 = vld [vmem:[#allocation2 + $0x9] sm:$0xff]  ;;  %v618_v53 = vld [vmem:[#allocation2 + $0x9f] sm:$0xff]  ;;  %v601_v60 = vld [vmem:[#allocation2 + $0x17] sm:$0xff]  ;;  %v459_v20 = vand.u32 15, %v427_v17  ;;  %v8672_v31 = vadd.s32 32, %v8560_v4  ;;  %382 = vst.msk [vmem:[#allocation2 + $0x58] sm:$0xff] %vm367_vm0, %v343_v0 }
  0x22   : > { %v357_v54 = vld [vmem:[%s8566_s16 + $0xb0] sm:$0xff]  ;;  %v910_v56 = vld [vmem:[#allocation2 + $0x98] sm:$0xff]  ;;  %v911_v57 = vld [vmem:[#allocation2 + $0xa0] sm:$0xff]  ;;  %v633_v62 = vmul.f32 %v601_v60, %v8633_v59  ;;  %v1478_v9 = vmul.f32 %v601_v60, %v8569_v6  ;;  %vm538_vm8 = vcmp.le.s32.totalorder %v442_v13, 14  ;;  %v429_v60 = vadd.s32 176, %v8560_v4 }
  0x23   : > { %396 = vst.msk [vmem:[#allocation2 + $0xc8] sm:$0xff] %vm367_vm0, %v357_v54  ;;  %v602_v63 = vld [vmem:[#allocation2 + $0x1f] sm:$0xff]  ;;  %v341_v7 = vld [vmem:[%s8566_s16 + $0x30] sm:$0xff]  ;;  %v8656_v18 = vsel %vm538_vm8, 1.0, %v11562_v3  ;;  %vm491_vm9 = vcmp.ge.s32.totalorder %v459_v20, 1  ;;  %v619_v26 = vld [vmem:[#allocation2 + $0xa7] sm:$0xff] }
  0x24   : > { %1300 = vperm.xlu0 %8449, %v1169_v37   ;;  %v895_v2 = vld [vmem:[#allocation2 + $0x20] sm:$0xff]  ;;  %v894_v5 = vld [vmem:[#allocation2 + $0x18] sm:$0xff]  ;;  %380 = vst.msk [vmem:[#allocation2 + $0x48] sm:$0xff] %vm367_vm0, %v341_v7  ;;  %v8662_v25 = vsel %vm491_vm9, 1.0, %v11562_v3  ;;  %v620_v30 = vld [vmem:[#allocation2 + $0xaf] sm:$0xff]  ;;  %v443_v34 = vand.u32 15, %v8672_v31 }
  0x25   : > { %1012 = vperm.xlu1 %8448, %v909_v35   ;;  %v1172_v11 = vld [vmem:[#allocation2 + $0xa1] sm:$0xff]  ;;  %v8646_v12 = vld [vmem:[#allocation2 + $0xb1] sm:$0xff]  ;;  %v1171_v16 = vld [vmem:[#allocation2 + $0x99] sm:$0xff]  ;;  %v651_v29 = vmul.f32 %v619_v26, %v8662_v25  ;;  %11628 = vst [vmem:[#allocation11_spill] sm:$0xff] %v8672_v31  ;;  %v1496_v35 = vmul.f32 %v619_v26, %v8622_v49 }
  0x26   : > { %v8651_v14 = vmul.f32 %v8646_v12, %v8609_v38  ;;  %v1204_v15 = vmul.f32 %v1172_v11, %v8644_v10  ;;  %v1156_v19 = vld [vmem:[#allocation2 + $0x21] sm:$0xff]  ;;  %v1155_v22 = vld [vmem:[#allocation2 + $0x19] sm:$0xff]  ;;  %v8664_v27 = vld [vmem:[#allocation2 + $0x31] sm:$0xff]  ;;  %vm475_vm10 = vcmp.ge.s32.totalorder %v443_v34, 1  ;;  %v2049_v36 = vmul.f32 %v1172_v11, %v8609_v38 }
  0x27   : > { %v1188_v21 = vmul.f32 %v1156_v19, %v8656_v18  ;;  %v358_v24 = vld [vmem:[%s8566_s16 + $0xb8] sm:$0xff]  ;;  %v8668_v28 = vmul.f32 %v8664_v27, %v8618_v45  ;;  %v8674_v32 = vld [vmem:[#allocation2 + $0xb0] sm:$0xff]  ;;  %v8676_v33 = vld [vmem:[#allocation2 + $0xa8] sm:$0xff]  ;;  %v8684_v37 = vsel %vm475_vm10, 1.0, %v11562_v3  ;;  %v2033_v50 = vmul.f32 %v1156_v19, %v8618_v45 }
  0x28   : > { %746 = vperm.xlu0 %8449, %v647_v44   ;;  %397 = vst.msk [vmem:[#allocation2 + $0xd0] sm:$0xff] %vm367_vm0, %v358_v24  ;;  %v603_v39 = vld [vmem:[#allocation2 + $0x27] sm:$0xff]  ;;  %v342_v41 = vld [vmem:[%s8566_s16 + $0x38] sm:$0xff]  ;;  %v428_v44 = vadd.s32 168, %v8560_v4  ;;  %v8690_v46 = vld [vmem:[#allocation2 + $0x30] sm:$0xff]  ;;  %v2341_v45 = vmul.f32 %v619_v26, %v8612_v40 }
  0x29   : > { %1305 = vperm.xlu1 %8448, %v1202_v43   ;;  %v635_v42 = vmul.f32 %v603_v39, %v8684_v37  ;;  %381 = vst.msk [vmem:[#allocation2 + $0x50] sm:$0xff] %vm367_vm0, %v342_v41  ;;  %v604_v43 = vld [vmem:[#allocation2 + $0x2f] sm:$0xff]  ;;  %v2325_v40 = vmul.f32 %v603_v39, %v8569_v6  ;;  %v8739_v11 = vld [vmem:[#allocation2 + $0xc0] sm:$0xff]  ;;  %v8741_v13 = vld [vmem:[#allocation2 + $0xb8] sm:$0xff]  ;;  %v8744_v6 = vadd.s32 48, %v8560_v4 }
  0x2a   : > { %v8692_v38 = vld [vmem:[#allocation2 + $0x28] sm:$0xff]  ;;  %v8785_v41 = vld [vmem:[#allocation2 + $0x40] sm:$0xff] }
  0x2b   : > { %v8706_v55 = vld [vmem:[#allocation2 + $0xa9] sm:$0xff]  ;;  %11631 = vst [vmem:[#allocation14_spill] sm:$0xff] %v8744_v6 }
  0x2c   : > { %1220 = vperm.xlu0 %8449, %v1153_v48   ;;  %v1480_v48 = vmul.f32 %v603_v39, %v8633_v59  ;;  %v360_v20 = vld [vmem:[%s8566_s16 + $0xc8] sm:$0xff] }
  0x2d   : > { %1225 = vperm.xlu1 %8448, %v1186_v47   ;;  %v460_v47 = vand.u32 15, %v428_v44  ;;  %399 = vst.msk [vmem:[#allocation2 + $0xe0] sm:$0xff] %vm367_vm0, %v360_v20 }
  0x2f   : > { %vm556_vm11 = vcmp.le.s32.totalorder %v460_v47, 14 }
  0x30   : > { %756 = vperm.xlu0 %8449, %v649_v52   ;;  %v8699_v52 = vsel %vm556_vm11, 1.0, %v11562_v3 }
  0x31   : > { %761 = vperm.xlu1 %8448, %v618_v53   ;;  %v1206_v54 = vmul.f32 %v8646_v12, %v8699_v52 }
  0x34   : > { %1017 = vperm.xlu0 %8449, %v910_v56  }
  0x35   : > { %1022 = vperm.xlu1 %8448, %v911_v57  }
  0x38   : > { %1593 = vperm.xlu0 %8449, %v1494_v58  }
  0x39   : > { %1598 = vperm.xlu1 %8448, %v618_v53   ;;  %v8702_v53 = vadd.s32 40, %v8560_v4 }
  0x3b   : > { %11629 = vst [vmem:[#allocation12_spill] sm:$0xff] %v8702_v53 }
  0x3c   : > { %676 = vperm.xlu0 %8449, %v633_v62   ;;  %v8721_v62 = vld [vmem:[#allocation2 + $0x29] sm:$0xff] }
  0x3d   : > { %681 = vperm.xlu1 %8448, %v602_v63  }
  0x40   : > { %937 = vperm.xlu0 %8449, %v894_v5  }
  0x41   : > { %942 = vperm.xlu1 %8448, %v895_v2  }
  0x44   : > { %1513 = vperm.xlu0 %8449, %v1478_v9   ;;  %v8736_v9 = vld [vmem:[#allocation2 + $0xbf] sm:$0xff] }
  0x45   : > { %1518 = vperm.xlu1 %8448, %v602_v63   ;;  %v461_v63 = vand.u32 15, %v429_v60 }
  0x47   : > { %vm493_vm13 = vcmp.ge.s32.totalorder %v461_v63, 1 }
  0x48   : > { %1310 = vperm.xlu0 %8449, %v1171_v16  }
  0x49   : > { %1315 = vperm.xlu1 %8448, %v1204_v15  }
  0x4c   : > { %1854 = vperm.xlu0 %8449, %v910_v56   ;;  %v359_v56 = vld [vmem:[%s8566_s16 + $0xc0] sm:$0xff] }
  0x4d   : > { %1859 = vperm.xlu1 %8448, %v911_v57   ;;  %v444_v57 = vand.u32 15, %v8702_v53  ;;  %398 = vst.msk [vmem:[#allocation2 + $0xd8] sm:$0xff] %vm367_vm0, %v359_v56  ;;  %v2035_v56 = vmul.f32 %v8664_v27, %v8656_v18  ;;  %v8890_v53 = vld [vmem:[#allocation2 + $0xc7] sm:$0xff] }
  0x4f   : > { %vm540_vm12 = vcmp.le.s32.totalorder %v444_v57, 14 }
  0x50   : > { %1230 = vperm.xlu0 %8449, %v1155_v22   ;;  %v8716_v58 = vsel %vm540_vm12, 1.0, %v11562_v3 }
  0x51   : > { %1235 = vperm.xlu1 %8448, %v1188_v21   ;;  %11630 = vst [vmem:[#allocation13_spill] sm:$0xff] %v8716_v58  ;;  %v1190_v61 = vmul.f32 %v8664_v27, %v8716_v58  ;;  %v2051_v21 = vmul.f32 %v8646_v12, %v8644_v10 }
  0x54   : > { %1774 = vperm.xlu0 %8449, %v894_v5   ;;  %v8732_v5 = vld [vmem:[#allocation2 + $0xb7] sm:$0xff] }
  0x55   : > { %1779 = vperm.xlu1 %8448, %v895_v2   ;;  %v8730_v2 = vsel %vm493_vm13, 1.0, %v11562_v3  ;;  %v1498_v15 = vmul.f32 %v8732_v5, %v8662_v25 }
  0x56   : > { %v653_v7 = vmul.f32 %v8732_v5, %v8730_v2  ;;  %v1500_v23 = vmul.f32 %v8890_v53, %v8730_v2 }
  0x58   : > { %766 = vperm.xlu0 %8449, %v651_v29   ;;  %v8768_v29 = vld [vmem:[#allocation2 + $0x37] sm:$0xff] }
  0x59   : > { %771 = vperm.xlu1 %8448, %v620_v30   ;;  %v1482_v44 = vmul.f32 %v8768_v29, %v8684_v37 }
  0x5c   : > { %1027 = vperm.xlu0 %8449, %v8676_v33  }
  0x5d   : > { %1032 = vperm.xlu1 %8448, %v8674_v32  }
  0x60   : > { %1603 = vperm.xlu0 %8449, %v1496_v35   ;;  %v8778_v35 = vld [vmem:[#allocation2 + $0x3f] sm:$0xff] }
  0x61   : > { %1608 = vperm.xlu1 %8448, %v620_v30  }
  0x64   : > { %2147 = vperm.xlu0 %8449, %v1171_v16   ;;  %v445_v16 = vand.u32 15, %v8744_v6 }
  0x65   : > { %2152 = vperm.xlu1 %8448, %v2049_v36  }
  0x66   : > { %vm477_vm14 = vcmp.ge.s32.totalorder %v445_v16, 1 }
  0x67   : > { %v8766_v26 = vsel %vm477_vm14, 1.0, %v11562_v3 }
  0x68   : > { %686 = vperm.xlu0 %8449, %v635_v42   ;;  %11632 = vst [vmem:[#allocation15_spill] sm:$0xff] %v8766_v26  ;;  %v637_v12 = vmul.f32 %v8768_v29, %v8766_v26  ;;  %v8787_v42 = vld [vmem:[#allocation2 + $0x38] sm:$0xff] }
  0x69   : > { %691 = vperm.xlu1 %8448, %v604_v43  }
  0x6c   : > { %947 = vperm.xlu0 %8449, %v8692_v38  }
  0x6d   : > { %952 = vperm.xlu1 %8448, %v8690_v46  }
  0x70   : > { %1523 = vperm.xlu0 %8449, %v1480_v48  }
  0x71   : > { %1528 = vperm.xlu1 %8448, %v604_v43  }
  0x74   : > { %2067 = vperm.xlu0 %8449, %v1155_v22  }
  0x75   : > { %2072 = vperm.xlu1 %8448, %v2033_v50  }
  0x78   : > { %1320 = vperm.xlu0 %8449, %v8706_v55  }
  0x79   : > { %1325 = vperm.xlu1 %8448, %v1206_v54   ;;  %v344_v54 = vld [vmem:[%s8566_s16 + $0x48] sm:$0xff] }
  0x7a   : > { %383 = vst.msk [vmem:[#allocation2 + $0x60] sm:$0xff] %vm367_vm0, %v344_v54  ;;  %v8854_v54 = vld [vmem:[#allocation2 + $0x41] sm:$0xff] }
  0x7c   : > { %1864 = vperm.xlu0 %8449, %v8676_v33  }
  0x7d   : > { %1869 = vperm.xlu1 %8448, %v8674_v32  }
  0x80   : > { %2440 = vperm.xlu0 %8449, %v2341_v45  }
  0x81   : > { %2445 = vperm.xlu1 %8448, %v620_v30  }
  0x84   : > { %1240 = vperm.xlu0 %8449, %v8721_v62  }
  0x85   : > { %1245 = vperm.xlu1 %8448, %v1190_v61   ;;  %v8815_v61 = vld [vmem:[#allocation2 + $0xc1] sm:$0xff] }
  0x88   : > { %1784 = vperm.xlu0 %8449, %v8692_v38  }
  0x89   : > { %1789 = vperm.xlu1 %8448, %v8690_v46  }
  0x8c   : > { %2360 = vperm.xlu0 %8449, %v2325_v40   ;;  %v8825_v40 = vld [vmem:[#allocation2 + $0xb9] sm:$0xff] }
  0x8d   : > { %2365 = vperm.xlu1 %8448, %v604_v43  }
  0x90   : > { %776 = vperm.xlu0 %8449, %v653_v7   ;;  %v8828_v7 = vadd.s32 56, %v8560_v4 }
  0x91   : > { %781 = vperm.xlu1 %8448, %v8736_v9  }
  0x92   : > { %11638 = vst [vmem:[#allocation21_spill] sm:$0xff] %v8828_v7  ;;  %v446_v20 = vand.u32 15, %v8828_v7 }
  0x94   : > { %1037 = vperm.xlu0 %8449, %v8741_v13   ;;  %vm542_vm1 = vcmp.le.s32.totalorder %v446_v20, 14 }
  0x95   : > { %1042 = vperm.xlu1 %8448, %v8739_v11  }
  0x97   : > { %v8751_v17 = vpop.permute.xlu0 %927 }
  0x98   : > { %v8753_v19 = vpop.permute.xlu1 %671  ;;  %1613 = vperm.xlu0 %8449, %v1498_v15  }
  0x99   : > { %1618 = vperm.xlu1 %8448, %v8736_v9  }
  0x9b   : > { %v8762_v24 = vpop.permute.xlu0 %666 }
  0x9c   : > { %v8760_v22 = vpop.permute.xlu1 %932  ;;  %2157 = vperm.xlu0 %8449, %v8706_v55  }
  0x9d   : > { %2162 = vperm.xlu1 %8448, %v2051_v21   ;;  %v2343_v21 = vmul.f32 %v8732_v5, %v8622_v49  ;;  %v8864_v5 = vld [vmem:[#allocation2 + $0x39] sm:$0xff] }
  0x9f   : > { %v8772_v34 = vpop.permute.xlu0 %751 }
  0xa0   : > { %v8770_v30 = vpop.permute.xlu1 %1007  ;;  %2701 = vperm.xlu0 %8449, %v8676_v33  }
  0xa1   : > { %2706 = vperm.xlu1 %8448, %v8674_v32   ;;  %v430_v32 = vadd.s32 184, %v8560_v4 }
  0xa3   : > { %v8782_v39 = vpop.permute.xlu0 %1300  ;;  %v462_v47 = vand.u32 15, %v430_v32 }
  0xa4   : > { %v8780_v36 = vpop.permute.xlu1 %1012  ;;  %696 = vperm.xlu0 %8449, %v637_v12   ;;  %v361_v12 = vld [vmem:[%s8566_s16 + $0xd0] sm:$0xff] }
  0xa5   : > { %701 = vperm.xlu1 %8448, %v8778_v35   ;;  %vm558_vm15 = vcmp.le.s32.totalorder %v462_v47, 14  ;;  %400 = vst.msk [vmem:[#allocation2 + $0xe8] sm:$0xff] %vm367_vm0, %v361_v12  ;;  %v8852_v47 = vsel %vm542_vm1, 1.0, %v11562_v3 }
  0xa6   : > { %v8813_v60 = vsel %vm558_vm15, 1.0, %v11562_v3  ;;  %v1192_v49 = vmul.f32 %v8854_v54, %v8852_v47  ;;  %v345_v3 = vld [vmem:[%s8566_s16 + $0x50] sm:$0xff] }
  0xa7   : > { %v8792_v43 = vpop.permute.xlu0 %746  ;;  %11635 = vst [vmem:[#allocation18_spill] sm:$0xff] %v8813_v60  ;;  %v1208_v27 = vmul.f32 %v8815_v61, %v8813_v60  ;;  %384 = vst.msk [vmem:[#allocation2 + $0x68] sm:$0xff] %vm367_vm0, %v345_v3  ;;  %v8900_v3 = vld [vmem:[#allocation2 + $0xcf] sm:$0xff] }
  0xa8   : > { %v8790_v33 = vpop.permute.xlu1 %1305  ;;  %957 = vperm.xlu0 %8449, %v8787_v42  }
  0xa9   : > { %962 = vperm.xlu1 %8448, %v8785_v41  }
  0xab   : > { %v8798_v48 = vpop.permute.xlu0 %1220 }
  0xac   : > { %v8800_v50 = vpop.permute.xlu1 %1225  ;;  %1533 = vperm.xlu0 %8449, %v1482_v44  }
  0xad   : > { %1538 = vperm.xlu1 %8448, %v8778_v35  }
  0xaf   : > { %v8807_v57 = vpop.permute.xlu0 %756 }
  0xb0   : > { %11633 = vst [vmem:[#allocation16_spill] sm:$0xff] %v8807_v57  ;;  %v8809_v45 = vpop.permute.xlu1 %761  ;;  %2077 = vperm.xlu0 %8449, %v8721_v62   ;;  %v363_v57 = vld [vmem:[%s8566_s16 + $0xe0] sm:$0xff] }
  0xb1   : > { %11634 = vst [vmem:[#allocation17_spill] sm:$0xff] %v8809_v45  ;;  %2082 = vperm.xlu1 %8448, %v2035_v56   ;;  %402 = vst.msk [vmem:[#allocation2 + $0xf8] sm:$0xff] %vm367_vm0, %v363_v57 }
  0xb3   : > { %v8817_v63 = vpop.permute.xlu0 %1017 }
  0xb4   : > { %11636 = vst [vmem:[#allocation19_spill] sm:$0xff] %v8817_v63  ;;  %v8819_v0 = vpop.permute.xlu1 %1022  ;;  %2621 = vperm.xlu0 %8449, %v8692_v38  }
  0xb5   : > { %11637 = vst [vmem:[#allocation20_spill] sm:$0xff] %v8819_v0  ;;  %2626 = vperm.xlu1 %8448, %v8690_v46  }
  0xb7   : > { %v8830_v15 = vpop.permute.xlu0 %1593 }
  0xb8   : > { %v8832_v16 = vpop.permute.xlu1 %1598  ;;  %1330 = vperm.xlu0 %8449, %v8825_v40  }
  0xb9   : > { %1335 = vperm.xlu1 %8448, %v1208_v27  }
  0xbb   : > { %v8838_v38 = vpop.permute.xlu0 %676 }
  0xbc   : > { %v8836_v46 = vpop.permute.xlu1 %681  ;;  %11640 = vst [vmem:[#allocation23_spill] sm:$0xff] %v8838_v38  ;;  %1874 = vperm.xlu0 %8449, %v8741_v13   ;;  %v8937_v38 = vld [vmem:[#allocation2 + $0x47] sm:$0xff] }
  0xbd   : > { %11639 = vst [vmem:[#allocation22_spill] sm:$0xff] %v8836_v46  ;;  %1879 = vperm.xlu1 %8448, %v8739_v11  }
  0xbf   : > { %v8848_v44 = vpop.permute.xlu0 %937 }
  0xc0   : > { %v8846_v32 = vpop.permute.xlu1 %942  ;;  %11642 = vst [vmem:[#allocation25_spill] sm:$0xff] %v8848_v44  ;;  %2450 = vperm.xlu0 %8449, %v2343_v21  }
  0xc1   : > { %11641 = vst [vmem:[#allocation24_spill] sm:$0xff] %v8846_v32  ;;  %2455 = vperm.xlu1 %8448, %v8736_v9   ;;  %v431_v9 = vadd.s32 192, %v8560_v4 }
  0xc3   : > { %v8858_v27 = vpop.permute.xlu0 %1513  ;;  %v463_v12 = vand.u32 15, %v431_v9 }
  0xc4   : > { %v8856_v56 = vpop.permute.xlu1 %1518  ;;  %2994 = vperm.xlu0 %8449, %v8706_v55   ;;  %v2327_v55 = vmul.f32 %v8768_v29, %v8633_v59 }
  0xc5   : > { %2999 = vperm.xlu1 %8448, %v8651_v14   ;;  %vm495_vm2 = vcmp.ge.s32.totalorder %v463_v12, 1  ;;  %v8907_v12 = vld [vmem:[#allocation2 + $0xd0] sm:$0xff] }
  0xc7   : > { %v8869_v21 = vpop.permute.xlu0 %1310 }
  0xc8   : > { %v8867_v20 = vpop.permute.xlu1 %1315  ;;  %11644 = vst [vmem:[#allocation27_spill] sm:$0xff] %v8869_v21  ;;  %1250 = vperm.xlu0 %8449, %v8864_v5  }
  0xc9   : > { %11643 = vst [vmem:[#allocation26_spill] sm:$0xff] %v8867_v20  ;;  %1255 = vperm.xlu1 %8448, %v1192_v49   ;;  %v11647_v49 = vmov 0.0   ;;  %v8984_v20 = vld [vmem:[#allocation2 + $0xd1] sm:$0xff] }
  0xca   : > { %v8888_v9 = vsel %vm495_vm2, 1.0, %v11647_v49 }
  0xcb   : > { %v8874_v14 = vpop.permute.xlu0 %1854  ;;  %11648 = vst [vmem:[#allocation30_spill] sm:$0xff] %v8888_v9  ;;  %v655_v59 = vmul.f32 %v8890_v53, %v8888_v9 }
  0xcc   : > { %v8872_v1 = vpop.permute.xlu1 %1859  ;;  %1794 = vperm.xlu0 %8449, %v8787_v42  }
  0xcd   : > { %1799 = vperm.xlu1 %8448, %v8785_v41  }
  0xcf   : > { %v8883_v6 = vpop.permute.xlu0 %1230 }
  0xd0   : > { %v8881_v7 = vpop.permute.xlu1 %1235  ;;  %11646 = vst [vmem:[#allocation29_spill] sm:$0xff] %v8883_v6  ;;  %2370 = vperm.xlu0 %8449, %v2327_v55   ;;  %v8909_v55 = vld [vmem:[#allocation2 + $0xc8] sm:$0xff]  ;;  %v362_v6 = vld [vmem:[%s8566_s16 + $0xd8] sm:$0xff] }
  0xd1   : > { %11645 = vst [vmem:[#allocation28_spill] sm:$0xff] %v8881_v7  ;;  %2375 = vperm.xlu1 %8448, %v8778_v35   ;;  %401 = vst.msk [vmem:[#allocation2 + $0xf0] sm:$0xff] %vm367_vm0, %v362_v6 }
  0xd3   : > { %v8894_v8 = vpop.permute.xlu0 %1774 }
  0xd4   : > { %v8892_v31 = vpop.permute.xlu1 %1779  ;;  %2914 = vperm.xlu0 %8449, %v8721_v62  }
  0xd5   : > { %2919 = vperm.xlu1 %8448, %v8668_v28   ;;  %v415_v28 = vadd.s32 64, %v8560_v4 }
  0xd7   : > { %v8904_v35 = vpop.permute.xlu0 %766 }
  0xd8   : > { %v8902_v29 = vpop.permute.xlu1 %771  ;;  %11650 = vst [vmem:[#allocation32_spill] sm:$0xff] %v8904_v35  ;;  %786 = vperm.xlu0 %8449, %v655_v59   ;;  %v447_v35 = vand.u32 15, %v415_v28 }
  0xd9   : > { %11649 = vst [vmem:[#allocation31_spill] sm:$0xff] %v8902_v29  ;;  %791 = vperm.xlu1 %8448, %v8900_v3  }
  0xda   : > { %vm479_vm3 = vcmp.ge.s32.totalorder %v447_v35, 1  ;;  %v8947_v35 = vld [vmem:[#allocation2 + $0x4f] sm:$0xff] }
  0xdb   : > { %v8914_v51 = vpop.permute.xlu0 %1027  ;;  %v8935_v28 = vsel %vm479_vm3, 1.0, %v11647_v49 }
  0xdc   : > { %v8912_v62 = vpop.permute.xlu1 %1032  ;;  %11652 = vst [vmem:[#allocation34_spill] sm:$0xff] %v8914_v51  ;;  %1047 = vperm.xlu0 %8449, %v8909_v55   ;;  %v639_v6 = vmul.f32 %v8937_v38, %v8935_v28 }
  0xdd   : > { %11651 = vst [vmem:[#allocation33_spill] sm:$0xff] %v8912_v62  ;;  %1052 = vperm.xlu1 %8448, %v8907_v12   ;;  %v2053_v62 = vmul.f32 %v8815_v61, %v8699_v52 }
  0xdf   : > { %v8922_v59 = vpop.permute.xlu0 %1603 }
  0xe0   : > { %v8920_v29 = vpop.permute.xlu1 %1608  ;;  %11654 = vst [vmem:[#allocation36_spill] sm:$0xff] %v8922_v59  ;;  %1623 = vperm.xlu0 %8449, %v1500_v23  }
  0xe1   : > { %11653 = vst [vmem:[#allocation35_spill] sm:$0xff] %v8920_v29  ;;  %1628 = vperm.xlu1 %8448, %v8900_v3   ;;  %v346_v29 = vld [vmem:[%s8566_s16 + $0x58] sm:$0xff] }
  0xe2   : > { %385 = vst.msk [vmem:[#allocation2 + $0x70] sm:$0xff] %vm367_vm0, %v346_v29 }
  0xe3   : > { %v8931_v7 = vpop.permute.xlu0 %2147 }
  0xe4   : > { %v8929_v51 = vpop.permute.xlu1 %2152  ;;  %2167 = vperm.xlu0 %8449, %v8825_v40  }
  0xe5   : > { %2172 = vperm.xlu1 %8448, %v2053_v62  }
  0xe7   : > { %v8941_v46 = vpop.permute.xlu0 %686 }
  0xe8   : > { %v8939_v23 = vpop.permute.xlu1 %691  ;;  %11656 = vst [vmem:[#allocation38_spill] sm:$0xff] %v8941_v46  ;;  %2711 = vperm.xlu0 %8449, %v8741_v13   ;;  %v8956_v46 = vld [vmem:[#allocation2 + $0x48] sm:$0xff] }
  0xe9   : > { %11655 = vst [vmem:[#allocation37_spill] sm:$0xff] %v8939_v23  ;;  %2716 = vperm.xlu1 %8448, %v8739_v11   ;;  %v8954_v23 = vld [vmem:[#allocation2 + $0x50] sm:$0xff]  ;;  %v432_v11 = vadd.s32 200, %v8560_v4 }
  0xeb   : > { %v8951_v44 = vpop.permute.xlu0 %947 }
  0xec   : > { %v8949_v62 = vpop.permute.xlu1 %952  ;;  %11658 = vst [vmem:[#allocation40_spill] sm:$0xff] %v8951_v44  ;;  %706 = vperm.xlu0 %8449, %v639_v6   ;;  %v1484_v44 = vmul.f32 %v8937_v38, %v8766_v26 }
  0xed   : > { %11657 = vst [vmem:[#allocation39_spill] sm:$0xff] %v8949_v62  ;;  %711 = vperm.xlu1 %8448, %v8947_v35   ;;  %v464_v62 = vand.u32 15, %v432_v11 }
  0xef   : > { %v8961_v32 = vpop.permute.xlu0 %1523  ;;  %vm560_vm4 = vcmp.le.s32.totalorder %v464_v62, 14  ;;  %v8994_v62 = vld [vmem:[#allocation2 + $0xc9] sm:$0xff] }
  0xf0   : > { %v8959_v13 = vpop.permute.xlu1 %1528  ;;  %11660 = vst [vmem:[#allocation42_spill] sm:$0xff] %v8961_v32  ;;  %967 = vperm.xlu0 %8449, %v8956_v46   ;;  %v8982_v11 = vsel %vm560_vm4, 1.0, %v11647_v49  ;;  %11666 = vst [vmem:[#allocation48_spill] sm:$0xff] %v8994_v62 }
  0xf1   : > { %11659 = vst [vmem:[#allocation41_spill] sm:$0xff] %v8959_v13  ;;  %972 = vperm.xlu1 %8448, %v8954_v23   ;;  %v2037_v13 = vmul.f32 %v8854_v54, %v8716_v58  ;;  %11663 = vst [vmem:[#allocation45_spill] sm:$0xff] %v8982_v11  ;;  %v1210_v29 = vmul.f32 %v8984_v20, %v8982_v11 }
  0xf3   : > { %v8969_v6 = vpop.permute.xlu0 %2067 }
  0xf4   : > { %v8967_v59 = vpop.permute.xlu1 %2072  ;;  %1543 = vperm.xlu0 %8449, %v1484_v44  }
  0xf5   : > { %1548 = vperm.xlu1 %8448, %v8947_v35  }
  0xf7   : > { %v8978_v21 = vpop.permute.xlu0 %1320 }
  0xf8   : > { %v8976_v32 = vpop.permute.xlu1 %1325  ;;  %11662 = vst [vmem:[#allocation44_spill] sm:$0xff] %v8978_v21  ;;  %2087 = vperm.xlu0 %8449, %v8864_v5  }
  0xf9   : > { %11661 = vst [vmem:[#allocation43_spill] sm:$0xff] %v8976_v32  ;;  %2092 = vperm.xlu1 %8448, %v2037_v13   ;;  %v416_v13 = vadd.s32 72, %v8560_v4 }
  0xfb   : > { %v8988_v45 = vpop.permute.xlu0 %1864 }
  0xfc   : > { %v8986_v44 = vpop.permute.xlu1 %1869  ;;  %11665 = vst [vmem:[#allocation47_spill] sm:$0xff] %v8988_v45  ;;  %2631 = vperm.xlu0 %8449, %v8787_v42   ;;  %v448_v45 = vand.u32 15, %v416_v13  ;;  %v2345_v42 = vmul.f32 %v8890_v53, %v8662_v25 }
  0xfd   : > { %11664 = vst [vmem:[#allocation46_spill] sm:$0xff] %v8986_v44  ;;  %2636 = vperm.xlu1 %8448, %v8785_v41  }
  0xfe   : > { %vm544_vm5 = vcmp.le.s32.totalorder %v448_v45, 14  ;;  %v9031_v45 = vld [vmem:[#allocation2 + $0x49] sm:$0xff] }
  0xff   : > { %v8999_v32 = vpop.permute.xlu0 %2440  ;;  %v9020_v13 = vsel %vm544_vm5, 1.0, %v11647_v49 }
 0x100   : > { %v8997_v21 = vpop.permute.xlu1 %2445  ;;  %1340 = vperm.xlu0 %8449, %v8994_v62   ;;  %11671 = vst [vmem:[#allocation53_spill] sm:$0xff] %v9020_v13 }
 0x101   : > { %1345 = vperm.xlu1 %8448, %v1210_v29   ;;  %v2898_v29 = vmul.f32 %v8815_v61, %v8644_v10  ;;  %v433_v10 = vadd.s32 208, %v8560_v4 }
 0x103   : > { %v9004_v41 = vpop.permute.xlu0 %1240 }
 0x104   : > { %v9002_v44 = vpop.permute.xlu1 %1245  ;;  %11668 = vst [vmem:[#allocation50_spill] sm:$0xff] %v9004_v41  ;;  %1884 = vperm.xlu0 %8449, %v8909_v55   ;;  %v9022_v41 = vld [vmem:[#allocation2 + $0x51] sm:$0xff] }
 0x105   : > { %11667 = vst [vmem:[#allocation49_spill] sm:$0xff] %v9002_v44  ;;  %1889 = vperm.xlu1 %8448, %v8907_v12   ;;  %v1194_v57 = vmul.f32 %v9022_v41, %v9020_v13  ;;  %v364_v13 = vld [vmem:[%s8566_s16 + $0xe8] sm:$0xff] }
 0x106   : > { %403 = vst.msk [vmem:[#allocation2 + $0x100] sm:$0xff] %vm367_vm0, %v364_v13 }
 0x107   : > { %v9013_v63 = vpop.permute.xlu0 %1784 }
 0x108   : > { %v9011_v0 = vpop.permute.xlu1 %1789  ;;  %11670 = vst [vmem:[#allocation52_spill] sm:$0xff] %v9013_v63  ;;  %2460 = vperm.xlu0 %8449, %v2345_v42   ;;  %v465_v42 = vand.u32 15, %v433_v10  ;;  %v347_v63 = vld [vmem:[%s8566_s16 + $0x60] sm:$0xff] }
 0x109   : > { %11669 = vst [vmem:[#allocation51_spill] sm:$0xff] %v9011_v0  ;;  %2465 = vperm.xlu1 %8448, %v8900_v3   ;;  %386 = vst.msk [vmem:[#allocation2 + $0x78] sm:$0xff] %vm367_vm0, %v347_v63 }
 0x10a   : > { %vm497_vm6 = vcmp.ge.s32.totalorder %v465_v42, 1 }
 0x10b   : > { %v9026_v53 = vpop.permute.xlu0 %2360  ;;  %v9057_v10 = vsel %vm497_vm6, 1.0, %v11647_v49 }
 0x10c   : > { %v9024_v25 = vpop.permute.xlu1 %2365  ;;  %3004 = vperm.xlu0 %8449, %v8825_v40   ;;  %v2329_v40 = vmul.f32 %v8937_v38, %v8684_v37  ;;  %11678 = vst [vmem:[#allocation60_spill] sm:$0xff] %v9057_v10 }
 0x10d   : > { %3009 = vperm.xlu1 %8448, %v2898_v29  }
 0x10f   : > { %v9036_v3 = vpop.permute.xlu0 %776 }
 0x110   : > { %v9034_v61 = vpop.permute.xlu1 %781  ;;  %11673 = vst [vmem:[#allocation55_spill] sm:$0xff] %v9036_v3  ;;  %1260 = vperm.xlu0 %8449, %v9031_v45  }
 0x111   : > { %11672 = vst [vmem:[#allocation54_spill] sm:$0xff] %v9034_v61  ;;  %1265 = vperm.xlu1 %8448, %v1194_v57   ;;  %v2882_v57 = vmul.f32 %v8854_v54, %v8656_v18  ;;  %v9075_v54 = vld [vmem:[#allocation2 + $0xe0] sm:$0xff] }
 0x113   : > { %v9041_v29 = vpop.permute.xlu0 %1037 }
 0x114   : > { %v9039_v44 = vpop.permute.xlu1 %1042  ;;  %11675 = vst [vmem:[#allocation57_spill] sm:$0xff] %v9041_v29  ;;  %1804 = vperm.xlu0 %8449, %v8956_v46   ;;  %v9059_v29 = vld [vmem:[#allocation2 + $0xd7] sm:$0xff] }
 0x115   : > { %11674 = vst [vmem:[#allocation56_spill] sm:$0xff] %v9039_v44  ;;  %1809 = vperm.xlu1 %8448, %v8954_v23   ;;  %v657_v63 = vmul.f32 %v9059_v29, %v9057_v10  ;;  %v9160_v10 = vld [vmem:[%s11551_s1 + $0x4] ss:$0 sm:$0xff] }
 0x117   : > { %v9050_v3 = vpop.permute.xlu0 %1613 }
 0x118   : > { %v9048_v61 = vpop.permute.xlu1 %1618  ;;  %11677 = vst [vmem:[#allocation59_spill] sm:$0xff] %v9050_v3  ;;  %2380 = vperm.xlu0 %8449, %v2329_v40   ;;  %v9077_v40 = vld [vmem:[#allocation2 + $0xd8] sm:$0xff]  ;;  %v1502_v3 = vmul.f32 %v9059_v29, %v8888_v9 }
 0x119   : > { %11676 = vst [vmem:[#allocation58_spill] sm:$0xff] %v9048_v61  ;;  %2385 = vperm.xlu1 %8448, %v8947_v35   ;;  %v9068_v35 = vld [vmem:[#allocation2 + $0xdf] sm:$0xff] }
 0x11b   : > { %v9063_v38 = vpop.permute.xlu0 %2157 }
 0x11c   : > { %v9061_v37 = vpop.permute.xlu1 %2162  ;;  %11680 = vst [vmem:[#allocation62_spill] sm:$0xff] %v9063_v38  ;;  %2924 = vperm.xlu0 %8449, %v8864_v5  }
 0x11d   : > { %11679 = vst [vmem:[#allocation61_spill] sm:$0xff] %v9061_v37  ;;  %2929 = vperm.xlu1 %8448, %v2882_v57   ;;  %v417_v57 = vadd.s32 80, %v8560_v4  ;;  %v9154_v37 = vld [vmem:[#allocation2 + $0x58] sm:$0xff] }
 0x11e   : > { %11691 = vst [vmem:[#allocation73_spill] sm:$0xff] %v9154_v37 }
 0x11f   : > { %v9072_v18 = vpop.permute.xlu0 %2701  ;;  %v449_v61 = vand.u32 15, %v417_v57 }
 0x120   : > { %v9070_v42 = vpop.permute.xlu1 %2706  ;;  %796 = vperm.xlu0 %8449, %v657_v63  }
 0x121   : > { %801 = vperm.xlu1 %8448, %v9068_v35   ;;  %vm481_vm7 = vcmp.ge.s32.totalorder %v449_v61, 1  ;;  %v9118_v61 = vld [vmem:[%s11551_s1] ss:$0 sm:$0xff] }
 0x122   : > { %v9103_v57 = vsel %vm481_vm7, 1.0, %v11647_v49 }
 0x123   : > { %v9082_v44 = vpop.permute.xlu0 %696  ;;  %11687 = vst [vmem:[#allocation69_spill] sm:$0xff] %v9103_v57 }
 0x124   : > { %v9080_v5 = vpop.permute.xlu1 %701  ;;  %11682 = vst [vmem:[#allocation64_spill] sm:$0xff] %v9082_v44  ;;  %1057 = vperm.xlu0 %8449, %v9077_v40  }
 0x125   : > { %11681 = vst [vmem:[#allocation63_spill] sm:$0xff] %v9080_v5  ;;  %1062 = vperm.xlu1 %8448, %v9075_v54   ;;  %v2055_v5 = vmul.f32 %v8984_v20, %v8813_v60 }
 0x127   : > { %v9090_v63 = vpop.permute.xlu0 %957 }
 0x128   : > { %v9088_v0 = vpop.permute.xlu1 %962  ;;  %11684 = vst [vmem:[#allocation66_spill] sm:$0xff] %v9090_v63  ;;  %1633 = vperm.xlu0 %8449, %v1502_v3   ;;  %v9105_v63 = vld [vmem:[#allocation2 + $0x57] sm:$0xff] }
 0x129   : > { %11683 = vst [vmem:[#allocation65_spill] sm:$0xff] %v9088_v0  ;;  %1638 = vperm.xlu1 %8448, %v9068_v35   ;;  %v641_v13 = vmul.f32 %v9105_v63, %v9103_v57  ;;  %v434_v57 = vadd.s32 216, %v8560_v4 }
 0x12b   : > { %v9099_v38 = vpop.permute.xlu0 %1533 }
 0x12c   : > { %v9097_v44 = vpop.permute.xlu1 %1538  ;;  %11686 = vst [vmem:[#allocation68_spill] sm:$0xff] %v9099_v38  ;;  %2177 = vperm.xlu0 %8449, %v8994_v62   ;;  %v9125_v38 = vld [vmem:[%s11551_s1 + $0x1] ss:$0 sm:$0xff] }
 0x12d   : > { %11685 = vst [vmem:[#allocation67_spill] sm:$0xff] %v9097_v44  ;;  %2182 = vperm.xlu1 %8448, %v2055_v5   ;;  %v9120_v5 = vld [vmem:[#allocation2 + $0x5f] sm:$0xff]  ;;  %v1105_v9 = vmul.f32 %v9125_v38, %v8770_v30 }
 0x12e   : > { %v9152_v30 = vld [vmem:[#allocation2 + $0x60] sm:$0xff] }
 0x12f   : > { %v9109_v0 = vpop.permute.xlu0 %2077  ;;  %11690 = vst [vmem:[#allocation72_spill] sm:$0xff] %v9152_v30 }
 0x130   : > { %v9107_v3 = vpop.permute.xlu1 %2082  ;;  %11689 = vst [vmem:[#allocation71_spill] sm:$0xff] %v9109_v0  ;;  %2721 = vperm.xlu0 %8449, %v8909_v55   ;;  %v1106_v55 = vmul.f32 %v9125_v38, %v8780_v36  ;;  %v9140_v0 = vld [vmem:[%s11551_s1 + $0x2] ss:$0 sm:$0xff]  ;;  %v845_v36 = vmul.f32 %v9118_v61, %v8772_v34 }
 0x131   : > { %11688 = vst [vmem:[#allocation70_spill] sm:$0xff] %v9107_v3  ;;  %2726 = vperm.xlu1 %8448, %v8907_v12   ;;  %v844_v12 = vmul.f32 %v9118_v61, %v8792_v43  ;;  %v9145_v3 = vld [vmem:[%s11551_s1 + $0x3] ss:$0 sm:$0xff]  ;;  %v1399_v43 = vmul.f32 %v9140_v0, %v8790_v33  ;;  %v1398_v33 = vmul.f32 %v9140_v0, %v8782_v39  ;;  %v466_v39 = vand.u32 15, %v434_v57 }
 0x132   : > { %v1138_v58 = vadd.f32 %v1106_v55, %v845_v36  ;;  %v1691_v62 = vmul.f32 %v9145_v3, %v8830_v15  ;;  %v1953_v55 = vmul.f32 %v9160_v10, %v8872_v1  ;;  %v1952_v15 = vmul.f32 %v9160_v10, %v8874_v14  ;;  %v9201_v14 = vld [vmem:[%s11551_s1 + $0x7] ss:$0 sm:$0xff] }
 0x133   : > { %v9133_v60 = vpop.permute.xlu0 %2621  ;;  %v1137_v11 = vadd.f32 %v1105_v9, %v844_v12  ;;  %v9175_v9 = vld [vmem:[%s11551_s1 + $0x5] ss:$0 sm:$0xff]  ;;  %vm562_vm8 = vcmp.le.s32.totalorder %v466_v39, 14  ;;  %v1090_v39 = vmul.f32 %v9125_v38, %v8760_v22  ;;  %v418_v22 = vadd.s32 88, %v8560_v4 }
 0x134   : > { %v9131_v44 = vpop.permute.xlu1 %2626  ;;  %716 = vperm.xlu0 %8449, %v641_v13   ;;  %v1692_v13 = vmul.f32 %v9145_v3, %v8832_v16  ;;  %v1486_v16 = vmul.f32 %v9105_v63, %v8935_v28  ;;  %v1431_v12 = vadd.f32 %v1399_v43, %v1138_v58  ;;  %v2245_v1 = vmul.f32 %v9175_v9, %v8931_v7 }
 0x135   : > { %721 = vperm.xlu1 %8448, %v9120_v5   ;;  %v1430_v36 = vadd.f32 %v1398_v33, %v1137_v11  ;;  %v2039_v11 = vmul.f32 %v9022_v41, %v8852_v47  ;;  %v2800_v33 = vmul.f32 %v9201_v14, %v9070_v42 }
 0x137   : > { %v9166_v26 = vpop.permute.xlu0 %1330  ;;  %v1723_v43 = vadd.f32 %v1691_v62, %v1430_v36 }
 0x138   : > { %v9164_v34 = vpop.permute.xlu1 %1335  ;;  %11693 = vst [vmem:[#allocation75_spill] sm:$0xff] %v9166_v26  ;;  %977 = vperm.xlu0 %8449, %v9154_v37   ;;  %v9188_v26 = vld [vmem:[%s11551_s1 + $0x6] ss:$0 sm:$0xff]  ;;  %v2246_v37 = vmul.f32 %v9175_v9, %v8929_v51 }
 0x139   : > { %11692 = vst [vmem:[#allocation74_spill] sm:$0xff] %v9164_v34  ;;  %982 = vperm.xlu1 %8448, %v9152_v30   ;;  %v1724_v34 = vadd.f32 %v1692_v13, %v1431_v12  ;;  %v2539_v57 = vmul.f32 %v9188_v26, %v8997_v21  ;;  %v1984_v62 = vadd.f32 %v1952_v15, %v1723_v43  ;;  %v9220_v21 = vsel %vm562_vm8, 1.0, %v11647_v49 }
 0x13a   : > { %v2538_v7 = vmul.f32 %v9188_v26, %v8999_v32 }
 0x13b   : > { %v9194_v58 = vpop.permute.xlu0 %1874  ;;  %v1985_v51 = vadd.f32 %v1953_v55, %v1724_v34  ;;  %v2799_v34 = vmul.f32 %v9201_v14, %v9072_v18  ;;  %v9222_v55 = vld [vmem:[#allocation2 + $0xe1] sm:$0xff]  ;;  %v828_v18 = vmul.f32 %v9118_v61, %v8762_v24  ;;  %v1089_v24 = vmul.f32 %v9125_v38, %v8751_v17 }
 0x13c   : > { %v9192_v30 = vpop.permute.xlu1 %1879  ;;  %1553 = vperm.xlu0 %8449, %v1486_v16   ;;  %v2277_v16 = vadd.f32 %v2245_v1, %v1984_v62 }
 0x13d   : > { %1558 = vperm.xlu1 %8448, %v9120_v5   ;;  %v2278_v13 = vadd.f32 %v2246_v37, %v1985_v51  ;;  %v9227_v37 = vld [vmem:[%s11551_s1 + $0x8] ss:$0 sm:$0xff]  ;;  %v1121_v17 = vadd.f32 %v1089_v24, %v828_v18 }
 0x13e   : > { %v2570_v42 = vadd.f32 %v2538_v7, %v2277_v16  ;;  %v829_v7 = vmul.f32 %v9118_v61, %v8753_v19  ;;  %v1676_v19 = vmul.f32 %v9145_v3, %v8856_v56  ;;  %v1936_v56 = vmul.f32 %v9160_v10, %v8894_v8 }
 0x13f   : > { %v9214_v36 = vpop.permute.xlu0 %2450  ;;  %v2571_v32 = vadd.f32 %v2539_v57, %v2278_v13  ;;  %v1382_v13 = vmul.f32 %v9140_v0, %v8798_v48  ;;  %v1675_v48 = vmul.f32 %v9145_v3, %v8858_v27 }
 0x140   : > { %v9212_v12 = vpop.permute.xlu1 %2455  ;;  %2097 = vperm.xlu0 %8449, %v9031_v45   ;;  %v2831_v51 = vadd.f32 %v2799_v34, %v2570_v42  ;;  %v9253_v34 = vld [vmem:[#allocation2 + $0xd9] sm:$0xff] }
 0x141   : > { %2102 = vperm.xlu1 %8448, %v2039_v11   ;;  %v2832_v15 = vadd.f32 %v2800_v33, %v2571_v32  ;;  %v1212_v11 = vmul.f32 %v9222_v55, %v9220_v21  ;;  %v1383_v33 = vmul.f32 %v9140_v0, %v8800_v50  ;;  %v1122_v32 = vadd.f32 %v1090_v39, %v829_v7 }
 0x142   : > { %v1937_v39 = vmul.f32 %v9160_v10, %v8892_v31  ;;  %v2229_v31 = vmul.f32 %v9175_v9, %v8969_v6  ;;  %v365_v6 = vld [vmem:[%s8566_s16 + $0xf0] sm:$0xff] }
 0x143   : > { %v2995_v1 = vpop.permute.xlu0 %2994  ;;  %404 = vst.msk [vmem:[#allocation2 + $0x108] sm:$0xff] %vm367_vm0, %v365_v6 }
 0x144   : > { %v3000_v43 = vpop.permute.xlu1 %2999  ;;  %v3092_v62 = vmul.f32 %v9227_v37, %v2995_v1  ;;  %2641 = vperm.xlu0 %8449, %v8956_v46  }
 0x145   : > { %v3093_v57 = vmul.f32 %v9227_v37, %v3000_v43  ;;  %2646 = vperm.xlu1 %8448, %v8954_v23   ;;  %v9251_v23 = vld [vmem:[%s11552_s2] ss:$0 sm:$0xff] }
 0x146   : > { %v3124_v16 = vadd.f32 %v3092_v62, %v2831_v51  ;;  %v1414_v51 = vadd.f32 %v1382_v13, %v1121_v17  ;;  %v2347_v13 = vmul.f32 %v9059_v29, %v8730_v2 }
 0x147   : > { %v3125_v46 = vadd.f32 %v3093_v57, %v2832_v15  ;;  %v9261_v50 = vpop.permute.xlu0 %1250  ;;  %v450_v15 = vand.u32 15, %v418_v22  ;;  %v1415_v57 = vadd.f32 %v1383_v33, %v1122_v32 }
 0x148   : > { %v9259_v42 = vpop.permute.xlu1 %1255  ;;  %11695 = vst [vmem:[#allocation77_spill] sm:$0xff] %v9261_v50  ;;  %v3163_v1 = vadd.f32 %v9251_v23, %v3124_v16  ;;  %1350 = vperm.xlu0 %8449, %v9253_v34   ;;  %v1707_v24 = vadd.f32 %v1675_v48, %v1414_v51  ;;  %v2523_v16 = vmul.f32 %v9188_v26, %v9024_v25  ;;  %v9421_v50 = vld [vmem:[#allocation2 + $0x70] sm:$0xff] }
 0x149   : > { %11694 = vst [vmem:[#allocation76_spill] sm:$0xff] %v9259_v42  ;;  %v3164_v43 = vadd.f32 %v9251_v23, %v3125_v46  ;;  %1355 = vperm.xlu1 %8448, %v1212_v11   ;;  %v1708_v62 = vadd.f32 %v1676_v19, %v1415_v57  ;;  %v2230_v11 = vmul.f32 %v9175_v9, %v8967_v59  ;;  %vm546_vm9 = vcmp.le.s32.totalorder %v450_v15, 14  ;;  %v9423_v42 = vld [vmem:[#allocation2 + $0x68] sm:$0xff] }
 0x14a   : > { %v3195_v18 = vmax.f32 %v3163_v1, 0.0  ;;  %v1968_v33 = vadd.f32 %v1936_v56, %v1707_v24  ;;  %v2522_v59 = vmul.f32 %v9188_v26, %v9026_v53  ;;  %v2900_v19 = vmul.f32 %v8984_v20, %v8699_v52 }
 0x14b   : > { %v3196_v27 = vmax.f32 %v3164_v43, 0.0  ;;  %v9272_v46 = vpop.permute.xlu0 %1794  ;;  %v1969_v8 = vadd.f32 %v1937_v39, %v1708_v62  ;;  %v9298_v2 = vsel %vm546_vm9, 1.0, %v11647_v49  ;;  %v2784_v53 = vmul.f32 %v9201_v14, %v9131_v44  ;;  %v9306_v43 = vld [vmem:[#allocation2 + $0x61] sm:$0xff] }
 0x14c   : > { %v9270_v7 = vpop.permute.xlu1 %1799  ;;  %11697 = vst [vmem:[#allocation79_spill] sm:$0xff] %v9272_v46  ;;  %1894 = vperm.xlu0 %8449, %v9077_v40   ;;  %v2261_v29 = vadd.f32 %v2229_v31, %v1968_v33  ;;  %v2783_v48 = vmul.f32 %v9201_v14, %v9133_v60  ;;  %v1196_v51 = vmul.f32 %v9306_v43, %v9298_v2  ;;  %v11699_v60 = vld [vmem:[#allocation48_spill] sm:$0xff]  ;;  %v11731_v46 = vld [vmem:[#allocation69_spill] sm:$0xff] }
 0x14d   : > { %11696 = vst [vmem:[#allocation78_spill] sm:$0xff] %v9270_v7  ;;  %1899 = vperm.xlu1 %8448, %v9075_v54   ;;  %v9279_v22 = vpack.c.bf16 %v3196_v27, %v3195_v18  ;;  %v2262_v25 = vadd.f32 %v2230_v11, %v1969_v8  ;;  %v9313_v18 = vld [vmem:[#allocation2 + $0x59] sm:$0xff]  ;;  %v435_v11 = vadd.s32 224, %v8560_v4 }
 0x14e   : > { %v2554_v52 = vadd.f32 %v2522_v59, %v2261_v29  ;;  %v11706_v29 = vld [vmem:[#allocation73_spill] sm:$0xff] }
 0x14f   : > { %11698 = vst [vmem:[#allocation80_spill] sm:$0xff] %v9279_v22  ;;  %8106 = vmatprep.subr.bf16.mxu0 %v9279_v22  ;;  %8138 = vmatprep.subr.bf16.mxu1 %v9279_v22  ;;  %v9293_v17 = vpop.permute.xlu0 %2370  ;;  %v2555_v1 = vadd.f32 %v2523_v16, %v2262_v25  ;;  %v467_v6 = vand.u32 15, %v435_v11  ;;  %v419_v11 = vadd.s32 96, %v8560_v4 }
 0x150   : > { %v9291_v32 = vpop.permute.xlu1 %2375  ;;  %2470 = vperm.xlu0 %8449, %v2347_v13   ;;  %v2815_v39 = vadd.f32 %v2783_v48, %v2554_v52 }
 0x151   : > { %2475 = vperm.xlu1 %8448, %v9068_v35   ;;  %v2816_v57 = vadd.f32 %v2784_v53, %v2555_v1  ;;  %v11707_v53 = vld [vmem:[#allocation15_spill] sm:$0xff]  ;;  %vm499_vm10 = vcmp.ge.s32.totalorder %v467_v6, 1  ;;  %v451_v6 = vand.u32 15, %v419_v11  ;;  %v9391_v11 = vld [vmem:[#allocation2 + $0x67] sm:$0xff] }
 0x152   : > { %v2331_v48 = vmul.f32 %v9105_v63, %v11707_v53  ;;  %v11716_v53 = vld [vmem:[#allocation45_spill] sm:$0xff] }
 0x153   : > { %v2915_v15 = vpop.permute.xlu0 %2914  ;;  %vm483_vm11 = vcmp.ge.s32.totalorder %v451_v6, 1 }
 0x154   : > { %v2920_v20 = vpop.permute.xlu1 %2919  ;;  %v3076_v44 = vmul.f32 %v9227_v37, %v2915_v15  ;;  %3014 = vperm.xlu0 %8449, %v11699_v60   ;;  %v9361_v60 = vld [vmem:[#allocation2 + $0xf0] sm:$0xff] }
 0x155   : > { %v3077_v56 = vmul.f32 %v9227_v37, %v2920_v20  ;;  %3019 = vperm.xlu1 %8448, %v2900_v19   ;;  %v11704_v19 = vld [vmem:[#allocation72_spill] sm:$0xff]  ;;  %v11710_v20 = vld [vmem:[#allocation13_spill] sm:$0xff] }
 0x156   : > { %v3108_v27 = vadd.f32 %v3076_v44, %v2815_v39  ;;  %v2884_v15 = vmul.f32 %v9022_v41, %v11710_v20  ;;  %v366_v20 = vld [vmem:[%s8566_s16 + $0xf8] sm:$0xff] }
 0x157   : > { %v3109_v35 = vadd.f32 %v3077_v56, %v2816_v57  ;;  %v9317_v24 = vpop.permute.xlu0 %786  ;;  %v9345_v57 = vld [vmem:[#allocation2 + $0xe7] sm:$0xff]  ;;  %v9352_v56 = vld [vmem:[#allocation2 + $0xef] sm:$0xff]  ;;  %405 = vst.msk [vmem:[#allocation2 + $0x110] sm:$0xff] %vm367_vm0, %v366_v20 }
 0x158   : > { %v9315_v62 = vpop.permute.xlu1 %791  ;;  %11701 = vst [vmem:[#allocation81_spill] sm:$0xff] %v9317_v24  ;;  %v3147_v8 = vadd.f32 %v9251_v23, %v3108_v27  ;;  %1270 = vperm.xlu0 %8449, %v9313_v18  }
 0x159   : > { %11700 = vst [vmem:[#allocation48_spill] sm:$0xff] %v9315_v62  ;;  %v3148_v31 = vadd.f32 %v9251_v23, %v3109_v35  ;;  %1275 = vperm.xlu1 %8448, %v1196_v51   ;;  %v9343_v51 = vsel %vm499_vm10, 1.0, %v11647_v49  ;;  %v9363_v35 = vld [vmem:[#allocation2 + $0xe8] sm:$0xff] }
 0x15a   : > { %v3179_v33 = vmax.f32 %v3147_v8, 0.0 }
 0x15b   : > { %v3180_v13 = vmax.f32 %v3148_v31, 0.0  ;;  %v9325_v59 = vpop.permute.xlu0 %1047  ;;  %v11713_v31 = vld [vmem:[#allocation60_spill] sm:$0xff] }
 0x15c   : > { %v9323_v16 = vpop.permute.xlu1 %1052  ;;  %11703 = vst [vmem:[#allocation83_spill] sm:$0xff] %v9325_v59  ;;  %1814 = vperm.xlu0 %8449, %v11706_v29   ;;  %v1504_v8 = vmul.f32 %v9345_v57, %v11713_v31  ;;  %v11724_v59 = vld [vmem:[#allocation17_spill] sm:$0xff] }
 0x15d   : > { %11702 = vst [vmem:[#allocation82_spill] sm:$0xff] %v9323_v16  ;;  %1819 = vperm.xlu1 %8448, %v11704_v19   ;;  %v9328_v25 = vpack.c.bf16 %v3180_v13, %v3179_v33  ;;  %v847_v16 = vmul.f32 %v9118_v61, %v11724_v59 }
 0x15f   : > { %11705 = vst [vmem:[#allocation72_spill] sm:$0xff] %v9328_v25  ;;  %8108 = vmatpush3.bf16.msra.mxu0 %v9328_v25  ;;  %8140 = vmatpush3.bf16.msra.mxu1 %v9328_v25  ;;  %v9337_v52 = vpop.permute.xlu0 %1623  ;;  %v9389_v25 = vsel %vm483_vm11, 1.0, %v11647_v49 }
 0x160   : > { %v9335_v1 = vpop.permute.xlu1 %1628  ;;  %11709 = vst [vmem:[#allocation15_spill] sm:$0xff] %v9337_v52  ;;  %2390 = vperm.xlu0 %8449, %v2331_v48   ;;  %v2057_v48 = vmul.f32 %v9222_v55, %v11716_v53  ;;  %v643_v6 = vmul.f32 %v9391_v11, %v9389_v25  ;;  %v11727_v53 = vld [vmem:[#allocation35_spill] sm:$0xff] }
 0x161   : > { %11708 = vst [vmem:[#allocation73_spill] sm:$0xff] %v9335_v1  ;;  %2395 = vperm.xlu1 %8448, %v9120_v5   ;;  %v659_v5 = vmul.f32 %v9345_v57, %v9343_v51  ;;  %v1694_v31 = vmul.f32 %v9145_v3, %v11727_v53  ;;  %v11733_v53 = vld [vmem:[#allocation47_spill] sm:$0xff] }
 0x163   : > { %v9349_v39 = vpop.permute.xlu0 %2167 }
 0x164   : > { %v9347_v63 = vpop.permute.xlu1 %2172  ;;  %2934 = vperm.xlu0 %8449, %v9031_v45  }
 0x165   : > { %2939 = vperm.xlu1 %8448, %v2884_v15  }
 0x167   : > { %v9358_v41 = vpop.permute.xlu0 %2711 }
 0x168   : > { %v9356_v44 = vpop.permute.xlu1 %2716  ;;  %806 = vperm.xlu0 %8449, %v659_v5  }
 0x169   : > { %811 = vperm.xlu1 %8448, %v9352_v56  }
 0x16b   : > { %v9367_v45 = vpop.permute.xlu0 %706 }
 0x16c   : > { %v9365_v27 = vpop.permute.xlu1 %711  ;;  %11712 = vst [vmem:[#allocation84_spill] sm:$0xff] %v9367_v45  ;;  %1067 = vperm.xlu0 %8449, %v9363_v35  }
 0x16d   : > { %11711 = vst [vmem:[#allocation13_spill] sm:$0xff] %v9365_v27  ;;  %1072 = vperm.xlu1 %8448, %v9361_v60   ;;  %v11722_v27 = vld [vmem:[#allocation20_spill] sm:$0xff] }
 0x16f   : > { %v9376_v33 = vpop.permute.xlu0 %967 }
 0x170   : > { %v9374_v13 = vpop.permute.xlu1 %972  ;;  %11715 = vst [vmem:[#allocation86_spill] sm:$0xff] %v9376_v33  ;;  %1643 = vperm.xlu0 %8449, %v1504_v8   ;;  %v9399_v8 = vld [vmem:[#allocation2 + $0x6f] sm:$0xff]  ;;  %v1108_v33 = vmul.f32 %v9125_v38, %v11722_v27 }
 0x171   : > { %11714 = vst [vmem:[#allocation85_spill] sm:$0xff] %v9374_v13  ;;  %1648 = vperm.xlu1 %8448, %v9352_v56  }
 0x172   : > { %v1140_v1 = vadd.f32 %v1108_v33, %v847_v16  ;;  %v11732_v16 = vld [vmem:[#allocation46_spill] sm:$0xff] }
 0x173   : > { %v9385_v5 = vpop.permute.xlu0 %1543  ;;  %v1955_v33 = vmul.f32 %v9160_v10, %v11732_v16 }
 0x174   : > { %v9383_v15 = vpop.permute.xlu1 %1548  ;;  %11718 = vst [vmem:[#allocation88_spill] sm:$0xff] %v9385_v5  ;;  %2187 = vperm.xlu0 %8449, %v9253_v34   ;;  %v11725_v5 = vld [vmem:[#allocation26_spill] sm:$0xff] }
 0x175   : > { %11717 = vst [vmem:[#allocation87_spill] sm:$0xff] %v9383_v15  ;;  %2192 = vperm.xlu1 %8448, %v2057_v48   ;;  %v11721_v48 = vld [vmem:[#allocation19_spill] sm:$0xff] }
 0x176   : > { %v1107_v20 = vmul.f32 %v9125_v38, %v11721_v48  ;;  %v1401_v48 = vmul.f32 %v9140_v0, %v11725_v5  ;;  %v11726_v15 = vld [vmem:[#allocation27_spill] sm:$0xff] }
 0x177   : > { %v9395_v45 = vpop.permute.xlu0 %2087  ;;  %v1400_v27 = vmul.f32 %v9140_v0, %v11726_v15 }
 0x178   : > { %v9393_v22 = vpop.permute.xlu1 %2092  ;;  %11720 = vst [vmem:[#allocation90_spill] sm:$0xff] %v9395_v45  ;;  %2731 = vperm.xlu0 %8449, %v9077_v40   ;;  %v11723_v40 = vld [vmem:[#allocation16_spill] sm:$0xff]  ;;  %v1433_v5 = vadd.f32 %v1401_v48, %v1140_v1 }
 0x179   : > { %11719 = vst [vmem:[#allocation89_spill] sm:$0xff] %v9393_v22  ;;  %2736 = vperm.xlu1 %8448, %v9075_v54   ;;  %v436_v54 = vadd.s32 232, %v8560_v4  ;;  %v846_v62 = vmul.f32 %v9118_v61, %v11723_v40  ;;  %v11728_v40 = vld [vmem:[#allocation36_spill] sm:$0xff] }
 0x17a   : > { %v1693_v45 = vmul.f32 %v9145_v3, %v11728_v40  ;;  %v1726_v40 = vadd.f32 %v1694_v31, %v1433_v5  ;;  %v2540_v5 = vmul.f32 %v9188_v26, %v9214_v36 }
 0x17b   : > { %v9409_v24 = vpop.permute.xlu0 %2631  ;;  %v1139_v52 = vadd.f32 %v1107_v20, %v846_v62  ;;  %v468_v15 = vand.u32 15, %v436_v54  ;;  %v1488_v62 = vmul.f32 %v9391_v11, %v11731_v46  ;;  %v1954_v20 = vmul.f32 %v9160_v10, %v11733_v53  ;;  %v11736_v54 = vld [vmem:[#allocation61_spill] sm:$0xff] }
 0x17c   : > { %v9407_v13 = vpop.permute.xlu1 %2636  ;;  %726 = vperm.xlu0 %8449, %v643_v6   ;;  %v2248_v1 = vmul.f32 %v9175_v9, %v11736_v54  ;;  %v1987_v53 = vadd.f32 %v1955_v33, %v1726_v40  ;;  %v11742_v33 = vld [vmem:[#allocation24_spill] sm:$0xff]  ;;  %v11743_v40 = vld [vmem:[#allocation25_spill] sm:$0xff] }
 0x17d   : > { %731 = vperm.xlu1 %8448, %v9399_v8   ;;  %v1432_v6 = vadd.f32 %v1400_v27, %v1139_v52  ;;  %v11737_v52 = vld [vmem:[#allocation62_spill] sm:$0xff]  ;;  %v11738_v27 = vld [vmem:[#allocation53_spill] sm:$0xff]  ;;  %vm564_vm0 = vcmp.le.s32.totalorder %v468_v15, 14  ;;  %v2802_v15 = vmul.f32 %v9201_v14, %v9356_v44 }
 0x17e   : > { %v2247_v48 = vmul.f32 %v9175_v9, %v11737_v52  ;;  %v2041_v16 = vmul.f32 %v9306_v43, %v11738_v27  ;;  %v9461_v52 = vsel %vm564_vm0, 1.0, %v11647_v49 }
 0x17f   : > { %v9431_v22 = vpop.permute.xlu0 %1340  ;;  %11741 = vst [vmem:[#allocation35_spill] sm:$0xff] %v9461_v52 }
 0x180   : > { %v9429_v59 = vpop.permute.xlu1 %1345  ;;  %11730 = vst [vmem:[#allocation20_spill] sm:$0xff] %v9431_v22  ;;  %987 = vperm.xlu0 %8449, %v9423_v42  }
 0x181   : > { %11729 = vst [vmem:[#allocation19_spill] sm:$0xff] %v9429_v59  ;;  %992 = vperm.xlu1 %8448, %v9421_v50   ;;  %v1725_v59 = vadd.f32 %v1693_v45, %v1432_v6  ;;  %v2541_v45 = vmul.f32 %v9188_v26, %v9212_v12  ;;  %v9467_v12 = vld [vmem:[#allocation2 + $0xf1] sm:$0xff] }
 0x182   : > { %v1214_v44 = vmul.f32 %v9467_v12, %v9461_v52  ;;  %v11747_v52 = vld [vmem:[#allocation29_spill] sm:$0xff] }
 0x183   : > { %v9443_v22 = vpop.permute.xlu0 %1884  ;;  %v1986_v31 = vadd.f32 %v1954_v20, %v1725_v59  ;;  %v2801_v59 = vmul.f32 %v9201_v14, %v9358_v41  ;;  %v1092_v20 = vmul.f32 %v9125_v38, %v11742_v33  ;;  %v420_v41 = vadd.s32 104, %v8560_v4 }
 0x184   : > { %v9441_v7 = vpop.permute.xlu1 %1889  ;;  %11735 = vst [vmem:[#allocation17_spill] sm:$0xff] %v9443_v22  ;;  %1563 = vperm.xlu0 %8449, %v1488_v62   ;;  %v2280_v22 = vadd.f32 %v2248_v1, %v1987_v53  ;;  %v1091_v1 = vmul.f32 %v9125_v38, %v11743_v40  ;;  %v11746_v40 = vld [vmem:[#allocation28_spill] sm:$0xff] }
 0x185   : > { %11734 = vst [vmem:[#allocation16_spill] sm:$0xff] %v9441_v7  ;;  %1568 = vperm.xlu1 %8448, %v9399_v8   ;;  %v2279_v7 = vadd.f32 %v2247_v48, %v1986_v31  ;;  %v1385_v46 = vmul.f32 %v9140_v0, %v11746_v40 }
 0x186   : > { %v2573_v36 = vadd.f32 %v2541_v45, %v2280_v22 }
 0x187   : > { %v9458_v54 = vpop.permute.xlu0 %2460  ;;  %v2572_v62 = vadd.f32 %v2540_v5, %v2279_v7  ;;  %v11744_v7 = vld [vmem:[#allocation22_spill] sm:$0xff]  ;;  %v11745_v5 = vld [vmem:[#allocation23_spill] sm:$0xff] }
 0x188   : > { %v9456_v6 = vpop.permute.xlu1 %2465  ;;  %11740 = vst [vmem:[#allocation27_spill] sm:$0xff] %v9458_v54  ;;  %2107 = vperm.xlu0 %8449, %v9313_v18   ;;  %v831_v45 = vmul.f32 %v9118_v61, %v11744_v7  ;;  %v830_v33 = vmul.f32 %v9118_v61, %v11745_v5  ;;  %v1384_v54 = vmul.f32 %v9140_v0, %v11747_v52  ;;  %v11749_v7 = vld [vmem:[#allocation42_spill] sm:$0xff] }
 0x189   : > { %11739 = vst [vmem:[#allocation26_spill] sm:$0xff] %v9456_v6  ;;  %2112 = vperm.xlu1 %8448, %v2041_v16   ;;  %v2834_v16 = vadd.f32 %v2802_v15, %v2573_v36  ;;  %v2833_v31 = vadd.f32 %v2801_v59, %v2572_v62  ;;  %v9489_v36 = vld [vmem:[#allocation2 + $0xe9] sm:$0xff]  ;;  %v1677_v5 = vmul.f32 %v9145_v3, %v11749_v7 }
 0x18a   : > { %v1124_v62 = vadd.f32 %v1092_v20, %v831_v45  ;;  %v11752_v20 = vld [vmem:[#allocation51_spill] sm:$0xff] }
 0x18b   : > { %v3005_v53 = vpop.permute.xlu0 %3004 }
 0x18c   : > { %v3010_v48 = vpop.permute.xlu1 %3009  ;;  %v3094_v22 = vmul.f32 %v9227_v37, %v3005_v53  ;;  %2651 = vperm.xlu0 %8449, %v11706_v29  }
 0x18d   : > { %v3095_v27 = vmul.f32 %v9227_v37, %v3010_v48  ;;  %2656 = vperm.xlu1 %8448, %v11704_v19   ;;  %v1123_v19 = vadd.f32 %v1091_v1, %v830_v33  ;;  %v11748_v48 = vld [vmem:[#allocation41_spill] sm:$0xff]  ;;  %v1939_v1 = vmul.f32 %v9160_v10, %v11752_v20 }
 0x18e   : > { %v3126_v59 = vadd.f32 %v3094_v22, %v2833_v31  ;;  %v1678_v53 = vmul.f32 %v9145_v3, %v11748_v48  ;;  %v11753_v22 = vld [vmem:[#allocation52_spill] sm:$0xff] }
 0x18f   : > { %v3127_v15 = vadd.f32 %v3095_v27, %v2834_v16  ;;  %v9497_v40 = vpop.permute.xlu0 %1260  ;;  %v452_v27 = vand.u32 15, %v420_v41  ;;  %v1417_v16 = vadd.f32 %v1385_v46, %v1124_v62  ;;  %v1416_v31 = vadd.f32 %v1384_v54, %v1123_v19  ;;  %v11755_v54 = vld [vmem:[#allocation71_spill] sm:$0xff]  ;;  %v11757_v19 = vld [vmem:[#allocation30_spill] sm:$0xff] }
 0x190   : > { %v9495_v6 = vpop.permute.xlu1 %1265  ;;  %11751 = vst [vmem:[#allocation46_spill] sm:$0xff] %v9497_v40  ;;  %v3165_v29 = vadd.f32 %v9251_v23, %v3126_v59  ;;  %1360 = vperm.xlu0 %8449, %v9489_v36   ;;  %v1938_v45 = vmul.f32 %v9160_v10, %v11753_v22  ;;  %v2231_v41 = vmul.f32 %v9175_v9, %v11755_v54  ;;  %v9540_v22 = vld [vmem:[#allocation2 + $0x71] sm:$0xff] }
 0x191   : > { %11750 = vst [vmem:[#allocation36_spill] sm:$0xff] %v9495_v6  ;;  %v3166_v52 = vadd.f32 %v9251_v23, %v3127_v15  ;;  %1365 = vperm.xlu1 %8448, %v1214_v44   ;;  %v1710_v7 = vadd.f32 %v1678_v53, %v1417_v16  ;;  %v1709_v40 = vadd.f32 %v1677_v5, %v1416_v31  ;;  %v11754_v44 = vld [vmem:[#allocation70_spill] sm:$0xff]  ;;  %vm548_vm12 = vcmp.le.s32.totalorder %v452_v27, 14 }
 0x192   : > { %v3197_v48 = vmax.f32 %v3165_v29, 0.0  ;;  %v2232_v46 = vmul.f32 %v9175_v9, %v11754_v44  ;;  %v2349_v53 = vmul.f32 %v9345_v57, %v11757_v19  ;;  %v2524_v29 = vmul.f32 %v9188_v26, %v9293_v17  ;;  %v11758_v31 = vld [vmem:[#allocation18_spill] sm:$0xff] }
 0x193   : > { %v3198_v33 = vmax.f32 %v3166_v52, 0.0  ;;  %v9508_v15 = vpop.permute.xlu0 %1804  ;;  %v1971_v62 = vadd.f32 %v1939_v1, %v1710_v7  ;;  %v1970_v5 = vadd.f32 %v1938_v45, %v1709_v40  ;;  %v2525_v52 = vmul.f32 %v9188_v26, %v9291_v32 }
 0x194   : > { %v9506_v6 = vpop.permute.xlu1 %1809  ;;  %1904 = vperm.xlu0 %8449, %v9363_v35   ;;  %v2902_v20 = vmul.f32 %v9222_v55, %v11758_v31  ;;  %v9533_v57 = vsel %vm548_vm12, 1.0, %v11647_v49  ;;  %v2786_v32 = vmul.f32 %v9201_v14, %v9407_v13  ;;  %v2785_v17 = vmul.f32 %v9201_v14, %v9409_v24 }
 0x195   : > { %1909 = vperm.xlu1 %8448, %v9361_v60   ;;  %v9515_v59 = vpack.c.bf16 %v3198_v33, %v3197_v48  ;;  %v2264_v40 = vadd.f32 %v2232_v46, %v1971_v62  ;;  %v2263_v1 = vadd.f32 %v2231_v41, %v1970_v5  ;;  %v1198_v7 = vmul.f32 %v9540_v22, %v9533_v57  ;;  %v9547_v41 = vld [vmem:[#allocation2 + $0x69] sm:$0xff] }
 0x197   : > { %11756 = vst [vmem:[#allocation47_spill] sm:$0xff] %v9515_v59  ;;  %8110 = vmatprep.subr.bf16.mxu0 %v9515_v59  ;;  %8142 = vmatprep.subr.bf16.mxu1 %v9515_v59  ;;  %v9528_v27 = vpop.permute.xlu0 %2380  ;;  %v2557_v45 = vadd.f32 %v2525_v52, %v2264_v40  ;;  %v2556_v33 = vadd.f32 %v2524_v29, %v2263_v1 }
 0x198   : > { %v9526_v16 = vpop.permute.xlu1 %2385  ;;  %2480 = vperm.xlu0 %8449, %v2349_v53   ;;  %v437_v53 = vadd.s32 240, %v8560_v4 }
 0x199   : > { %2485 = vperm.xlu1 %8448, %v9352_v56   ;;  %v2818_v44 = vadd.f32 %v2786_v32, %v2557_v45  ;;  %v2817_v46 = vadd.f32 %v2785_v17, %v2556_v33  ;;  %v2333_v32 = vmul.f32 %v9391_v11, %v8935_v28  ;;  %v2886_v33 = vmul.f32 %v9306_v43, %v8852_v47  ;;  %v9595_v43 = vld [vmem:[#allocation2 + $0x100] sm:$0xff] }
 0x19a   : > { %v469_v40 = vand.u32 15, %v437_v53 }
 0x19b   : > { %v2925_v55 = vpop.permute.xlu0 %2924 }
 0x19c   : > { %v2930_v48 = vpop.permute.xlu1 %2929  ;;  %v3078_v13 = vmul.f32 %v9227_v37, %v2925_v55  ;;  %3024 = vperm.xlu0 %8449, %v9253_v34   ;;  %vm501_vm13 = vcmp.ge.s32.totalorder %v469_v40, 1  ;;  %v9579_v55 = vld [vmem:[#allocation2 + $0xf7] sm:$0xff] }
 0x19d   : > { %v3079_v54 = vmul.f32 %v9227_v37, %v2930_v48  ;;  %3029 = vperm.xlu1 %8448, %v2902_v20   ;;  %v9577_v48 = vsel %vm501_vm13, 1.0, %v11647_v49 }
 0x19e   : > { %v3110_v56 = vadd.f32 %v3078_v13, %v2817_v46  ;;  %v9597_v46 = vld [vmem:[#allocation2 + $0xf8] sm:$0xff] }
 0x19f   : > { %v3111_v24 = vadd.f32 %v3079_v54, %v2818_v44  ;;  %v9551_v19 = vpop.permute.xlu0 %796 }
 0x1a0   : > { %v9549_v62 = vpop.permute.xlu1 %801  ;;  %11760 = vst [vmem:[#allocation62_spill] sm:$0xff] %v9551_v19  ;;  %v3149_v52 = vadd.f32 %v9251_v23, %v3110_v56  ;;  %1280 = vperm.xlu0 %8449, %v9547_v41   ;;  %v11781_v19 = vld [vmem:[#allocation58_spill] sm:$0xff] }
 0x1a1   : > { %11759 = vst [vmem:[#allocation61_spill] sm:$0xff] %v9549_v62  ;;  %v3150_v5 = vadd.f32 %v9251_v23, %v3111_v24  ;;  %1285 = vperm.xlu1 %8448, %v1198_v7   ;;  %v9586_v7 = vld [vmem:[#allocation2 + $0xff] sm:$0xff]  ;;  %v1506_v24 = vmul.f32 %v9579_v55, %v9343_v51  ;;  %v11775_v62 = vld [vmem:[#allocation34_spill] sm:$0xff] }
 0x1a2   : > { %v3181_v31 = vmax.f32 %v3149_v52, 0.0  ;;  %v2059_v52 = vmul.f32 %v9467_v12, %v9220_v21 }
 0x1a3   : > { %v3182_v29 = vmax.f32 %v3150_v5, 0.0  ;;  %v9559_v20 = vpop.permute.xlu0 %1057 }
 0x1a4   : > { %v9557_v34 = vpop.permute.xlu1 %1062  ;;  %11762 = vst [vmem:[#allocation25_spill] sm:$0xff] %v9559_v20  ;;  %1824 = vperm.xlu0 %8449, %v9423_v42   ;;  %v1696_v20 = vmul.f32 %v9145_v3, %v11781_v19  ;;  %v1956_v19 = vmul.f32 %v9160_v10, %v9194_v58  ;;  %v11786_v58 = vld [vmem:[#allocation26_spill] sm:$0xff] }
 0x1a5   : > { %11761 = vst [vmem:[#allocation24_spill] sm:$0xff] %v9557_v34  ;;  %1829 = vperm.xlu1 %8448, %v9421_v50   ;;  %v9562_v1 = vpack.c.bf16 %v3182_v29, %v3181_v31  ;;  %v1109_v34 = vmul.f32 %v9125_v38, %v11775_v62 }
 0x1a7   : > { %11763 = vst [vmem:[#allocation22_spill] sm:$0xff] %v9562_v1  ;;  %8112 = vmatpush3.bf16.msra.mxu0 %v9562_v1  ;;  %8144 = vmatpush3.bf16.msra.mxu1 %v9562_v1  ;;  %v9571_v45 = vpop.permute.xlu0 %1633  ;;  %v11774_v1 = vld [vmem:[#allocation33_spill] sm:$0xff] }
 0x1a8   : > { %v9569_v17 = vpop.permute.xlu1 %1638  ;;  %11765 = vst [vmem:[#allocation28_spill] sm:$0xff] %v9571_v45  ;;  %2400 = vperm.xlu0 %8449, %v2333_v32   ;;  %v9623_v32 = vld [vmem:[#allocation2 + $0x77] sm:$0xff]  ;;  %v1110_v59 = vmul.f32 %v9125_v38, %v11774_v1 }
 0x1a9   : > { %11764 = vst [vmem:[#allocation23_spill] sm:$0xff] %v9569_v17  ;;  %2405 = vperm.xlu1 %8448, %v9399_v8   ;;  %v661_v8 = vmul.f32 %v9579_v55, %v9577_v48  ;;  %v9650_v17 = vld [vmem:[#allocation2 + $0x78] sm:$0xff] }
 0x1ab   : > { %v9583_v11 = vpop.permute.xlu0 %2177 }
 0x1ac   : > { %v9581_v28 = vpop.permute.xlu1 %2182  ;;  %2944 = vperm.xlu0 %8449, %v9313_v18   ;;  %v421_v18 = vadd.s32 112, %v8560_v4 }
 0x1ad   : > { %2949 = vperm.xlu1 %8448, %v2886_v33  }
 0x1ae   : > { %v453_v5 = vand.u32 15, %v421_v18  ;;  %v9631_v18 = vld [vmem:[#allocation2 + $0x7f] sm:$0xff] }
 0x1af   : > { %v9592_v47 = vpop.permute.xlu0 %2721 }
 0x1b0   : > { %v9590_v44 = vpop.permute.xlu1 %2726  ;;  %816 = vperm.xlu0 %8449, %v661_v8   ;;  %vm485_vm14 = vcmp.ge.s32.totalorder %v453_v5, 1 }
 0x1b1   : > { %821 = vperm.xlu1 %8448, %v9586_v7   ;;  %v9621_v40 = vsel %vm485_vm14, 1.0, %v11647_v49 }
 0x1b3   : > { %v9601_v13 = vpop.permute.xlu0 %716 }
 0x1b4   : > { %v9599_v54 = vpop.permute.xlu1 %721  ;;  %11767 = vst [vmem:[#allocation41_spill] sm:$0xff] %v9601_v13  ;;  %1077 = vperm.xlu0 %8449, %v9597_v46   ;;  %v11778_v13 = vld [vmem:[#allocation32_spill] sm:$0xff] }
 0x1b5   : > { %11766 = vst [vmem:[#allocation29_spill] sm:$0xff] %v9599_v54  ;;  %1082 = vperm.xlu1 %8448, %v9595_v43   ;;  %v848_v1 = vmul.f32 %v9118_v61, %v11778_v13  ;;  %v11779_v54 = vld [vmem:[#allocation44_spill] sm:$0xff]  ;;  %v1490_v13 = vmul.f32 %v9623_v32, %v9389_v25 }
 0x1b7   : > { %v9610_v53 = vpop.permute.xlu0 %977 }
 0x1b8   : > { %v9608_v56 = vpop.permute.xlu1 %982  ;;  %11769 = vst [vmem:[#allocation51_spill] sm:$0xff] %v9610_v53  ;;  %1653 = vperm.xlu0 %8449, %v1506_v24   ;;  %v645_v24 = vmul.f32 %v9623_v32, %v9621_v40  ;;  %v438_v53 = vadd.s32 248, %v8560_v4 }
 0x1b9   : > { %11768 = vst [vmem:[#allocation42_spill] sm:$0xff] %v9608_v56  ;;  %1658 = vperm.xlu1 %8448, %v9586_v7   ;;  %v1402_v56 = vmul.f32 %v9140_v0, %v11779_v54 }
 0x1bb   : > { %v9617_v31 = vpop.permute.xlu0 %1553 }
 0x1bc   : > { %v9615_v29 = vpop.permute.xlu1 %1558  ;;  %11771 = vst [vmem:[#allocation70_spill] sm:$0xff] %v9617_v31  ;;  %2197 = vperm.xlu0 %8449, %v9489_v36  }
 0x1bd   : > { %11770 = vst [vmem:[#allocation52_spill] sm:$0xff] %v9615_v29  ;;  %2202 = vperm.xlu1 %8448, %v2059_v52   ;;  %v11777_v29 = vld [vmem:[#allocation43_spill] sm:$0xff] }
 0x1be   : > { %v1403_v45 = vmul.f32 %v9140_v0, %v11777_v29  ;;  %v1141_v29 = vadd.f32 %v1109_v34, %v848_v1 }
 0x1bf   : > { %v9627_v8 = vpop.permute.xlu0 %2097 }
 0x1c0   : > { %v9625_v33 = vpop.permute.xlu1 %2102  ;;  %11773 = vst [vmem:[#allocation30_spill] sm:$0xff] %v9627_v8  ;;  %2741 = vperm.xlu0 %8449, %v9363_v35   ;;  %v11776_v35 = vld [vmem:[#allocation31_spill] sm:$0xff] }
 0x1c1   : > { %11772 = vst [vmem:[#allocation71_spill] sm:$0xff] %v9625_v33  ;;  %2746 = vperm.xlu1 %8448, %v9361_v60   ;;  %v9644_v60 = vld [vmem:[#allocation2 + $0x80] sm:$0xff]  ;;  %v849_v31 = vmul.f32 %v9118_v61, %v11776_v35  ;;  %v11783_v8 = vld [vmem:[#allocation59_spill] sm:$0xff] }
 0x1c2   : > { %v1695_v33 = vmul.f32 %v9145_v3, %v11783_v8  ;;  %v2250_v8 = vmul.f32 %v9175_v9, %v9347_v63 }
 0x1c3   : > { %v9637_v52 = vpop.permute.xlu0 %2641 }
 0x1c4   : > { %v9635_v5 = vpop.permute.xlu1 %2646  ;;  %736 = vperm.xlu0 %8449, %v645_v24   ;;  %v1142_v24 = vadd.f32 %v1110_v59, %v849_v31  ;;  %v1957_v59 = vmul.f32 %v9160_v10, %v9192_v30  ;;  %v470_v31 = vand.u32 15, %v438_v53  ;;  %v2249_v30 = vmul.f32 %v9175_v9, %v9349_v39 }
 0x1c5   : > { %741 = vperm.xlu1 %8448, %v9631_v18   ;;  %v2543_v53 = vmul.f32 %v9188_v26, %v11786_v58 }
 0x1c6   : > { %v1435_v54 = vadd.f32 %v1403_v45, %v1142_v24  ;;  %v2043_v45 = vmul.f32 %v9540_v22, %v9298_v2  ;;  %vm566_vm15 = vcmp.le.s32.totalorder %v470_v31, 14 }
 0x1c7   : > { %v9661_v35 = vpop.permute.xlu0 %1350 }
 0x1c8   : > { %v9657_v62 = vpop.permute.xlu1 %1355  ;;  %11782 = vst [vmem:[#allocation33_spill] sm:$0xff] %v9661_v35  ;;  %997 = vperm.xlu0 %8449, %v9650_v17   ;;  %v1728_v34 = vadd.f32 %v1696_v20, %v1435_v54 }
 0x1c9   : > { %11780 = vst [vmem:[#allocation18_spill] sm:$0xff] %v9657_v62  ;;  %1002 = vperm.xlu1 %8448, %v9644_v60   ;;  %v1434_v62 = vadd.f32 %v1402_v56, %v1141_v29  ;;  %v11787_v29 = vld [vmem:[#allocation27_spill] sm:$0xff] }
 0x1ca   : > { %v1989_v56 = vadd.f32 %v1957_v59, %v1728_v34  ;;  %v2542_v63 = vmul.f32 %v9188_v26, %v11787_v29  ;;  %v9700_v59 = vld [vmem:[#allocation2 + $0x101] sm:$0xff] }
 0x1cb   : > { %v9677_v1 = vpop.permute.xlu0 %1894  ;;  %v1727_v24 = vadd.f32 %v1695_v33, %v1434_v62  ;;  %v2803_v62 = vmul.f32 %v9201_v14, %v9592_v47 }
 0x1cc   : > { %v9673_v35 = vpop.permute.xlu1 %1899  ;;  %11785 = vst [vmem:[#allocation31_spill] sm:$0xff] %v9677_v1  ;;  %1573 = vperm.xlu0 %8449, %v1490_v13   ;;  %v2282_v1 = vadd.f32 %v2250_v8, %v1989_v56  ;;  %v9698_v13 = vsel %vm566_vm15, 1.0, %v11647_v49  ;;  %v11789_v8 = vld [vmem:[#allocation39_spill] sm:$0xff]  ;;  %v11790_v56 = vld [vmem:[#allocation40_spill] sm:$0xff] }
 0x1cd   : > { %11784 = vst [vmem:[#allocation34_spill] sm:$0xff] %v9673_v35  ;;  %1578 = vperm.xlu1 %8448, %v9631_v18   ;;  %v1988_v20 = vadd.f32 %v1956_v19, %v1727_v24  ;;  %v2804_v35 = vmul.f32 %v9201_v14, %v9590_v44  ;;  %11788 = vst [vmem:[#allocation43_spill] sm:$0xff] %v9698_v13  ;;  %v1094_v44 = vmul.f32 %v9125_v38, %v11789_v8 }
 0x1ce   : > { %v2575_v31 = vadd.f32 %v2543_v53, %v2282_v1  ;;  %v1216_v47 = vmul.f32 %v9700_v59, %v9698_v13  ;;  %v1093_v58 = vmul.f32 %v9125_v38, %v11790_v56  ;;  %v11791_v53 = vld [vmem:[#allocation37_spill] sm:$0xff]  ;;  %v11794_v38 = vld [vmem:[#allocation50_spill] sm:$0xff]  ;;  %v11795_v56 = vld [vmem:[#allocation67_spill] sm:$0xff] }
 0x1cf   : > { %v9692_v33 = vpop.permute.xlu0 %2470  ;;  %v2281_v39 = vadd.f32 %v2249_v30, %v1988_v20  ;;  %v833_v29 = vmul.f32 %v9118_v61, %v11791_v53  ;;  %v1680_v53 = vmul.f32 %v9145_v3, %v11795_v56 }
 0x1d0   : > { %v9688_v54 = vpop.permute.xlu1 %2475  ;;  %2117 = vperm.xlu0 %8449, %v9547_v41   ;;  %v2836_v24 = vadd.f32 %v2804_v35, %v2575_v31  ;;  %v11792_v35 = vld [vmem:[#allocation49_spill] sm:$0xff]  ;;  %v9716_v31 = vld [vmem:[#allocation2 + $0xf9] sm:$0xff] }
 0x1d1   : > { %2122 = vperm.xlu1 %8448, %v2043_v45   ;;  %v2574_v19 = vadd.f32 %v2542_v63, %v2281_v39  ;;  %v1387_v63 = vmul.f32 %v9140_v0, %v11792_v35 }
 0x1d3   : > { %v3015_v30 = vpop.permute.xlu0 %3014  ;;  %v2835_v20 = vadd.f32 %v2803_v62, %v2574_v19  ;;  %v1386_v62 = vmul.f32 %v9140_v0, %v11794_v38  ;;  %v11798_v38 = vld [vmem:[#allocation79_spill] sm:$0xff] }
 0x1d4   : > { %v3020_v34 = vpop.permute.xlu1 %3019  ;;  %v3096_v1 = vmul.f32 %v9227_v37, %v3015_v30  ;;  %2661 = vperm.xlu0 %8449, %v9423_v42   ;;  %v1126_v42 = vadd.f32 %v1094_v44, %v833_v29 }
 0x1d5   : > { %v3097_v45 = vmul.f32 %v9227_v37, %v3020_v34  ;;  %2666 = vperm.xlu1 %8448, %v9421_v50   ;;  %v422_v50 = vadd.s32 120, %v8560_v4  ;;  %v11793_v34 = vld [vmem:[#allocation38_spill] sm:$0xff]  ;;  %v11796_v4 = vld [vmem:[#allocation68_spill] sm:$0xff] }
 0x1d6   : > { %v832_v8 = vmul.f32 %v9118_v61, %v11793_v34  ;;  %v3128_v19 = vadd.f32 %v3096_v1, %v2835_v20  ;;  %v1679_v13 = vmul.f32 %v9145_v3, %v11796_v4  ;;  %v1419_v0 = vadd.f32 %v1387_v63, %v1126_v42  ;;  %v11797_v20 = vld [vmem:[#allocation78_spill] sm:$0xff] }
 0x1d7   : > { %v3129_v39 = vadd.f32 %v3097_v45, %v2836_v24  ;;  %v9728_v24 = vpop.permute.xlu0 %1270  ;;  %v1941_v44 = vmul.f32 %v9160_v10, %v11797_v20  ;;  %v454_v29 = vand.u32 15, %v422_v50 }
 0x1d8   : > { %v9723_v30 = vpop.permute.xlu1 %1275  ;;  %v1125_v45 = vadd.f32 %v1093_v58, %v832_v8  ;;  %v3167_v61 = vadd.f32 %v9251_v23, %v3128_v19  ;;  %1370 = vperm.xlu0 %8449, %v9716_v31   ;;  %v1712_v58 = vadd.f32 %v1680_v53, %v1419_v0  ;;  %v11800_v8 = vld [vmem:[#allocation89_spill] sm:$0xff]  ;;  %v11802_v19 = vld [vmem:[#allocation90_spill] sm:$0xff]  ;;  %v2527_v53 = vmul.f32 %v9188_v26, %v9526_v16 }
 0x1d9   : > { %v3168_v35 = vadd.f32 %v9251_v23, %v3129_v39  ;;  %1375 = vperm.xlu1 %8448, %v1216_v47   ;;  %v1940_v39 = vmul.f32 %v9160_v10, %v11798_v38  ;;  %v2234_v4 = vmul.f32 %v9175_v9, %v11800_v8  ;;  %v2233_v42 = vmul.f32 %v9175_v9, %v11802_v19  ;;  %v11804_v10 = vld [vmem:[#allocation60_spill] sm:$0xff]  ;;  %v11805_v16 = vld [vmem:[#allocation45_spill] sm:$0xff] }
 0x1da   : > { %v1418_v34 = vadd.f32 %v1386_v62, %v1125_v45  ;;  %v3199_v56 = vmax.f32 %v3167_v61, 0.0  ;;  %v2351_v62 = vmul.f32 %v9579_v55, %v11804_v10  ;;  %vm550_vm1 = vcmp.le.s32.totalorder %v454_v29, 14 }
 0x1db   : > { %v3200_v1 = vmax.f32 %v3168_v35, 0.0  ;;  %v9742_v3 = vpop.permute.xlu0 %1814  ;;  %v1973_v35 = vadd.f32 %v1941_v44, %v1712_v58  ;;  %v2526_v61 = vmul.f32 %v9188_v26, %v9528_v27  ;;  %v2788_v0 = vmul.f32 %v9201_v14, %v9635_v5  ;;  %v9779_v58 = vld [vmem:[#allocation2 + $0x79] sm:$0xff] }
 0x1dc   : > { %v9738_v47 = vpop.permute.xlu1 %1819  ;;  %11801 = vst [vmem:[#allocation44_spill] sm:$0xff] %v9742_v3  ;;  %v1711_v63 = vadd.f32 %v1679_v13, %v1418_v34  ;;  %1914 = vperm.xlu0 %8449, %v9597_v46   ;;  %v2904_v20 = vmul.f32 %v9467_v12, %v11805_v16  ;;  %v2787_v26 = vmul.f32 %v9201_v14, %v9637_v52  ;;  %v9770_v27 = vsel %vm550_vm1, 1.0, %v11647_v49  ;;  %v1476_v16 = vld [vmem:[#allocation2 + $0x107] sm:$0xff] }
 0x1dd   : > { %11799 = vst [vmem:[#allocation32_spill] sm:$0xff] %v9738_v47  ;;  %1919 = vperm.xlu1 %8448, %v9595_v43   ;;  %v9748_v50 = vpack.c.bf16 %v3200_v1, %v3199_v56  ;;  %v2266_v13 = vadd.f32 %v2234_v4, %v1973_v35  ;;  %v9772_v1 = vld [vmem:[#allocation2 + $0x81] sm:$0xff] }
 0x1de   : > { %v1972_v45 = vadd.f32 %v1940_v39, %v1711_v63  ;;  %v1200_v12 = vmul.f32 %v9772_v1, %v9770_v27 }
 0x1df   : > { %11803 = vst [vmem:[#allocation58_spill] sm:$0xff] %v9748_v50  ;;  %8114 = vmatprep.subr.bf16.mxu0 %v9748_v50  ;;  %8146 = vmatprep.subr.bf16.mxu1 %v9748_v50  ;;  %v9762_v55 = vpop.permute.xlu0 %2390  ;;  %v2559_v29 = vadd.f32 %v2527_v53, %v2266_v13  ;;  %v11808_v53 = vld [vmem:[#allocation69_spill] sm:$0xff] }
 0x1e0   : > { %v9758_v9 = vpop.permute.xlu1 %2395  ;;  %v2265_v44 = vadd.f32 %v2233_v42, %v1972_v45  ;;  %2490 = vperm.xlu0 %8449, %v2351_v62   ;;  %v2335_v45 = vmul.f32 %v9623_v32, %v11808_v53  ;;  %v11810_v13 = vld [vmem:[#allocation53_spill] sm:$0xff]  ;;  %v1477_v32 = vld [vmem:[#allocation2 + $0x10f] sm:$0xff] }
 0x1e1   : > { %2495 = vperm.xlu1 %8448, %v9586_v7   ;;  %v2820_v38 = vadd.f32 %v2788_v0, %v2559_v29  ;;  %v2888_v0 = vmul.f32 %v9540_v22, %v11810_v13 }
 0x1e2   : > { %v2558_v34 = vadd.f32 %v2526_v61, %v2265_v44 }
 0x1e3   : > { %v2935_v7 = vpop.permute.xlu0 %2934 }
 0x1e4   : > { %v2940_v5 = vpop.permute.xlu1 %2939  ;;  %v2819_v56 = vadd.f32 %v2787_v26, %v2558_v34  ;;  %v3080_v14 = vmul.f32 %v9227_v37, %v2935_v7  ;;  %3034 = vperm.xlu0 %8449, %v9489_v36   ;;  %v1508_v26 = vmul.f32 %v1476_v16, %v9577_v48 }
 0x1e5   : > { %v3081_v39 = vmul.f32 %v9227_v37, %v2940_v5  ;;  %3039 = vperm.xlu1 %8448, %v2904_v20  }
 0x1e6   : > { %v3112_v8 = vadd.f32 %v3080_v14, %v2819_v56 }
 0x1e7   : > { %v3113_v52 = vadd.f32 %v3081_v39, %v2820_v38  ;;  %v9784_v19 = vpop.permute.xlu0 %806 }
 0x1e8   : > { %v9781_v4 = vpop.permute.xlu1 %811  ;;  %11806 = vst [vmem:[#allocation59_spill] sm:$0xff] %v9784_v19  ;;  %v3151_v42 = vadd.f32 %v9251_v23, %v3112_v8  ;;  %1290 = vperm.xlu0 %8449, %v9779_v58   ;;  %v2045_v8 = vmul.f32 %v9772_v1, %v9533_v57  ;;  %v11827_v19 = vld [vmem:[#allocation17_spill] sm:$0xff] }
 0x1e9   : > { %v3152_v63 = vadd.f32 %v9251_v23, %v3113_v52  ;;  %1295 = vperm.xlu1 %8448, %v1200_v12   ;;  %v9832_v12 = vld [vmem:[#allocation2 + $0x8f] sm:$0xff] }
 0x1ea   : > { %v3183_v62 = vmax.f32 %v3151_v42, 0.0  ;;  %v9853_v42 = vld [vmem:[%s11551_s1 + $0x1] ss:$0 sm:$0xff] }
 0x1eb   : > { %v3184_v10 = vmax.f32 %v3152_v63, 0.0  ;;  %v9790_v36 = vpop.permute.xlu0 %1067 }
 0x1ec   : > { %v9788_v37 = vpop.permute.xlu1 %1072  ;;  %1834 = vperm.xlu0 %8449, %v9650_v17  }
 0x1ed   : > { %1839 = vperm.xlu1 %8448, %v9644_v60   ;;  %v9794_v35 = vpack.c.bf16 %v3184_v10, %v3183_v62  ;;  %v11816_v10 = vld [vmem:[#allocation56_spill] sm:$0xff] }
 0x1ee   : > { %v1112_v62 = vmul.f32 %v9853_v42, %v11816_v10 }
 0x1ef   : > { %11807 = vst [vmem:[#allocation26_spill] sm:$0xff] %v9794_v35  ;;  %8116 = vmatpush3.bf16.msra.mxu0 %v9794_v35  ;;  %8148 = vmatpush3.bf16.msra.mxu1 %v9794_v35  ;;  %v9802_v61 = vpop.permute.xlu0 %1643  ;;  %v11821_v35 = vld [vmem:[#allocation75_spill] sm:$0xff] }
 0x1f0   : > { %v9800_v23 = vpop.permute.xlu1 %1648  ;;  %2410 = vperm.xlu0 %8449, %v2335_v45   ;;  %v11817_v45 = vld [vmem:[#allocation57_spill] sm:$0xff] }
 0x1f1   : > { %11809 = vst [vmem:[#allocation27_spill] sm:$0xff] %v9800_v23  ;;  %2415 = vperm.xlu1 %8448, %v9631_v18   ;;  %v11813_v18 = vld [vmem:[#allocation35_spill] sm:$0xff]  ;;  %v1111_v13 = vmul.f32 %v9853_v42, %v11817_v45  ;;  %v9879_v45 = vld [vmem:[#allocation2 + $0x108] sm:$0xff] }
 0x1f2   : > { %v2061_v22 = vmul.f32 %v9700_v59, %v11813_v18 }
 0x1f3   : > { %v9809_v44 = vpop.permute.xlu0 %2187 }
 0x1f4   : > { %v9807_v20 = vpop.permute.xlu1 %2192  ;;  %11812 = vst [vmem:[#allocation40_spill] sm:$0xff] %v9809_v44  ;;  %2954 = vperm.xlu0 %8449, %v9547_v41   ;;  %v9824_v41 = vld [vmem:[#allocation2 + $0x87] sm:$0xff] }
 0x1f5   : > { %11811 = vst [vmem:[#allocation39_spill] sm:$0xff] %v9807_v20  ;;  %2959 = vperm.xlu1 %8448, %v2888_v0   ;;  %v1492_v56 = vmul.f32 %v9824_v41, %v9621_v40  ;;  %v9863_v0 = vld [vmem:[#allocation2 + $0x110] sm:$0xff]  ;;  %v11826_v20 = vld [vmem:[#allocation16_spill] sm:$0xff] }
 0x1f7   : > { %v9815_v34 = vpop.permute.xlu0 %2731 }
 0x1f8   : > { %v9813_v29 = vpop.permute.xlu1 %2736  ;;  %1663 = vperm.xlu0 %8449, %v1508_v26   ;;  %v9868_v26 = vld [vmem:[%s11551_s1] ss:$0 sm:$0xff] }
 0x1f9   : > { %1668 = vperm.xlu1 %8448, %v1477_v32  }
 0x1fb   : > { %v9821_v38 = vpop.permute.xlu0 %726 }
 0x1fc   : > { %v9819_v5 = vpop.permute.xlu1 %731  ;;  %2207 = vperm.xlu0 %8449, %v9716_v31  }
 0x1fd   : > { %2212 = vperm.xlu1 %8448, %v2061_v22   ;;  %v11818_v22 = vld [vmem:[#allocation54_spill] sm:$0xff] }
 0x1ff   : > { %v9828_v7 = vpop.permute.xlu0 %987 }
 0x200   : > { %v9826_v39 = vpop.permute.xlu1 %992  ;;  %2751 = vperm.xlu0 %8449, %v9597_v46  }
 0x201   : > { %2756 = vperm.xlu1 %8448, %v9595_v43  }
 0x203   : > { %v9838_v52 = vpop.permute.xlu0 %1563 }
 0x204   : > { %v9836_v14 = vpop.permute.xlu1 %1568  ;;  %1583 = vperm.xlu0 %8449, %v1492_v56   ;;  %v851_v56 = vmul.f32 %v9868_v26, %v11818_v22  ;;  %v9890_v22 = vld [vmem:[%s11551_s1 + $0x3] ss:$0 sm:$0xff] }
 0x205   : > { %1588 = vperm.xlu1 %8448, %v9832_v12  }
 0x207   : > { %v9845_v43 = vpop.permute.xlu0 %2107 }
 0x208   : > { %v9843_v63 = vpop.permute.xlu1 %2112  ;;  %11815 = vst [vmem:[#allocation49_spill] sm:$0xff] %v9845_v43  ;;  %2127 = vperm.xlu0 %8449, %v9779_v58   ;;  %v1144_v43 = vadd.f32 %v1112_v62, %v851_v56  ;;  %v9904_v56 = vld [vmem:[%s11551_s1 + $0x4] ss:$0 sm:$0xff] }
 0x209   : > { %11814 = vst [vmem:[#allocation37_spill] sm:$0xff] %v9843_v63  ;;  %2132 = vperm.xlu1 %8448, %v2045_v8   ;;  %v9875_v8 = vld [vmem:[%s11551_s1 + $0x2] ss:$0 sm:$0xff] }
 0x20a   : > { %v1404_v50 = vmul.f32 %v9875_v8, %v11821_v35  ;;  %v11823_v63 = vld [vmem:[#allocation73_spill] sm:$0xff]  ;;  %v2353_v35 = vmul.f32 %v1476_v16, %v9343_v51 }
 0x20b   : > { %v9857_v53 = vpop.permute.xlu0 %2651  ;;  %v1698_v3 = vmul.f32 %v9890_v22, %v11823_v63  ;;  %v1959_v63 = vmul.f32 %v9904_v56, %v11826_v20  ;;  %v9915_v51 = vld [vmem:[%s11551_s1 + $0x5] ss:$0 sm:$0xff]  ;;  %v9928_v20 = vld [vmem:[%s11551_s1 + $0x6] ss:$0 sm:$0xff] }
 0x20c   : > { %v9848_v46 = vpop.permute.xlu1 %2656  ;;  %2671 = vperm.xlu0 %8449, %v9650_v17   ;;  %v11820_v17 = vld [vmem:[#allocation55_spill] sm:$0xff]  ;;  %v2252_v16 = vmul.f32 %v9915_v51, %v9581_v28  ;;  %v2545_v28 = vmul.f32 %v9928_v20, %v9688_v54 }
 0x20d   : > { %2676 = vperm.xlu1 %8448, %v9644_v60   ;;  %v11819_v60 = vld [vmem:[#allocation74_spill] sm:$0xff]  ;;  %v850_v49 = vmul.f32 %v9868_v26, %v11820_v17  ;;  %v11825_v17 = vld [vmem:[#allocation15_spill] sm:$0xff] }
 0x20e   : > { %v1405_v10 = vmul.f32 %v9875_v8, %v11819_v60  ;;  %v1697_v44 = vmul.f32 %v9890_v22, %v11825_v17 }
 0x20f   : > { %v9894_v60 = vpop.permute.xlu0 %1360  ;;  %v1143_v47 = vadd.f32 %v1111_v13, %v850_v49  ;;  %v1958_v49 = vmul.f32 %v9904_v56, %v11827_v19  ;;  %v2251_v19 = vmul.f32 %v9915_v51, %v9583_v11  ;;  %v9939_v11 = vld [vmem:[%s11551_s1 + $0x7] ss:$0 sm:$0xff] }
 0x210   : > { %v9885_v23 = vpop.permute.xlu1 %1365  ;;  %11824 = vst [vmem:[#allocation50_spill] sm:$0xff] %v9894_v60  ;;  %1924 = vperm.xlu0 %8449, %v9879_v45   ;;  %v1437_v62 = vadd.f32 %v1405_v10, %v1144_v43  ;;  %v2805_v54 = vmul.f32 %v9939_v11, %v9815_v34 }
 0x211   : > { %11822 = vst [vmem:[#allocation38_spill] sm:$0xff] %v9885_v23  ;;  %1929 = vperm.xlu1 %8448, %v9863_v0   ;;  %v1436_v60 = vadd.f32 %v1404_v50, %v1143_v47  ;;  %v2906_v47 = vmul.f32 %v9700_v59, %v9220_v21  ;;  %v2806_v59 = vmul.f32 %v9939_v11, %v9813_v29 }
 0x212   : > { %v1730_v17 = vadd.f32 %v1698_v3, %v1437_v62 }
 0x213   : > { %v9919_v43 = vpop.permute.xlu0 %1904  ;;  %v1729_v50 = vadd.f32 %v1697_v44, %v1436_v60 }
 0x214   : > { %v9910_v13 = vpop.permute.xlu1 %1909  ;;  %2500 = vperm.xlu0 %8449, %v2353_v35   ;;  %v1991_v3 = vadd.f32 %v1959_v63, %v1730_v17  ;;  %v9950_v63 = vld [vmem:[#allocation2 + $0x88] sm:$0xff] }
 0x215   : > { %11828 = vst [vmem:[#allocation67_spill] sm:$0xff] %v9910_v13  ;;  %2505 = vperm.xlu1 %8448, %v1477_v32   ;;  %v1990_v10 = vadd.f32 %v1958_v49, %v1729_v50  ;;  %v2544_v32 = vmul.f32 %v9928_v20, %v9692_v33  ;;  %v9948_v33 = vld [vmem:[#allocation2 + $0x90] sm:$0xff] }
 0x216   : > { %v2284_v21 = vadd.f32 %v2252_v16, %v1991_v3  ;;  %v11831_v16 = vld [vmem:[#allocation65_spill] sm:$0xff] }
 0x217   : > { %v9943_v44 = vpop.permute.xlu0 %2480  ;;  %v2283_v60 = vadd.f32 %v2251_v19, %v1990_v10  ;;  %v1096_v50 = vmul.f32 %v9853_v42, %v11831_v16  ;;  %v11835_v16 = vld [vmem:[#allocation64_spill] sm:$0xff] }
 0x218   : > { %v9934_v62 = vpop.permute.xlu1 %2485  ;;  %11830 = vst [vmem:[#allocation78_spill] sm:$0xff] %v9943_v44  ;;  %3044 = vperm.xlu0 %8449, %v9716_v31   ;;  %v2577_v35 = vadd.f32 %v2545_v28, %v2284_v21  ;;  %v11832_v31 = vld [vmem:[#allocation66_spill] sm:$0xff]  ;;  %v11833_v21 = vld [vmem:[#allocation63_spill] sm:$0xff]  ;;  %v834_v13 = vmul.f32 %v9868_v26, %v11835_v16  ;;  %v11836_v44 = vld [vmem:[#allocation77_spill] sm:$0xff] }
 0x219   : > { %11829 = vst [vmem:[#allocation68_spill] sm:$0xff] %v9934_v62  ;;  %3049 = vperm.xlu1 %8448, %v2906_v47   ;;  %v2576_v49 = vadd.f32 %v2544_v32, %v2283_v60  ;;  %v9957_v47 = vld [vmem:[%s11551_s1 + $0x8] ss:$0 sm:$0xff]  ;;  %v1095_v3 = vmul.f32 %v9853_v42, %v11832_v31  ;;  %v2337_v32 = vmul.f32 %v9824_v41, %v9389_v25  ;;  %v11834_v60 = vld [vmem:[#allocation76_spill] sm:$0xff]  ;;  %v11837_v62 = vld [vmem:[#allocation87_spill] sm:$0xff] }
 0x21a   : > { %v2838_v29 = vadd.f32 %v2806_v59, %v2577_v35  ;;  %v835_v59 = vmul.f32 %v9868_v26, %v11833_v21  ;;  %v1389_v35 = vmul.f32 %v9875_v8, %v11834_v60  ;;  %v1682_v25 = vmul.f32 %v9890_v22, %v11837_v62  ;;  %v9982_v41 = vld [vmem:[%s11552_s2] ss:$0 sm:$0xff]  ;;  %v9993_v21 = vld [vmem:[#allocation2 + $0x111] sm:$0xff] }
 0x21b   : > { %v3025_v19 = vpop.permute.xlu0 %3024  ;;  %v2837_v28 = vadd.f32 %v2805_v54, %v2576_v49  ;;  %v1388_v54 = vmul.f32 %v9875_v8, %v11836_v44  ;;  %v2890_v44 = vmul.f32 %v9772_v1, %v9298_v2  ;;  %v1943_v60 = vmul.f32 %v9904_v56, %v9506_v6  ;;  %v11841_v6 = vld [vmem:[#allocation30_spill] sm:$0xff] }
 0x21c   : > { %v3030_v17 = vpop.permute.xlu1 %3029  ;;  %v3098_v10 = vmul.f32 %v9957_v47, %v3025_v19  ;;  %1844 = vperm.xlu0 %8449, %v9950_v63   ;;  %v1128_v31 = vadd.f32 %v1096_v50, %v835_v59 }
 0x21d   : > { %v3099_v34 = vmul.f32 %v9957_v47, %v3030_v17  ;;  %1849 = vperm.xlu1 %8448, %v9948_v33  }
 0x21e   : > { %v3130_v49 = vadd.f32 %v3098_v10, %v2837_v28  ;;  %v1127_v28 = vadd.f32 %v1095_v3, %v834_v13  ;;  %v11838_v10 = vld [vmem:[#allocation88_spill] sm:$0xff]  ;;  %v1421_v59 = vadd.f32 %v1389_v35, %v1128_v31  ;;  %v11839_v13 = vld [vmem:[#allocation71_spill] sm:$0xff] }
 0x21f   : > { %v3131_v17 = vadd.f32 %v3099_v34, %v2838_v29  ;;  %v9985_v34 = vpop.permute.xlu0 %1280  ;;  %v1681_v50 = vmul.f32 %v9890_v22, %v11838_v10  ;;  %v2236_v3 = vmul.f32 %v9915_v51, %v11839_v13 }
 0x220   : > { %v9975_v19 = vpop.permute.xlu1 %1285  ;;  %v3169_v62 = vadd.f32 %v9982_v41, %v3130_v49  ;;  %2420 = vperm.xlu0 %8449, %v2337_v32   ;;  %v1420_v16 = vadd.f32 %v1388_v54, %v1127_v28  ;;  %v1714_v1 = vadd.f32 %v1682_v25, %v1421_v59  ;;  %v11840_v32 = vld [vmem:[#allocation43_spill] sm:$0xff]  ;;  %v2235_v54 = vmul.f32 %v9915_v51, %v11841_v6  ;;  %v10014_v28 = vld [vmem:[#allocation2 + $0x109] sm:$0xff] }
 0x221   : > { %v3170_v29 = vadd.f32 %v9982_v41, %v3131_v17  ;;  %2425 = vperm.xlu1 %8448, %v9832_v12   ;;  %v1942_v12 = vmul.f32 %v9904_v56, %v9508_v15  ;;  %v2063_v35 = vmul.f32 %v9993_v21, %v11840_v32  ;;  %v2529_v25 = vmul.f32 %v9928_v20, %v9758_v9 }
 0x222   : > { %v3201_v23 = vmax.f32 %v3169_v62, 0.0  ;;  %v1713_v31 = vadd.f32 %v1681_v50, %v1420_v16  ;;  %v1975_v15 = vadd.f32 %v1943_v60, %v1714_v1  ;;  %v2789_v59 = vmul.f32 %v9939_v11, %v9857_v53 }
 0x223   : > { %v3202_v17 = vmax.f32 %v3170_v29, 0.0  ;;  %v10003_v49 = vpop.permute.xlu0 %1824 }
 0x224   : > { %v9999_v2 = vpop.permute.xlu1 %1829  ;;  %2964 = vperm.xlu0 %8449, %v9779_v58   ;;  %v1974_v10 = vadd.f32 %v1942_v12, %v1713_v31  ;;  %v2790_v58 = vmul.f32 %v9939_v11, %v9848_v46  ;;  %v2014_v31 = vld [vmem:[#allocation2 + $0x89] sm:$0xff] }
 0x225   : > { %2969 = vperm.xlu1 %8448, %v2890_v44   ;;  %v10009_v29 = vpack.c.bf16 %v3202_v17, %v3201_v23  ;;  %v2528_v44 = vmul.f32 %v9928_v20, %v9762_v55  ;;  %v2268_v23 = vadd.f32 %v2236_v3, %v1975_v15  ;;  %v10029_v55 = vld [vmem:[#allocation2 + $0x91] sm:$0xff] }
 0x226   : > { %v2267_v9 = vadd.f32 %v2235_v54, %v1974_v10  ;;  %v2047_v46 = vmul.f32 %v10029_v55, %v9770_v27 }
 0x227   : > { %8118 = vmatprep.subr.bf16.mxu0 %v10009_v29  ;;  %8150 = vmatprep.subr.bf16.mxu1 %v10009_v29  ;;  %v10024_v62 = vpop.permute.xlu0 %2400  ;;  %v2561_v60 = vadd.f32 %v2529_v25, %v2268_v23  ;;  %v11842_v23 = vld [vmem:[#allocation25_spill] sm:$0xff] }
 0x228   : > { %v10020_v50 = vpop.permute.xlu1 %2405  ;;  %2217 = vperm.xlu0 %8449, %v10014_v28   ;;  %v2560_v17 = vadd.f32 %v2528_v44, %v2267_v9 }
 0x229   : > { %2222 = vperm.xlu1 %8448, %v2063_v35   ;;  %v2822_v12 = vadd.f32 %v2790_v58, %v2561_v60  ;;  %v1115_v58 = vmul.f32 %v9853_v42, %v11842_v23  ;;  %v11843_v60 = vld [vmem:[#allocation62_spill] sm:$0xff] }
 0x22a   : > { %v2821_v3 = vadd.f32 %v2789_v59, %v2560_v17 }
 0x22b   : > { %v2945_v13 = vpop.permute.xlu0 %2944 }
 0x22c   : > { %v2950_v16 = vpop.permute.xlu1 %2949  ;;  %v3082_v35 = vmul.f32 %v9957_v47, %v2945_v13  ;;  %2761 = vperm.xlu0 %8449, %v9879_v45   ;;  %v854_v45 = vmul.f32 %v9868_v26, %v11843_v60  ;;  %v11844_v13 = vld [vmem:[#allocation33_spill] sm:$0xff] }
 0x22d   : > { %v3083_v1 = vmul.f32 %v9957_v47, %v2950_v16  ;;  %2766 = vperm.xlu1 %8448, %v9863_v0   ;;  %v2323_v0 = vld [vmem:[#allocation2 + $0x117] sm:$0xff] }
 0x22e   : > { %v3114_v6 = vadd.f32 %v3082_v35, %v2821_v3 }
 0x22f   : > { %v3115_v53 = vadd.f32 %v3083_v1, %v2822_v12  ;;  %v817_v25 = vpop.permute.xlu0 %816  ;;  %v2355_v1 = vmul.f32 %v2323_v0, %v9577_v48 }
 0x230   : > { %v822_v54 = vpop.permute.xlu1 %821  ;;  %v3153_v10 = vadd.f32 %v9982_v41, %v3114_v6  ;;  %2137 = vperm.xlu0 %8449, %v2014_v31   ;;  %v858_v35 = vmul.f32 %v9868_v26, %v817_v25  ;;  %v2324_v6 = vld [vmem:[#allocation2 + $0x11f] sm:$0xff] }
 0x231   : > { %v3154_v15 = vadd.f32 %v9982_v41, %v3115_v53  ;;  %2142 = vperm.xlu1 %8448, %v2047_v46   ;;  %v859_v17 = vmul.f32 %v9868_v26, %v822_v54  ;;  %v1408_v46 = vmul.f32 %v9875_v8, %v11844_v13 }
 0x232   : > { %v3185_v9 = vmax.f32 %v3153_v10, 0.0 }
 0x233   : > { %v3186_v44 = vmax.f32 %v3154_v15, 0.0  ;;  %v1078_v12 = vpop.permute.xlu0 %1077  ;;  %v1147_v15 = vadd.f32 %v1115_v58, %v854_v45  ;;  %v2308_v45 = vld [vmem:[#allocation2 + $0x9f] sm:$0xff] }
 0x234   : > { %v1083_v59 = vpop.permute.xlu1 %1082  ;;  %v1119_v53 = vmul.f32 %v9853_v42, %v1078_v12  ;;  %2681 = vperm.xlu0 %8449, %v9950_v63   ;;  %v2908_v63 = vmul.f32 %v9993_v21, %v11813_v18  ;;  %v11845_v12 = vld [vmem:[#allocation42_spill] sm:$0xff] }
 0x235   : > { %v1120_v16 = vmul.f32 %v9853_v42, %v1083_v59  ;;  %2686 = vperm.xlu1 %8448, %v9948_v33   ;;  %v10049_v3 = vpack.c.bf16 %v3186_v44, %v3185_v9  ;;  %v1701_v33 = vmul.f32 %v9890_v22, %v9802_v61  ;;  %v1440_v0 = vadd.f32 %v1408_v46, %v1147_v15  ;;  %v2307_v61 = vld [vmem:[#allocation2 + $0x97] sm:$0xff] }
 0x236   : > { %v10058_v10 = vadd.f32 %v1119_v53, %v858_v35  ;;  %v1962_v44 = vmul.f32 %v9904_v56, %v9919_v43  ;;  %v2617_v35 = vld [vmem:[#allocation2 + $0x120] sm:$0xff]  ;;  %v11848_v15 = vld [vmem:[#allocation51_spill] sm:$0xff] }
 0x237   : > { %v10054_v54 = vadd.f32 %v1120_v16, %v859_v17  ;;  %8120 = vmatpush3.bf16.msra.mxu0 %v10049_v3  ;;  %8152 = vmatpush3.bf16.msra.mxu1 %v10049_v3  ;;  %v10064_v25 = vpop.permute.xlu0 %1653  ;;  %v1733_v23 = vadd.f32 %v1701_v33, %v1440_v0  ;;  %v2339_v17 = vmul.f32 %v2307_v61, %v9621_v40  ;;  %v11847_v53 = vld [vmem:[#allocation41_spill] sm:$0xff] }
 0x238   : > { %v10062_v48 = vpop.permute.xlu1 %1658  ;;  %2510 = vperm.xlu0 %8449, %v2355_v1   ;;  %v2892_v16 = vmul.f32 %v10029_v55, %v9533_v57  ;;  %v1100_v1 = vmul.f32 %v9853_v42, %v11845_v12  ;;  %v1099_v33 = vmul.f32 %v9853_v42, %v11848_v15  ;;  %v1102_v57 = vmul.f32 %v9853_v42, %v9826_v39  ;;  %v2616_v55 = vld [vmem:[#allocation2 + $0x118] sm:$0xff] }
 0x239   : > { %2515 = vperm.xlu1 %8448, %v2324_v6   ;;  %v1994_v59 = vadd.f32 %v1962_v44, %v1733_v23  ;;  %v838_v6 = vmul.f32 %v9868_v26, %v11847_v53  ;;  %v1393_v0 = vmul.f32 %v9875_v8, %v9723_v30  ;;  %v1392_v44 = vmul.f32 %v9875_v8, %v9728_v24  ;;  %v2878_v30 = vld [vmem:[#allocation2 + $0x121] sm:$0xff] }
 0x23a   : > { %v841_v23 = vmul.f32 %v9868_v26, %v9819_v5  ;;  %v840_v24 = vmul.f32 %v9868_v26, %v9821_v38  ;;  %v1686_v12 = vmul.f32 %v9890_v22, %v9836_v14  ;;  %v1685_v38 = vmul.f32 %v9890_v22, %v9838_v52 }
 0x23b   : > { %v2198_v9 = vpop.permute.xlu0 %2197 }
 0x23c   : > { %v10070_v58 = vpop.permute.xlu1 %2202  ;;  %v2255_v60 = vmul.f32 %v9915_v51, %v2198_v9  ;;  %3054 = vperm.xlu0 %8449, %v10014_v28   ;;  %v11846_v28 = vld [vmem:[#allocation29_spill] sm:$0xff]  ;;  %v1395_v9 = vmul.f32 %v9875_v8, %v9975_v19  ;;  %v1131_v19 = vadd.f32 %v1099_v33, %v838_v6  ;;  %v1947_v6 = vmul.f32 %v9904_v56, %v9999_v2 }
 0x23d   : > { %3059 = vperm.xlu1 %8448, %v2908_v63   ;;  %v839_v40 = vmul.f32 %v9868_v26, %v11846_v28 }
 0x23e   : > { %v10075_v18 = vadd.f32 %v2255_v60, %v1994_v59  ;;  %v1424_v33 = vadd.f32 %v1392_v44, %v1131_v19  ;;  %v11850_v44 = vld [vmem:[#allocation83_spill] sm:$0xff] }
 0x23f   : > { %v10079_v43 = vpop.permute.xlu0 %2741  ;;  %v1132_v63 = vadd.f32 %v1100_v1, %v839_v40 }
 0x240   : > { %v10077_v21 = vpop.permute.xlu1 %2746  ;;  %2430 = vperm.xlu0 %8449, %v2339_v17   ;;  %v2601_v17 = vld [vmem:[#allocation2 + $0xa0] sm:$0xff] }
 0x241   : > { %2435 = vperm.xlu1 %8448, %v2308_v45  }
 0x243   : > { %v737_v46 = vpop.permute.xlu0 %736 }
 0x244   : > { %v742_v13 = vpop.permute.xlu1 %741  ;;  %2974 = vperm.xlu0 %8449, %v2014_v31   ;;  %v1101_v31 = vmul.f32 %v9853_v42, %v9828_v7  ;;  %v1394_v7 = vmul.f32 %v9875_v8, %v9985_v34  ;;  %v842_v45 = vmul.f32 %v9868_v26, %v737_v46  ;;  %v2910_v46 = vmul.f32 %v2878_v30, %v11840_v32 }
 0x245   : > { %2979 = vperm.xlu1 %8448, %v2892_v16   ;;  %v843_v39 = vmul.f32 %v9868_v26, %v742_v13  ;;  %v1134_v16 = vadd.f32 %v1102_v57, %v841_v23  ;;  %v2600_v13 = vld [vmem:[#allocation2 + $0x98] sm:$0xff]  ;;  %v1717_v23 = vadd.f32 %v1685_v38, %v1424_v33 }
 0x246   : > { %v1133_v28 = vadd.f32 %v1101_v31, %v840_v24  ;;  %v2862_v31 = vld [vmem:[#allocation2 + $0xa1] sm:$0xff] }
 0x247   : > { %v998_v60 = vpop.permute.xlu0 %997  ;;  %v1427_v53 = vadd.f32 %v1395_v9, %v1134_v16  ;;  %v2894_v24 = vmul.f32 %v2862_v31, %v9770_v27 }
 0x248   : > { %v1003_v61 = vpop.permute.xlu1 %1002  ;;  %v1103_v5 = vmul.f32 %v9853_v42, %v998_v60  ;;  %2771 = vperm.xlu0 %8449, %v2616_v55   ;;  %v1426_v57 = vadd.f32 %v1394_v7, %v1133_v28  ;;  %v1946_v55 = vmul.f32 %v9904_v56, %v10003_v49  ;;  %v11851_v7 = vld [vmem:[#allocation48_spill] sm:$0xff] }
 0x249   : > { %v1104_v59 = vmul.f32 %v9853_v42, %v1003_v61  ;;  %2776 = vperm.xlu1 %8448, %v2617_v35   ;;  %v1425_v35 = vadd.f32 %v1393_v0, %v1132_v63  ;;  %v2877_v63 = vld [vmem:[#allocation2 + $0x119] sm:$0xff]  ;;  %v11849_v0 = vld [vmem:[#allocation82_spill] sm:$0xff] }
 0x24a   : > { %v10117_v40 = vadd.f32 %v1103_v5, %v842_v45  ;;  %v1114_v2 = vmul.f32 %v9853_v42, %v11849_v0  ;;  %v853_v45 = vmul.f32 %v9868_v26, %v11851_v7  ;;  %v11852_v5 = vld [vmem:[#allocation19_spill] sm:$0xff]  ;;  %v1978_v19 = vadd.f32 %v1946_v55, %v1717_v23  ;;  %v11854_v28 = vld [vmem:[#allocation20_spill] sm:$0xff] }
 0x24b   : > { %v10113_v1 = vadd.f32 %v1104_v59, %v843_v39  ;;  %v1574_v14 = vpop.permute.xlu0 %1573  ;;  %v1718_v61 = vadd.f32 %v1686_v12, %v1425_v35  ;;  %v1113_v59 = vmul.f32 %v9853_v42, %v11850_v44  ;;  %v11853_v12 = vld [vmem:[#allocation81_spill] sm:$0xff]  ;;  %v1406_v38 = vmul.f32 %v9875_v8, %v11854_v28  ;;  %v11855_v35 = vld [vmem:[#allocation23_spill] sm:$0xff] }
 0x24c   : > { %v1579_v34 = vpop.permute.xlu1 %1578  ;;  %v1687_v52 = vmul.f32 %v9890_v22, %v1574_v14  ;;  %2691 = vperm.xlu0 %8449, %v2600_v13   ;;  %v852_v13 = vmul.f32 %v9868_v26, %v11853_v12  ;;  %v1146_v27 = vadd.f32 %v1114_v2, %v853_v45  ;;  %v11856_v55 = vlaneseq  ;;  %v11857_v2 = vld [vmem:[#allocation28_spill] sm:$0xff] }
 0x24d   : > { %v1688_v15 = vmul.f32 %v9890_v22, %v1579_v34  ;;  %2696 = vperm.xlu1 %8448, %v2601_v17   ;;  %v1979_v60 = vadd.f32 %v1947_v6, %v1718_v61  ;;  %v1407_v17 = vmul.f32 %v9875_v8, %v11852_v5  ;;  %v1118_v6 = vmul.f32 %v9853_v42, %v9788_v37  ;;  %v7115_v37 = vld [vmem:[#allocation6] sm:$0x1] }
 0x24e   : > { %v10130_v9 = vadd.f32 %v1687_v52, %v1426_v57  ;;  %v1145_v33 = vadd.f32 %v1113_v59, %v852_v13  ;;  %v10158_v52 = vand.u32 127, %v11856_v55  ;;  %v857_v61 = vmul.f32 %v9868_v26, %v9781_v4  ;;  %v11859_v59 = vld [vmem:[#allocation7_spill] sm:$0xff]  ;;  %v11861_v4 = vld [vmem:[#allocation50_spill] sm:$0xff] }
 0x24f   : > { %v10126_v32 = vadd.f32 %v1688_v15, %v1427_v53  ;;  %v2118_v30 = vpop.permute.xlu0 %2117  ;;  %v1700_v53 = vmul.f32 %v9890_v22, %v11855_v35  ;;  %v1439_v31 = vadd.f32 %v1407_v17, %v1146_v27  ;;  %v1699_v23 = vmul.f32 %v9890_v22, %v11857_v2  ;;  %v11862_v13 = vld [vmem:[#allocation34_spill] sm:$0xff] }
 0x250   : > { %v2123_v39 = vpop.permute.xlu1 %2122  ;;  %v2239_v16 = vmul.f32 %v9915_v51, %v2118_v30  ;;  %3064 = vperm.xlu0 %8449, %v2877_v63   ;;  %v1117_v63 = vmul.f32 %v9853_v42, %v9790_v36  ;;  %v1438_v0 = vadd.f32 %v1406_v38, %v1145_v33  ;;  %v11860_v30 = vld [vmem:[#allocation59_spill] sm:$0xff]  ;;  %v1150_v7 = vadd.f32 %v1118_v6, %v857_v61 }
 0x251   : > { %v2240_v49 = vmul.f32 %v9915_v51, %v2123_v39  ;;  %3069 = vperm.xlu1 %8448, %v2910_v46   ;;  %v2861_v46 = vld [vmem:[#allocation2 + $0x99] sm:$0xff]  ;;  %v11858_v39 = vld [vmem:[#allocation38_spill] sm:$0xff]  ;;  %v1410_v45 = vmul.f32 %v9875_v8, %v11861_v4  ;;  %v1704_v5 = vmul.f32 %v9890_v22, %v10062_v48  ;;  %v1961_v28 = vmul.f32 %v9904_v56, %v11862_v13  ;;  %v11863_v33 = vld [vmem:[#allocation31_spill] sm:$0xff] }
 0x252   : > { %v10151_v15 = vadd.f32 %v2239_v16, %v1978_v19  ;;  %v1411_v44 = vmul.f32 %v9875_v8, %v11858_v39  ;;  %v10177_v16 = vand.u32 7, %v11859_v59  ;;  %v11864_v61 = vld [vmem:[#allocation39_spill] sm:$0xff]  ;;  %v1731_v39 = vadd.f32 %v1699_v23, %v1438_v0  ;;  %v11865_v4 = vld [vmem:[#allocation40_spill] sm:$0xff] }
 0x253   : > { %v10145_v34 = vadd.f32 %v2240_v49, %v1979_v60  ;;  %v10155_v57 = vpop.permute.xlu0 %2661  ;;  %v11621_v60 = vshra.s32 %v11859_v59, 3  ;;  %v1732_v49 = vadd.f32 %v1700_v53, %v1439_v31  ;;  %v1960_v31 = vmul.f32 %v9904_v56, %v11863_v33 }
 0x254   : > { %v10153_v14 = vpop.permute.xlu1 %2666  ;;  %2984 = vperm.xlu0 %8449, %v2861_v46   ;;  %v1703_v46 = vmul.f32 %v9890_v22, %v10064_v25  ;;  %v1443_v48 = vadd.f32 %v1411_v44, %v1150_v7  ;;  %v3243_v6 = vmul.u32 2, %v10177_v16  ;;  %v10208_v0 = vadd.s32 128, %v10158_v52 }
 0x255   : > { %2989 = vperm.xlu1 %8448, %v2894_v24   ;;  %v856_v24 = vmul.f32 %v9868_v26, %v11860_v30  ;;  %v3227_v12 = vmul.u32 2, %v11621_v60  ;;  %v1993_v7 = vadd.f32 %v1961_v28, %v1732_v49  ;;  %v11867_v49 = vld [vmem:[#allocation78_spill] sm:$0xff]  ;;  %v8480_v33 = vmov 1.0   ;;  %v4663_v60 = vld [vmem:[%s11553_s3 + $0x58] sm:$0xff] }
 0x256   : > { %v1736_v30 = vadd.f32 %v1704_v5, %v1443_v48  ;;  %v1992_v5 = vadd.f32 %v1960_v31, %v1731_v39  ;;  %v2546_v28 = vmul.f32 %v9928_v20, %v11867_v49 }
 0x257   : > { %v1371_v19 = vpop.permute.xlu0 %1370  ;;  %v1149_v38 = vadd.f32 %v1117_v63, %v856_v24  ;;  %v3235_v53 = vmul.u32 16, %v3227_v12  ;;  %v11866_v12 = vld [vmem:[#allocation68_spill] sm:$0xff] }
 0x258   : > { %v1376_v36 = vpop.permute.xlu1 %1375  ;;  %v1412_v27 = vmul.f32 %v9875_v8, %v1371_v19 }
 0x259   : > { %v1413_v17 = vmul.f32 %v9875_v8, %v1376_v36  ;;  %7118 = vperm.xlu1 %8448, %v7115_v37   ;;  %v2254_v37 = vmul.f32 %v9915_v51, %v11864_v61  ;;  %v1442_v2 = vadd.f32 %v1410_v45, %v1149_v38  ;;  %v10198_v24 = vadd.s32 %v3243_v6, %v3235_v53 }
 0x25a   : > { %v10195_v63 = vadd.f32 %v1412_v27, %v10058_v10  ;;  %v2253_v36 = vmul.f32 %v9915_v51, %v11865_v4  ;;  %v2547_v45 = vmul.f32 %v9928_v20, %v11866_v12  ;;  %v2808_v27 = vmul.f32 %v9939_v11, %v10077_v21  ;;  %v11870_v4 = vld [vmem:[#allocation13_spill] sm:$0xff] }
 0x25b   : > { %v10187_v35 = vadd.f32 %v1413_v17, %v10054_v54  ;;  %v1915_v54 = vpop.permute.xlu0 %1914  ;;  %v1735_v17 = vadd.f32 %v1703_v46, %v1442_v2  ;;  %v10211_v23 = vadd.s32 1, %v10198_v24  ;;  %v2286_v13 = vadd.f32 %v2254_v37, %v1993_v7  ;;  %v11868_v37 = vld [vmem:[#allocation85_spill] sm:$0xff] }
 0x25c   : > { %v1920_v25 = vpop.permute.xlu1 %1919  ;;  %v1964_v19 = vmul.f32 %v9904_v56, %v1915_v54  ;;  %vm3263_vm2 = vcmp.eq.s32.totalorder %v10208_v0, %v10198_v24  ;;  %v2285_v53 = vadd.f32 %v2253_v36, %v1992_v5  ;;  %v2807_v6 = vmul.f32 %v9939_v11, %v10079_v43 }
 0x25d   : > { %v1965_v44 = vmul.f32 %v9904_v56, %v1920_v25  ;;  %vm3408_vm3 = vcmp.eq.s32.totalorder %v10208_v0, %v10211_v23  ;;  %7223 = vmatprep.mubr.msk.f32.mxu0 %vm3263_vm2, %v8480_v33  ;;  %v2579_v31 = vadd.f32 %v2547_v45, %v2286_v13  ;;  %v1098_v2 = vmul.f32 %v9853_v42, %v11868_v37  ;;  %v11872_v45 = vld [vmem:[#allocation84_spill] sm:$0xff]  ;;  %v11873_v13 = vld [vmem:[#allocation46_spill] sm:$0xff] }
 0x25e   : > { %v10215_v38 = vadd.f32 %v1964_v19, %v1735_v17  ;;  %7239 = vmatprep.mubr.msk.f32.mxu1 %vm3408_vm3, %v8480_v33  ;;  %v2578_v61 = vadd.f32 %v2546_v28, %v2285_v53  ;;  %v837_v36 = vmul.f32 %v9868_v26, %v11870_v4  ;;  %v11871_v17 = vld [vmem:[#allocation36_spill] sm:$0xff]  ;;  %v836_v5 = vmul.f32 %v9868_v26, %v11872_v45 }
 0x25f   : > { %v10205_v10 = vadd.f32 %v1965_v44, %v1736_v30  ;;  %v10221_v48 = vpop.permute.xlu0 %2490  ;;  %v2840_v25 = vadd.f32 %v2808_v27, %v2579_v31  ;;  %v11869_v44 = vld [vmem:[#allocation86_spill] sm:$0xff]  ;;  %v1391_v19 = vmul.f32 %v9875_v8, %v11871_v17  ;;  %v1390_v49 = vmul.f32 %v9875_v8, %v11873_v13  ;;  %v11874_v31 = vld [vmem:[#allocation52_spill] sm:$0xff] }
 0x260   : > { %v10217_v46 = vpop.permute.xlu1 %2495  ;;  %v1097_v54 = vmul.f32 %v9853_v42, %v11869_v44  ;;  %v2839_v7 = vadd.f32 %v2807_v6, %v2578_v61  ;;  %v1130_v53 = vadd.f32 %v1098_v2, %v837_v36  ;;  %v1684_v6 = vmul.f32 %v9890_v22, %v11874_v31  ;;  %v11875_v44 = vld [vmem:[#allocation70_spill] sm:$0xff] }
 0x261   : > { %vm3262_vm4 = vcmp.eq.s32.totalorder %v10158_v52, %v10198_v24  ;;  %vm3407_vm5 = vcmp.eq.s32.totalorder %v10158_v52, %v10211_v23 }
 0x262   : > { %v1423_v17 = vadd.f32 %v1391_v19, %v1130_v53 }
 0x263   : > { %v3035_v30 = vpop.permute.xlu0 %3034 }
 0x264   : > { %v3040_v21 = vpop.permute.xlu1 %3039  ;;  %v3100_v43 = vmul.f32 %v9957_v47, %v3035_v30  ;;  %v1129_v30 = vadd.f32 %v1097_v54, %v836_v5  ;;  %v1716_v31 = vadd.f32 %v1684_v6, %v1423_v17 }
 0x265   : > { %v3101_v39 = vmul.f32 %v9957_v47, %v3040_v21 }
 0x266   : > { %v3132_v28 = vadd.f32 %v3100_v43, %v2839_v7  ;;  %v11876_v7 = vld [vmem:[#allocation32_spill] sm:$0xff]  ;;  %v1422_v45 = vadd.f32 %v1390_v49, %v1129_v30 }
 0x267   : > { %v3133_v12 = vadd.f32 %v3101_v39, %v2840_v25  ;;  %v1291_v37 = vpop.permute.xlu0 %1290  ;;  %v1683_v25 = vmul.f32 %v9890_v22, %v11875_v44  ;;  %v1945_v2 = vmul.f32 %v9904_v56, %v11876_v7  ;;  %v11878_v44 = vld [vmem:[#allocation37_spill] sm:$0xff] }
 0x268   : > { %v1296_v27 = vpop.permute.xlu1 %1295  ;;  %v3171_v39 = vadd.f32 %v9982_v41, %v3132_v28  ;;  %v1396_v4 = vmul.f32 %v9875_v8, %v1291_v37  ;;  %v2238_v28 = vmul.f32 %v9915_v51, %v11878_v44  ;;  %v11879_v7 = vld [vmem:[#allocation49_spill] sm:$0xff] }
 0x269   : > { %v3172_v61 = vadd.f32 %v9982_v41, %v3133_v12  ;;  %v1397_v21 = vmul.f32 %v9875_v8, %v1296_v27  ;;  %v11877_v12 = vld [vmem:[#allocation44_spill] sm:$0xff]  ;;  %v1715_v37 = vadd.f32 %v1683_v25, %v1422_v45 }
 0x26a   : > { %v1944_v13 = vmul.f32 %v9904_v56, %v11877_v12  ;;  %v3203_v27 = vmax.f32 %v3171_v39, 0.0  ;;  %v1428_v54 = vadd.f32 %v1396_v4, %v10117_v40  ;;  %v2531_v40 = vmul.f32 %v9928_v20, %v10020_v50 }
 0x26b   : > { %v3204_v43 = vmax.f32 %v3172_v61, 0.0  ;;  %v1429_v36 = vadd.f32 %v1397_v21, %v10113_v1  ;;  %v1835_v53 = vpop.permute.xlu0 %1834  ;;  %v2237_v61 = vmul.f32 %v9915_v51, %v11879_v7  ;;  %v1977_v21 = vadd.f32 %v1945_v2, %v1716_v31 }
 0x26c   : > { %v1840_v5 = vpop.permute.xlu1 %1839  ;;  %v1948_v49 = vmul.f32 %v9904_v56, %v1835_v53  ;;  %v1976_v30 = vadd.f32 %v1944_v13, %v1715_v37  ;;  %v2530_v39 = vmul.f32 %v9928_v20, %v10024_v62  ;;  %v2792_v50 = vmul.f32 %v9939_v11, %v10153_v14 }
 0x26d   : > { %v1949_v19 = vmul.f32 %v9904_v56, %v1840_v5  ;;  %v10264_v1 = vpack.c.bf16 %v3204_v43, %v3203_v27  ;;  %v2270_v17 = vadd.f32 %v2238_v28, %v1977_v21  ;;  %v2791_v43 = vmul.f32 %v9939_v11, %v10155_v57 }
 0x26e   : > { %v10275_v25 = vadd.f32 %v1948_v49, %v10130_v9 }
 0x26f   : > { %v10270_v6 = vadd.f32 %v1949_v19, %v10126_v32  ;;  %8122 = vmatprep.subr.bf16.mxu0 %v10264_v1  ;;  %8154 = vmatprep.subr.bf16.mxu1 %v10264_v1  ;;  %v10283_v2 = vpop.permute.xlu0 %2410  ;;  %v2269_v32 = vadd.f32 %v2237_v61, %v1976_v30  ;;  %v2563_v62 = vadd.f32 %v2531_v40, %v2270_v17 }
 0x270   : > { %v10279_v4 = vpop.permute.xlu1 %2415 }
 0x271   : > { %v2562_v45 = vadd.f32 %v2530_v39, %v2269_v32  ;;  %v2824_v12 = vadd.f32 %v2792_v50, %v2563_v62 }
 0x273   : > { %v2955_v27 = vpop.permute.xlu0 %2954  ;;  %v2823_v5 = vadd.f32 %v2791_v43, %v2562_v45 }
 0x274   : > { %v2960_v9 = vpop.permute.xlu1 %2959  ;;  %v3084_v31 = vmul.f32 %v9957_v47, %v2955_v27 }
 0x275   : > { %v3085_v13 = vmul.f32 %v9957_v47, %v2960_v9 }
 0x276   : > { %v3116_v28 = vadd.f32 %v3084_v31, %v2823_v5  ;;  %v11881_v31 = vld [vmem:[#allocation61_spill] sm:$0xff] }
 0x277   : > { %v3117_v44 = vadd.f32 %v3085_v13, %v2824_v12  ;;  %v1664_v37 = vpop.permute.xlu0 %1663  ;;  %v11880_v13 = vld [vmem:[#allocation24_spill] sm:$0xff] }
 0x278   : > { %v1669_v19 = vpop.permute.xlu1 %1668  ;;  %v3155_v57 = vadd.f32 %v9982_v41, %v3116_v28  ;;  %v1705_v7 = vmul.f32 %v9890_v22, %v1664_v37  ;;  %v1116_v27 = vmul.f32 %v9853_v42, %v11880_v13  ;;  %v11882_v28 = vld [vmem:[#allocation18_spill] sm:$0xff]  ;;  %v11883_v37 = vld [vmem:[#allocation27_spill] sm:$0xff] }
 0x279   : > { %v3156_v14 = vadd.f32 %v9982_v41, %v3117_v44  ;;  %v1706_v53 = vmul.f32 %v9890_v22, %v1669_v19  ;;  %v855_v44 = vmul.f32 %v9868_v26, %v11881_v31  ;;  %v1409_v19 = vmul.f32 %v9875_v8, %v11882_v28 }
 0x27a   : > { %v3187_v21 = vmax.f32 %v3155_v57, 0.0  ;;  %v10297_v40 = vadd.f32 %v1705_v7, %v10195_v63  ;;  %v11884_v7 = vld [vmem:[#allocation67_spill] sm:$0xff]  ;;  %v2549_v8 = vmul.f32 %v9928_v20, %v10217_v46 }
 0x27b   : > { %v3188_v61 = vmax.f32 %v3156_v14, 0.0  ;;  %v10294_v49 = vadd.f32 %v1706_v53, %v10187_v35  ;;  %v10301_v39 = vpop.permute.xlu0 %2207  ;;  %v1148_v53 = vadd.f32 %v1116_v27, %v855_v44 }
 0x27c   : > { %v10299_v30 = vpop.permute.xlu1 %2212 }
 0x27d   : > { %v10303_v17 = vpack.c.bf16 %v3188_v61, %v3187_v21  ;;  %v1441_v57 = vadd.f32 %v1409_v19, %v1148_v53  ;;  %v1963_v61 = vmul.f32 %v9904_v56, %v11884_v7 }
 0x27f   : > { %8124 = vmatpush3.bf16.msra.mxu0 %v10303_v17  ;;  %8156 = vmatpush3.bf16.msra.mxu1 %v10303_v17  ;;  %v2752_v32 = vpop.permute.xlu0 %2751 }
 0x280   : > { %v2757_v50 = vpop.permute.xlu1 %2756  ;;  %v2809_v31 = vmul.f32 %v9939_v11, %v2752_v32 }
 0x281   : > { %v2810_v13 = vmul.f32 %v9939_v11, %v2757_v50 }
 0x283   : > { %v1584_v62 = vpop.permute.xlu0 %1583 }
 0x284   : > { %v1589_v43 = vpop.permute.xlu1 %1588  ;;  %v1689_v45 = vmul.f32 %v9890_v22, %v1584_v62 }
 0x285   : > { %v1690_v35 = vmul.f32 %v9890_v22, %v1589_v43  ;;  %v2256_v43 = vmul.f32 %v9915_v51, %v10070_v58 }
 0x286   : > { %v10311_v9 = vadd.f32 %v1689_v45, %v1428_v54 }
 0x287   : > { %v10309_v63 = vadd.f32 %v1690_v35, %v1429_v36  ;;  %v10317_v5 = vpop.permute.xlu0 %2127  ;;  %v1702_v36 = vmul.f32 %v9890_v22, %v11883_v37  ;;  %v2548_v22 = vmul.f32 %v9928_v20, %v10221_v48 }
 0x288   : > { %v10313_v12 = vpop.permute.xlu1 %2132 }
 0x289   : > { %v1734_v42 = vadd.f32 %v1702_v36, %v1441_v57  ;;  %v2580_v28 = vadd.f32 %v2548_v22, %v10075_v18  ;;  %v2533_v18 = vmul.f32 %v9928_v20, %v10279_v4 }
 0x28b   : > { %v2672_v54 = vpop.permute.xlu0 %2671  ;;  %v1995_v35 = vadd.f32 %v1963_v61, %v1734_v42  ;;  %v2841_v36 = vadd.f32 %v2809_v31, %v2580_v28 }
 0x28c   : > { %v2677_v14 = vpop.permute.xlu1 %2676 }
 0x28d   : > { %v2288_v45 = vadd.f32 %v2256_v43, %v1995_v35  ;;  %v2532_v43 = vmul.f32 %v9928_v20, %v10283_v2  ;;  %v2794_v22 = vmul.f32 %v9939_v11, %v2677_v14 }
 0x28f   : > { %v10331_v26 = vpop.permute.xlu0 %1924  ;;  %v2581_v44 = vadd.f32 %v2549_v8, %v2288_v45  ;;  %v2564_v28 = vadd.f32 %v2532_v43, %v10151_v15 }
 0x290   : > { %v10327_v21 = vpop.permute.xlu1 %1929 }
 0x291   : > { %v2842_v19 = vadd.f32 %v2810_v13, %v2581_v44  ;;  %v2793_v13 = vmul.f32 %v9939_v11, %v2672_v54  ;;  %v2565_v44 = vadd.f32 %v2533_v18, %v10145_v34 }
 0x293   : > { %v2501_v27 = vpop.permute.xlu0 %2500 }
 0x294   : > { %v2506_v62 = vpop.permute.xlu1 %2505 }
 0x297   : > { %v3045_v37 = vpop.permute.xlu0 %3044 }
 0x298   : > { %v3050_v58 = vpop.permute.xlu1 %3049  ;;  %v3102_v46 = vmul.f32 %v9957_v47, %v3045_v37 }
 0x299   : > { %v3103_v53 = vmul.f32 %v9957_v47, %v3050_v58  ;;  %v2826_v58 = vadd.f32 %v2794_v22, %v2565_v44  ;;  %v2258_v22 = vmul.f32 %v9915_v51, %v10299_v30  ;;  %v2257_v44 = vmul.f32 %v9915_v51, %v10301_v39 }
 0x29a   : > { %v3134_v48 = vadd.f32 %v3102_v46, %v2841_v36  ;;  %v2242_v39 = vmul.f32 %v9915_v51, %v10313_v12 }
 0x29b   : > { %v3135_v57 = vadd.f32 %v3103_v53, %v2842_v19  ;;  %v10345_v61 = vpop.permute.xlu0 %1844  ;;  %v2825_v53 = vadd.f32 %v2793_v13, %v2564_v28  ;;  %v2551_v28 = vmul.f32 %v9928_v20, %v2506_v62 }
 0x29c   : > { %v10342_v7 = vpop.permute.xlu1 %1849  ;;  %v3173_v32 = vadd.f32 %v9982_v41, %v3134_v48 }
 0x29d   : > { %v3174_v50 = vadd.f32 %v9982_v41, %v3135_v57 }
 0x29e   : > { %v3205_v35 = vmax.f32 %v3173_v32, 0.0 }
 0x29f   : > { %v3206_v42 = vmax.f32 %v3174_v50, 0.0  ;;  %v2421_v45 = vpop.permute.xlu0 %2420 }
 0x2a0   : > { %v2426_v8 = vpop.permute.xlu1 %2425 }
 0x2a1   : > { %v10354_v31 = vpack.c.bf16 %v3206_v42, %v3205_v35 }
 0x2a3   : > { %8126 = vmatprep.subr.bf16.mxu0 %v10354_v31  ;;  %8158 = vmatprep.subr.bf16.mxu1 %v10354_v31  ;;  %v2965_v19 = vpop.permute.xlu0 %2964 }
 0x2a4   : > { %v2970_v4 = vpop.permute.xlu1 %2969  ;;  %v3086_v14 = vmul.f32 %v9957_v47, %v2965_v19 }
 0x2a5   : > { %v3087_v2 = vmul.f32 %v9957_v47, %v2970_v4  ;;  %v2550_v4 = vmul.f32 %v9928_v20, %v2501_v27 }
 0x2a6   : > { %v3118_v54 = vadd.f32 %v3086_v14, %v2825_v53  ;;  %v2289_v14 = vadd.f32 %v2257_v44, %v10215_v38  ;;  %v2535_v38 = vmul.f32 %v9928_v20, %v2426_v8 }
 0x2a7   : > { %v3119_v37 = vadd.f32 %v3087_v2, %v2826_v58  ;;  %v10365_v46 = vpop.permute.xlu0 %2217  ;;  %v2290_v2 = vadd.f32 %v2258_v22, %v10205_v10  ;;  %v2241_v10 = vmul.f32 %v9915_v51, %v10317_v5 }
 0x2a8   : > { %v10362_v36 = vpop.permute.xlu1 %2222  ;;  %v3157_v15 = vadd.f32 %v9982_v41, %v3118_v54  ;;  %v2582_v30 = vadd.f32 %v2550_v4, %v2289_v14 }
 0x2a9   : > { %v3158_v34 = vadd.f32 %v9982_v41, %v3119_v37  ;;  %v2583_v54 = vadd.f32 %v2551_v28, %v2290_v2  ;;  %v2274_v28 = vadd.f32 %v2242_v39, %v10270_v6 }
 0x2aa   : > { %v3189_v48 = vmax.f32 %v3157_v15, 0.0 }
 0x2ab   : > { %v3190_v57 = vmax.f32 %v3158_v34, 0.0  ;;  %v2762_v32 = vpop.permute.xlu0 %2761 }
 0x2ac   : > { %v2767_v50 = vpop.permute.xlu1 %2766  ;;  %v2811_v37 = vmul.f32 %v9939_v11, %v2762_v32  ;;  %v2534_v32 = vmul.f32 %v9928_v20, %v2421_v45 }
 0x2ad   : > { %v10368_v18 = vpack.c.bf16 %v3190_v57, %v3189_v48  ;;  %v2812_v19 = vmul.f32 %v9939_v11, %v2767_v50 }
 0x2ae   : > { %v2843_v57 = vadd.f32 %v2811_v37, %v2582_v30  ;;  %v2567_v37 = vadd.f32 %v2535_v38, %v2274_v28 }
 0x2af   : > { %8128 = vmatpush3.bf16.msra.mxu0 %v10368_v18  ;;  %8160 = vmatpush3.bf16.msra.mxu1 %v10368_v18  ;;  %v10374_v43 = vpop.permute.xlu0 %2137  ;;  %v2844_v15 = vadd.f32 %v2812_v19, %v2583_v54  ;;  %v2273_v19 = vadd.f32 %v2241_v10, %v10275_v25  ;;  %v1967_v25 = vmul.f32 %v9904_v56, %v10327_v21 }
 0x2b0   : > { %v10372_v42 = vpop.permute.xlu1 %2142 }
 0x2b1   : > { %v2566_v54 = vadd.f32 %v2534_v32, %v2273_v19  ;;  %v1999_v32 = vadd.f32 %v1967_v25, %v10294_v49  ;;  %v8465_v49 = vld [vmem:[%s11551_s1 + $0x5] ss:$0 sm:$0xff] }
 0x2b2   : > { %v2244_v19 = vmul.f32 %v8465_v49, %v10372_v42  ;;  %v8467_v42 = vld [vmem:[%s11551_s1 + $0x6] ss:$0 sm:$0xff] }
 0x2b3   : > { %v2682_v13 = vpop.permute.xlu0 %2681 }
 0x2b4   : > { %v2687_v35 = vpop.permute.xlu1 %2686  ;;  %v2795_v5 = vmul.f32 %v9939_v11, %v2682_v13 }
 0x2b5   : > { %v2796_v12 = vmul.f32 %v9939_v11, %v2687_v35 }
 0x2b6   : > { %v2827_v39 = vadd.f32 %v2795_v5, %v2566_v54 }
 0x2b7   : > { %v2511_v53 = vpop.permute.xlu0 %2510 }
 0x2b8   : > { %v2516_v58 = vpop.permute.xlu1 %2515 }
 0x2bb   : > { %v3055_v27 = vpop.permute.xlu0 %3054 }
 0x2bc   : > { %v3060_v34 = vpop.permute.xlu1 %3059  ;;  %v3104_v48 = vmul.f32 %v9957_v47, %v3055_v27  ;;  %v1966_v27 = vmul.f32 %v9904_v56, %v10331_v26  ;;  %v8464_v56 = vld [vmem:[%s11551_s1 + $0x4] ss:$0 sm:$0xff] }
 0x2bd   : > { %v3105_v62 = vmul.f32 %v9957_v47, %v3060_v34  ;;  %v2828_v34 = vadd.f32 %v2796_v12, %v2567_v37  ;;  %v1951_v26 = vmul.f32 %v8464_v56, %v10342_v7  ;;  %v1950_v12 = vmul.f32 %v8464_v56, %v10345_v61 }
 0x2be   : > { %v3136_v22 = vadd.f32 %v3104_v48, %v2843_v57  ;;  %v2260_v48 = vmul.f32 %v9915_v51, %v10362_v36  ;;  %v1998_v36 = vadd.f32 %v1966_v27, %v10297_v40 }
 0x2bf   : > { %v3137_v50 = vadd.f32 %v3105_v62, %v2844_v15  ;;  %v2431_v2 = vpop.permute.xlu0 %2430 }
 0x2c0   : > { %v2436_v44 = vpop.permute.xlu1 %2435  ;;  %v3175_v14 = vadd.f32 %v9982_v41, %v3136_v22  ;;  %v2553_v22 = vmul.f32 %v9928_v20, %v2516_v58 }
 0x2c1   : > { %v3176_v4 = vadd.f32 %v9982_v41, %v3137_v50 }
 0x2c2   : > { %v3207_v30 = vmax.f32 %v3175_v14, 0.0  ;;  %v2243_v14 = vmul.f32 %v8465_v49, %v10374_v43 }
 0x2c3   : > { %v3208_v8 = vmax.f32 %v3176_v4, 0.0  ;;  %v2975_v6 = vpop.permute.xlu0 %2974  ;;  %v2552_v4 = vmul.f32 %v9928_v20, %v2511_v53  ;;  %v8466_v20 = vld [vmem:[%s11551_s1 + $0x7] ss:$0 sm:$0xff]  ;;  %v1983_v53 = vadd.f32 %v1951_v26, %v10309_v63 }
 0x2c4   : > { %v2980_v45 = vpop.permute.xlu1 %2979  ;;  %v3088_v62 = vmul.f32 %v9957_v47, %v2975_v6 }
 0x2c5   : > { %v3089_v15 = vmul.f32 %v9957_v47, %v2980_v45  ;;  %v10401_v35 = vpack.c.bf16 %v3208_v8, %v3207_v30  ;;  %v2259_v47 = vmul.f32 %v9915_v51, %v10365_v46  ;;  %v2537_v8 = vmul.f32 %v8467_v42, %v2436_v44  ;;  %v8468_v44 = vld [vmem:[%s11551_s1 + $0x8] ss:$0 sm:$0xff] }
 0x2c6   : > { %v3120_v10 = vadd.f32 %v3088_v62, %v2827_v39  ;;  %v1982_v30 = vadd.f32 %v1950_v12, %v10311_v9  ;;  %v2536_v45 = vmul.f32 %v8467_v42, %v2431_v2  ;;  %v2276_v63 = vadd.f32 %v2244_v19, %v1983_v53 }
 0x2c7   : > { %v3121_v13 = vadd.f32 %v3089_v15, %v2828_v34  ;;  %8130 = vmatprep.subr.bf16.mxu0 %v10401_v35  ;;  %8162 = vmatprep.subr.bf16.mxu1 %v10401_v35  ;;  %v2772_v50 = vpop.permute.xlu0 %2771  ;;  %v2291_v58 = vadd.f32 %v2259_v47, %v1998_v36  ;;  %v11886_v15 = vld [vmem:[#allocation9_spill] sm:$0xff] }
 0x2c8   : > { %v2777_v57 = vpop.permute.xlu1 %2776  ;;  %v3159_v21 = vadd.f32 %v9982_v41, %v3120_v10  ;;  %v2813_v61 = vmul.f32 %v8466_v20, %v2772_v50  ;;  %v11619_v6 = vshra.s32 %v11886_v15, 3  ;;  %v2275_v27 = vadd.f32 %v2243_v14, %v1982_v30 }
 0x2c9   : > { %v3160_v38 = vadd.f32 %v9982_v41, %v3121_v13  ;;  %v2292_v41 = vadd.f32 %v2260_v48, %v1999_v32  ;;  %v2814_v7 = vmul.f32 %v9939_v11, %v2777_v57  ;;  %v11885_v11 = vld [vmem:[#allocation8_spill] sm:$0xff]  ;;  %v2584_v43 = vadd.f32 %v2552_v4, %v2291_v58 }
 0x2ca   : > { %v3191_v51 = vmax.f32 %v3159_v21, 0.0  ;;  %v11620_v54 = vshra.s32 %v11885_v11, 3  ;;  %v2569_v57 = vadd.f32 %v2537_v8, %v2276_v63  ;;  %v2568_v47 = vadd.f32 %v2536_v45, %v2275_v27 }
 0x2cb   : > { %v3192_v28 = vmax.f32 %v3160_v38, 0.0  ;;  %v2692_v5 = vpop.permute.xlu0 %2691  ;;  %v2585_v37 = vadd.f32 %v2553_v22, %v2292_v41  ;;  %v2845_v9 = vadd.f32 %v2813_v61, %v2584_v43  ;;  %v10449_v38 = vand.u32 7, %v11885_v11 }
 0x2cc   : > { %v2697_v46 = vpop.permute.xlu1 %2696  ;;  %v2797_v10 = vmul.f32 %v8466_v20, %v2692_v5  ;;  %v3228_v50 = vmul.u32 2, %v11620_v54  ;;  %v10454_v56 = vand.u32 7, %v11886_v15  ;;  %v3229_v26 = vmul.u32 2, %v11619_v6  ;;  %v4662_v54 = vld [vmem:[%s11553_s3 + $0x50] sm:$0xff] }
 0x2cd   : > { %v10431_v40 = vpack.c.bf16 %v3192_v28, %v3191_v51  ;;  %v2846_v39 = vadd.f32 %v2814_v7, %v2585_v37  ;;  %v2798_v62 = vmul.f32 %v8466_v20, %v2697_v46  ;;  %v8469_v28 = vld [vmem:[%s11552_s2] ss:$0 sm:$0xff]  ;;  %v11887_v51 = vld [vmem:[#allocation10_spill] sm:$0xff]  ;;  %v3244_v14 = vmul.u32 2, %v10449_v38 }
 0x2ce   : > { %v11618_v46 = vshra.s32 %v11887_v51, 3  ;;  %v2829_v41 = vadd.f32 %v2797_v10, %v2568_v47  ;;  %v3236_v58 = vmul.u32 16, %v3228_v50  ;;  %v3245_v53 = vmul.u32 2, %v10454_v56  ;;  %v11890_v47 = vld [vmem:[#allocation80_spill] sm:$0xff] }
 0x2cf   : > { %8132 = vmatpush3.bf16.msra.mxu0 %v10431_v40  ;;  %8164 = vmatpush3.bf16.msra.mxu1 %v10431_v40  ;;  %v3065_v13 = vpop.permute.xlu0 %3064  ;;  %v2830_v22 = vadd.f32 %v2798_v62, %v2569_v57  ;;  %v3237_v42 = vmul.u32 16, %v3229_v26  ;;  %v10469_v45 = vand.u32 7, %v11887_v51 }
 0x2d0   : > { %v3070_v34 = vpop.permute.xlu1 %3069  ;;  %v3106_v2 = vmul.f32 %v8468_v44, %v3065_v13  ;;  %v3230_v8 = vmul.u32 2, %v11618_v46  ;;  %v10472_v62 = vadd.s32 %v3244_v14, %v3236_v58 }
 0x2d1   : > { %v3107_v25 = vmul.f32 %v8468_v44, %v3070_v34  ;;  %v11888_v34 = vld [vmem:[#allocation11_spill] sm:$0xff] }
 0x2d2   : > { %v3138_v21 = vadd.f32 %v3106_v2, %v2845_v9  ;;  %v11617_v63 = vshra.s32 %v11888_v34, 3  ;;  %v3238_v13 = vmul.u32 16, %v3230_v8  ;;  %v3246_v9 = vmul.u32 2, %v10469_v45 }
 0x2d3   : > { %v3139_v48 = vadd.f32 %v3107_v25, %v2846_v39  ;;  %v2985_v4 = vpop.permute.xlu0 %2984  ;;  %v10476_v25 = vadd.s32 %v3245_v53, %v3237_v42  ;;  %v10482_v10 = vand.u32 7, %v11888_v34  ;;  %v3400_v57 = vadd.s32 1, %v10472_v62  ;;  %v11895_v53 = vld [vmem:[#allocation22_spill] sm:$0xff] }
 0x2d4   : > { %v2990_v32 = vpop.permute.xlu1 %2989  ;;  %v3177_v49 = vadd.f32 %v8469_v28, %v3138_v21  ;;  %v3090_v19 = vmul.f32 %v8468_v44, %v2985_v4  ;;  %v3231_v2 = vmul.u32 2, %v11617_v63  ;;  %vm3265_vm6 = vcmp.eq.s32.totalorder %v10208_v0, %v10472_v62  ;;  %v11892_v4 = vld [vmem:[#allocation72_spill] sm:$0xff] }
 0x2d5   : > { %v3178_v36 = vadd.f32 %v8469_v28, %v3139_v48  ;;  %v3091_v12 = vmul.f32 %v8468_v44, %v2990_v32  ;;  %v11889_v48 = vld [vmem:[#allocation12_spill] sm:$0xff]  ;;  %v3401_v21 = vadd.s32 1, %v10476_v25  ;;  %v10497_v32 = vadd.s32 %v3246_v9, %v3238_v13  ;;  %v11897_v9 = vld [vmem:[#allocation26_spill] sm:$0xff] }
 0x2d6   : > { %v3209_v20 = vmax.f32 %v3177_v49, 0.0  ;;  %v3122_v61 = vadd.f32 %v3090_v19, %v2829_v41  ;;  %v11616_v50 = vshra.s32 %v11889_v48, 3  ;;  %v3239_v26 = vmul.u32 16, %v3231_v2  ;;  %v11893_v41 = vld [vmem:[#allocation47_spill] sm:$0xff] }
 0x2d7   : > { %v3210_v7 = vmax.f32 %v3178_v36, 0.0  ;;  %v3123_v5 = vadd.f32 %v3091_v12, %v2830_v22  ;;  %v3247_v22 = vmul.u32 2, %v10482_v10  ;;  %vm3410_vm7 = vcmp.eq.s32.totalorder %v10208_v0, %v3400_v57 }
 0x2d8   : > { %v3161_v43 = vadd.f32 %v8469_v28, %v3122_v61  ;;  %v10507_v23 = vand.u32 7, %v11889_v48  ;;  %v3232_v12 = vmul.u32 2, %v11616_v50  ;;  %vm3264_vm8 = vcmp.eq.s32.totalorder %v10158_v52, %v10472_v62 }
 0x2d9   : > { %v3162_v37 = vadd.f32 %v8469_v28, %v3123_v5  ;;  %v10466_v30 = vpack.c.bf16 %v3210_v7, %v3209_v20  ;;  %v11891_v28 = vld [vmem:[#allocation14_spill] sm:$0xff]  ;;  %vm3409_vm9 = vcmp.eq.s32.totalorder %v10158_v52, %v3400_v57  ;;  %vm3267_vm10 = vcmp.eq.s32.totalorder %v10208_v0, %v10476_v25  ;;  %v11894_v20 = vld [vmem:[#allocation21_spill] sm:$0xff] }
 0x2da   : > { %v3193_v44 = vmax.f32 %v3161_v43, 0.0  ;;  %v11615_v36 = vshra.s32 %v11891_v28, 3  ;;  %vm3412_vm11 = vcmp.eq.s32.totalorder %v10208_v0, %v3401_v21  ;;  %v3402_v49 = vadd.s32 1, %v10497_v32 }
 0x2db   : > { %v3194_v39 = vmax.f32 %v3162_v37, 0.0  ;;  %8134 = vmatprep.subr.bf16.mxu0 %v10466_v30  ;;  %8166 = vmatprep.subr.bf16.mxu1 %v10466_v30  ;;  %v10524_v19 = vadd.s32 %v3247_v22, %v3239_v26  ;;  %v3240_v5 = vmul.u32 16, %v3232_v12  ;;  %v3248_v58 = vmul.u32 2, %v10507_v23  ;;  %v11896_v37 = vld [vmem:[#allocation58_spill] sm:$0xff] }
 0x2dc   : > { %v3233_v7 = vmul.u32 2, %v11615_v36  ;;  %v10532_v14 = vand.u32 7, %v11891_v28  ;;  %v11614_v61 = vshra.s32 %v11894_v20, 3  ;;  %vm3266_vm0 = vcmp.eq.s32.totalorder %v10158_v52, %v10476_v25 }
 0x2dd   : > { %v10478_v27 = vpack.c.bf16 %v3194_v39, %v3193_v44  ;;  %vm3411_vm12 = vcmp.eq.s32.totalorder %v10158_v52, %v3401_v21  ;;  %vm3269_vm13 = vcmp.eq.s32.totalorder %v10208_v0, %v10497_v32  ;;  %vm3414_vm14 = vcmp.eq.s32.totalorder %v10208_v0, %v3402_v49 }
 0x2de   : > { %v3403_v42 = vadd.s32 1, %v10524_v19  ;;  %v3241_v8 = vmul.u32 16, %v3233_v7  ;;  %v10555_v43 = vadd.s32 %v3248_v58, %v3240_v5  ;;  %v3249_v39 = vmul.u32 2, %v10532_v14  ;;  %v3930_v58 = vld [vmem:[%s11553_s3 + $0x18] sm:$0xff] }
 0x2df   : > { %8136 = vmatpush3.bf16.msra.mxu0 %v10478_v27  ;;  %8168 = vmatpush3.bf16.msra.mxu1 %v10478_v27  ;;  %v10559_v44 = vand.u32 7, %v11894_v20  ;;  %v3234_v13 = vmul.u32 2, %v11614_v61  ;;  %vm3268_vm15 = vcmp.eq.s32.totalorder %v10158_v52, %v10497_v32  ;;  %vm3413_vm1 = vcmp.eq.s32.totalorder %v10158_v52, %v3402_v49  ;;  %v3919_v49 = vld [vmem:[%s11553_s3] sm:$0xff] }
 0x2e0   : > { %8170 = vmatprep.subr.bf16.mxu0 %v11890_v47  ;;  %8202 = vmatprep.subr.bf16.mxu1 %v11890_v47  ;;  %vm3271_vm2 = vcmp.eq.s32.totalorder %v10208_v0, %v10524_v19  ;;  %vm3416_vm3 = vcmp.eq.s32.totalorder %v10208_v0, %v3403_v42  ;;  %v10583_v2 = vadd.s32 %v3249_v39, %v3241_v8  ;;  %v3710_v26 = vadd.s32 17, %v10555_v43  ;;  %v4205_v39 = vld [vmem:[%s11553_s3 + $0x20] sm:$0xff] }
 0x2e1   : > { %v3242_v57 = vmul.u32 16, %v3234_v13  ;;  %v3250_v47 = vmul.u32 2, %v10559_v44  ;;  %v11898_v5 = vmov 0.0   ;;  %v4206_v13 = vld [vmem:[%s11553_s3 + $0x28] sm:$0xff] }
 0x2e2   : > { %7224 = vmatmul.mubr.msk.f32.vlgmr.msra.gmra.mrb[0].mxu0 %vm3262_vm4, %v8480_v33  ;;  %7240 = vmatmul.mubr.msk.f32.vlgmr.msra.gmra.mrb[0].mxu1 %vm3407_vm5, %v8480_v33  ;;  %vm3270_vm4 = vcmp.eq.s32.totalorder %v10158_v52, %v10524_v19  ;;  %vm3415_vm5 = vcmp.eq.s32.totalorder %v10158_v52, %v3403_v42  ;;  %v3558_v22 = vadd.s32 16, %v10583_v2  ;;  %v3711_v12 = vadd.s32 17, %v10583_v2 }
 0x2e3   : > { %8172 = vmatpush3.bf16.msra.mxu0 %v11892_v4  ;;  %8204 = vmatpush3.bf16.msra.mxu1 %v11892_v4  ;;  %v10601_v21 = vadd.s32 %v3250_v47, %v3242_v57 }
 0x2e4   : > { %8174 = vmatprep.subr.bf16.mxu0 %v11893_v41  ;;  %8206 = vmatprep.subr.bf16.mxu1 %v11893_v41 }
 0x2e5   : > { %7225 = vmatprep.mubr.msk.f32.mxu0 %vm3265_vm6, %v8480_v33  ;;  %7241 = vmatprep.mubr.msk.f32.mxu1 %vm3410_vm7, %v8480_v33  ;;  %vm3273_vm6 = vcmp.eq.s32.totalorder %v10208_v0, %v10555_v43  ;;  %v3559_v4 = vadd.s32 16, %v10601_v21  ;;  %v3712_v41 = vadd.s32 17, %v10601_v21 }
 0x2e6   : > { %7226 = vmatmul.mubr.msk.f32.gmra.mrb[2].mxu0 %vm3264_vm8, %v8480_v33  ;;  %7242 = vmatmul.mubr.msk.f32.gmra.mrb[2].mxu1 %vm3409_vm9, %v8480_v33  ;;  %vm3272_vm8 = vcmp.eq.s32.totalorder %v10158_v52, %v10555_v43 }
 0x2e7   : > { %8176 = vmatpush3.bf16.msra.mxu0 %v11895_v53  ;;  %8208 = vmatpush3.bf16.msra.mxu1 %v11895_v53 }
 0x2e8   : > { %8178 = vmatprep.subr.bf16.mxu0 %v11896_v37  ;;  %8210 = vmatprep.subr.bf16.mxu1 %v11896_v37 }
 0x2e9   : > { %7227 = vmatprep.mubr.msk.f32.mxu0 %vm3267_vm10, %v8480_v33  ;;  %7243 = vmatprep.mubr.msk.f32.mxu1 %vm3412_vm11, %v8480_v33  ;;  %vm3275_vm10 = vcmp.eq.s32.totalorder %v10208_v0, %v10583_v2 }
 0x2ea   : > { %7228 = vmatmul.mubr.msk.f32.gmra.mrb[4].mxu0 %vm3266_vm0, %v8480_v33  ;;  %7244 = vmatmul.mubr.msk.f32.gmra.mrb[4].mxu1 %vm3411_vm12, %v8480_v33  ;;  %vm3274_vm0 = vcmp.eq.s32.totalorder %v10158_v52, %v10583_v2 }
 0x2eb   : > { %8180 = vmatpush3.bf16.msra.mxu0 %v11897_v9  ;;  %8212 = vmatpush3.bf16.msra.mxu1 %v11897_v9  ;;  %v10766_v9 = vpack.c.bf16 %v4206_v13, %v4205_v39 }
 0x2ec   : > { %8182 = vmatprep.subr.bf16.mxu0 %v10009_v29  ;;  %8214 = vmatprep.subr.bf16.mxu1 %v10009_v29  ;;  %v3404_v29 = vadd.s32 1, %v10555_v43 }
 0x2ed   : > { %7229 = vmatprep.mubr.msk.f32.mxu0 %vm3269_vm13, %v8480_v33  ;;  %7245 = vmatprep.mubr.msk.f32.mxu1 %vm3414_vm14, %v8480_v33  ;;  %vm3277_vm13 = vcmp.eq.s32.totalorder %v10208_v0, %v10601_v21 }
 0x2ee   : > { %7230 = vmatmul.mubr.msk.f32.gmra.mrb[6].mxu0 %vm3268_vm15, %v8480_v33  ;;  %7246 = vmatmul.mubr.msk.f32.gmra.mrb[6].mxu1 %vm3413_vm1, %v8480_v33  ;;  %vm3418_vm7 = vcmp.eq.s32.totalorder %v10208_v0, %v3404_v29  ;;  %vm3417_vm9 = vcmp.eq.s32.totalorder %v10158_v52, %v3404_v29  ;;  %vm3276_vm15 = vcmp.eq.s32.totalorder %v10158_v52, %v10601_v21 }
 0x2ef   : > { %8184 = vmatpush3.bf16.msra.mxu0 %v10049_v3  ;;  %8216 = vmatpush3.bf16.msra.mxu1 %v10049_v3  ;;  %v3405_v3 = vadd.s32 1, %v10583_v2 }
 0x2f0   : > { %8186 = vmatprep.subr.bf16.mxu0 %v10264_v1  ;;  %8218 = vmatprep.subr.bf16.mxu1 %v10264_v1  ;;  %v3406_v1 = vadd.s32 1, %v10601_v21 }
 0x2f1   : > { %7231 = vmatprep.mubr.msk.f32.mxu0 %vm3271_vm2, %v8480_v33  ;;  %7247 = vmatprep.mubr.msk.f32.mxu1 %vm3416_vm3, %v8480_v33  ;;  %vm3420_vm11 = vcmp.eq.s32.totalorder %v10208_v0, %v3405_v3  ;;  %vm3419_vm12 = vcmp.eq.s32.totalorder %v10158_v52, %v3405_v3 }
 0x2f2   : > { %7232 = vmatmul.mubr.msk.f32.gmra.mrb[8].mxu0 %vm3270_vm4, %v8480_v33  ;;  %7248 = vmatmul.mubr.msk.f32.gmra.mrb[8].mxu1 %vm3415_vm5, %v8480_v33  ;;  %vm3422_vm14 = vcmp.eq.s32.totalorder %v10208_v0, %v3406_v1  ;;  %vm3421_vm1 = vcmp.eq.s32.totalorder %v10158_v52, %v3406_v1 }
 0x2f3   : > { %8188 = vmatpush3.bf16.msra.mxu0 %v10303_v17  ;;  %8220 = vmatpush3.bf16.msra.mxu1 %v10303_v17  ;;  %v3552_v17 = vadd.s32 16, %v10198_v24 }
 0x2f4   : > { %8190 = vmatprep.subr.bf16.mxu0 %v10354_v31  ;;  %8222 = vmatprep.subr.bf16.mxu1 %v10354_v31  ;;  %v3705_v31 = vadd.s32 17, %v10198_v24  ;;  %v3553_v24 = vadd.s32 16, %v10472_v62 }
 0x2f5   : > { %7233 = vmatprep.mubr.msk.f32.mxu0 %vm3273_vm6, %v8480_v33  ;;  %7249 = vmatprep.mubr.msk.f32.mxu1 %vm3418_vm7, %v8480_v33  ;;  %vm3561_vm2 = vcmp.eq.s32.totalorder %v10208_v0, %v3552_v17  ;;  %vm3560_vm4 = vcmp.eq.s32.totalorder %v10158_v52, %v3552_v17 }
 0x2f6   : > { %7234 = vmatmul.mubr.msk.f32.gmra.mrb[10].mxu0 %vm3272_vm8, %v8480_v33  ;;  %7250 = vmatmul.mubr.msk.f32.gmra.mrb[10].mxu1 %vm3417_vm9, %v8480_v33  ;;  %vm3714_vm3 = vcmp.eq.s32.totalorder %v10208_v0, %v3705_v31  ;;  %vm3713_vm5 = vcmp.eq.s32.totalorder %v10158_v52, %v3705_v31  ;;  %vm3563_vm6 = vcmp.eq.s32.totalorder %v10208_v0, %v3553_v24 }
 0x2f7   : > { %8192 = vmatpush3.bf16.msra.mxu0 %v10368_v18  ;;  %8224 = vmatpush3.bf16.msra.mxu1 %v10368_v18  ;;  %v3706_v18 = vadd.s32 17, %v10472_v62  ;;  %vm3562_vm8 = vcmp.eq.s32.totalorder %v10158_v52, %v3553_v24  ;;  %v3708_v62 = vadd.s32 17, %v10497_v32 }
 0x2f8   : > { %8194 = vmatprep.subr.bf16.mxu0 %v10401_v35  ;;  %8226 = vmatprep.subr.bf16.mxu1 %v10401_v35  ;;  %v3554_v35 = vadd.s32 16, %v10476_v25 }
 0x2f9   : > { %7235 = vmatprep.mubr.msk.f32.mxu0 %vm3275_vm10, %v8480_v33  ;;  %7251 = vmatprep.mubr.msk.f32.mxu1 %vm3420_vm11, %v8480_v33  ;;  %vm3716_vm7 = vcmp.eq.s32.totalorder %v10208_v0, %v3706_v18  ;;  %vm3715_vm9 = vcmp.eq.s32.totalorder %v10158_v52, %v3706_v18 }
 0x2fa   : > { %7236 = vmatmul.mubr.msk.f32.gmra.mrb[12].mxu0 %vm3274_vm0, %v8480_v33  ;;  %7252 = vmatmul.mubr.msk.f32.gmra.mrb[12].mxu1 %vm3419_vm12, %v8480_v33  ;;  %vm3565_vm10 = vcmp.eq.s32.totalorder %v10208_v0, %v3554_v35  ;;  %vm3564_vm0 = vcmp.eq.s32.totalorder %v10158_v52, %v3554_v35 }
 0x2fb   : > { %8196 = vmatpush3.bf16.msra.mxu0 %v10431_v40  ;;  %8228 = vmatpush3.bf16.msra.mxu1 %v10431_v40  ;;  %v3707_v40 = vadd.s32 17, %v10476_v25  ;;  %v3556_v25 = vadd.s32 16, %v10524_v19 }
 0x2fc   : > { %8198 = vmatprep.subr.bf16.mxu0 %v10466_v30  ;;  %8230 = vmatprep.subr.bf16.mxu1 %v10466_v30  ;;  %v3555_v30 = vadd.s32 16, %v10497_v32  ;;  %v3557_v32 = vadd.s32 16, %v10555_v43 }
 0x2fd   : > { %7237 = vmatprep.mubr.msk.f32.mxu0 %vm3277_vm13, %v8480_v33  ;;  %7253 = vmatprep.mubr.msk.f32.mxu1 %vm3422_vm14, %v8480_v33  ;;  %vm3718_vm11 = vcmp.eq.s32.totalorder %v10208_v0, %v3707_v40  ;;  %vm3717_vm12 = vcmp.eq.s32.totalorder %v10158_v52, %v3707_v40  ;;  %vm3720_vm14 = vcmp.eq.s32.totalorder %v10208_v0, %v3708_v62 }
 0x2fe   : > { %7238 = vmatmul.mubr.msk.f32.gmra.mrb[14].mxu0 %vm3276_vm15, %v8480_v33  ;;  %7254 = vmatmul.mubr.msk.f32.gmra.mrb[14].mxu1 %vm3421_vm1, %v8480_v33  ;;  %vm3567_vm13 = vcmp.eq.s32.totalorder %v10208_v0, %v3555_v30  ;;  %vm3566_vm15 = vcmp.eq.s32.totalorder %v10158_v52, %v3555_v30  ;;  %vm3719_vm1 = vcmp.eq.s32.totalorder %v10158_v52, %v3708_v62 }
 0x2ff   : > { %8200 = vmatpush3.bf16.msra.mxu0 %v10478_v27  ;;  %8232 = vmatpush3.bf16.msra.mxu1 %v10478_v27  ;;  %v3709_v27 = vadd.s32 17, %v10524_v19  ;;  %v3920_v19 = vld [vmem:[%s11553_s3 + $0x8] sm:$0xff] }
 0x300   : > { %7255 = vmatprep.mubr.msk.f32.mxu0 %vm3561_vm2, %v8480_v33  ;;  %7271 = vmatprep.mubr.msk.f32.mxu1 %vm3714_vm3, %v8480_v33  ;;  %vm3569_vm2 = vcmp.eq.s32.totalorder %v10208_v0, %v3556_v25  ;;  %v8237_v7 = vpack.c.bf16 %v3920_v19, %v3919_v49 }
 0x301   : > { %vm3722_vm3 = vcmp.eq.s32.totalorder %v10208_v0, %v3709_v27 }
 0x302   : > { %7256 = vmatmul.mubr.msk.f32.vlgmr.msra.gmra.mrb[16].mxu0 %vm3560_vm4, %v8480_v33  ;;  %7272 = vmatmul.mubr.msk.f32.vlgmr.msra.gmra.mrb[16].mxu1 %vm3713_vm5, %v8480_v33  ;;  %vm3568_vm4 = vcmp.eq.s32.totalorder %v10158_v52, %v3556_v25  ;;  %vm3721_vm5 = vcmp.eq.s32.totalorder %v10158_v52, %v3709_v27 }
 0x303   : > { %7257 = vmatprep.mubr.msk.f32.mxu0 %vm3563_vm6, %v8480_v33  ;;  %7273 = vmatprep.mubr.msk.f32.mxu1 %vm3716_vm7, %v8480_v33  ;;  %vm3571_vm6 = vcmp.eq.s32.totalorder %v10208_v0, %v3557_v32  ;;  %vm3724_vm7 = vcmp.eq.s32.totalorder %v10208_v0, %v3710_v26 }
 0x304   : > { %8238 = vmatprep.subr.bf16.mxu0 %v8237_v7 }
 0x305   : > { %8240 = vmatpush3.bf16.msra.mxu0 %v8237_v7 }
 0x306   : > { %7258 = vmatmul.mubr.msk.f32.gmra.mrb[18].mxu0 %vm3562_vm8, %v8480_v33  ;;  %7274 = vmatmul.mubr.msk.f32.gmra.mrb[18].mxu1 %vm3715_vm9, %v8480_v33  ;;  %vm3570_vm8 = vcmp.eq.s32.totalorder %v10158_v52, %v3557_v32  ;;  %vm3723_vm9 = vcmp.eq.s32.totalorder %v10158_v52, %v3710_v26 }
 0x307   : > { %7259 = vmatprep.mubr.msk.f32.mxu0 %vm3565_vm10, %v8480_v33  ;;  %7275 = vmatprep.mubr.msk.f32.mxu1 %vm3718_vm11, %v8480_v33  ;;  %vm3573_vm10 = vcmp.eq.s32.totalorder %v10208_v0, %v3558_v22  ;;  %vm3726_vm11 = vcmp.eq.s32.totalorder %v10208_v0, %v3711_v12 }
 0x308   : > { %8242 = vmatprep.subr.bf16.mxu0 %v10766_v9 }
 0x30a   : > { %7260 = vmatmul.mubr.msk.f32.gmra.mrb[20].mxu0 %vm3564_vm0, %v8480_v33  ;;  %7276 = vmatmul.mubr.msk.f32.gmra.mrb[20].mxu1 %vm3717_vm12, %v8480_v33  ;;  %vm3572_vm0 = vcmp.eq.s32.totalorder %v10158_v52, %v3558_v22  ;;  %vm3725_vm12 = vcmp.eq.s32.totalorder %v10158_v52, %v3711_v12 }
 0x30b   : > { %7261 = vmatprep.mubr.msk.f32.mxu0 %vm3567_vm13, %v8480_v33  ;;  %7277 = vmatprep.mubr.msk.f32.mxu1 %vm3720_vm14, %v8480_v33  ;;  %vm3575_vm13 = vcmp.eq.s32.totalorder %v10208_v0, %v3559_v4  ;;  %vm3728_vm14 = vcmp.eq.s32.totalorder %v10208_v0, %v3712_v41 }
 0x30e   : > { %7262 = vmatmul.mubr.msk.f32.gmra.mrb[22].mxu0 %vm3566_vm15, %v8480_v33  ;;  %7278 = vmatmul.mubr.msk.f32.gmra.mrb[22].mxu1 %vm3719_vm1, %v8480_v33  ;;  %vm3574_vm15 = vcmp.eq.s32.totalorder %v10158_v52, %v3559_v4  ;;  %vm3727_vm1 = vcmp.eq.s32.totalorder %v10158_v52, %v3712_v41 }
 0x30f   : > { %7263 = vmatprep.mubr.msk.f32.mxu0 %vm3569_vm2, %v8480_v33  ;;  %7279 = vmatprep.mubr.msk.f32.mxu1 %vm3722_vm3, %v8480_v33  ;;  %vm11623_vm2 = vcmask 130048   ;;  %vm3871_vm3 = vcmp.ge.s32.totalorder %v10177_v16, 1 }
 0x310   : > { %3859 = vst.msk [vmem:[#allocation3] sm:$0xff] %vm11623_vm2, %v11898_v5  ;;  %3860 = vst.msk [vmem:[#allocation3 + $0x8] sm:$0xff] %vm11623_vm2, %v11898_v5  ;;  %v10755_v42 = vsel %vm3871_vm3, 1.0, %v11898_v5  ;;  %vm3894_vm3 = vcmp.le.s32.totalorder %v10559_v44, 6 }
 0x311   : > { %3861 = vst.msk [vmem:[#allocation3 + $0x50] sm:$0xff] %vm11623_vm2, %v11898_v5  ;;  %3862 = vst.msk [vmem:[#allocation3 + $0x58] sm:$0xff] %vm11623_vm2, %v11898_v5 }
 0x312   : > { %7264 = vmatmul.mubr.msk.f32.gmra.mrb[24].mxu0 %vm3568_vm4, %v8480_v33  ;;  %7280 = vmatmul.mubr.msk.f32.gmra.mrb[24].mxu1 %vm3721_vm5, %v8480_v33  ;;  %6663 = vst.msk [vmem:[#allocation5] sm:$0xff] %vm11623_vm2, %v11898_v5  ;;  %6664 = vst.msk [vmem:[#allocation5 + $0x8] sm:$0xff] %vm11623_vm2, %v11898_v5  ;;  %vm3872_vm4 = vcmp.ge.s32.totalorder %v10449_v38, 1  ;;  %vm3873_vm5 = vcmp.ge.s32.totalorder %v10454_v56, 1 }
 0x313   : > { %7265 = vmatprep.mubr.msk.f32.mxu0 %vm3571_vm6, %v8480_v33  ;;  %7281 = vmatprep.mubr.msk.f32.mxu1 %vm3724_vm7, %v8480_v33  ;;  %6665 = vst.msk [vmem:[#allocation5 + $0x50] sm:$0xff] %vm11623_vm2, %v11898_v5  ;;  %6666 = vst.msk [vmem:[#allocation5 + $0x58] sm:$0xff] %vm11623_vm2, %v11898_v5  ;;  %vm3874_vm6 = vcmp.ge.s32.totalorder %v10469_v45, 1  ;;  %vm3875_vm7 = vcmp.ge.s32.totalorder %v10482_v10, 1 }
 0x316   : > { %7266 = vmatmul.mubr.msk.f32.gmra.mrb[26].mxu0 %vm3570_vm8, %v8480_v33  ;;  %7282 = vmatmul.mubr.msk.f32.gmra.mrb[26].mxu1 %vm3723_vm9, %v8480_v33  ;;  %vm3876_vm8 = vcmp.ge.s32.totalorder %v10507_v23, 1  ;;  %vm3877_vm9 = vcmp.ge.s32.totalorder %v10532_v14, 1 }
 0x317   : > { %7267 = vmatprep.mubr.msk.f32.mxu0 %vm3573_vm10, %v8480_v33  ;;  %7283 = vmatprep.mubr.msk.f32.mxu1 %vm3726_vm11, %v8480_v33  ;;  %v3921_v37 = vld [vmem:[#allocation3 + $0x8] sm:$0xff]  ;;  %vm3878_vm10 = vcmp.ge.s32.totalorder %v10559_v44, 1  ;;  %vm3887_vm11 = vcmp.le.s32.totalorder %v10177_v16, 6 }
 0x318   : > { %v3903_v8 = vld [vmem:[#allocation3 + $0x7] sm:$0xff] }
 0x319   : > { %v3911_v43 = vmul.f32 %v3903_v8, %v10755_v42 }
 0x31a   : > { %7268 = vmatmul.mubr.msk.f32.gmra.mrb[28].mxu0 %vm3572_vm0, %v8480_v33  ;;  %7284 = vmatmul.mubr.msk.f32.gmra.mrb[28].mxu1 %vm3725_vm12, %v8480_v33  ;;  %vm3888_vm0 = vcmp.le.s32.totalorder %v10449_v38, 6  ;;  %vm3889_vm12 = vcmp.le.s32.totalorder %v10454_v56, 6 }
 0x31b   : > { %7269 = vmatprep.mubr.msk.f32.mxu0 %vm3575_vm13, %v8480_v33  ;;  %7285 = vmatprep.mubr.msk.f32.mxu1 %vm3728_vm14, %v8480_v33  ;;  %vm3890_vm13 = vcmp.le.s32.totalorder %v10469_v45, 6  ;;  %vm3891_vm14 = vcmp.le.s32.totalorder %v10482_v10, 6 }
 0x31e   : > { %7270 = vmatmul.mubr.msk.f32.gmra.mrb[30].mxu0 %vm3574_vm15, %v8480_v33  ;;  %7286 = vmatmul.mubr.msk.f32.gmra.mrb[30].mxu1 %vm3727_vm1, %v8480_v33  ;;  %v3929_v33 = vld [vmem:[%s11553_s3 + $0x10] sm:$0xff]  ;;  %vm3892_vm15 = vcmp.le.s32.totalorder %v10507_v23, 6  ;;  %vm3893_vm1 = vcmp.le.s32.totalorder %v10532_v14, 6 }
 0x31f   : > { %v8233_v53 = vpack.c.bf16 %v3930_v58, %v3929_v33  ;;  %7828 = vmatprep.mubr.msk.f32.mxu1 %vm11623_vm2, %v3921_v37  ;;  %7844 = vmatprep.mubr.msk.f32.mxu0 %vm11623_vm2, %v3911_v43 }
 0x321   : > { %8234 = vmatprep.subr.bf16.mxu1 %v8233_v53 }
 0x322   : > { %8236 = vmatpush3.bf16.msra.mxu1 %v8233_v53 }
 0x3b5   : > { %v7465_v29 = vpop.f32.mrb[0].mxu0  ;;  %v7521_v2 = vpop.f32.mrb[0].mxu1 }
 0x3b6   : > { %v7466_v57 = vpop.f32.mrb[1].mxu0  ;;  %v7522_v47 = vpop.f32.mrb[1].mxu1 }
 0x3b7   : > { %v7467_v3 = vadd.f32 %v7466_v57, %v7465_v29  ;;  %v7523_v21 = vadd.f32 %v7522_v47, %v7521_v2 }
 0x3b9   : > { %v3544_v1 = vmax.f32 %v7467_v3, %v7523_v21  ;;  %v7468_v17 = vpop.f32.mrb[2].mxu0  ;;  %v7524_v31 = vpop.f32.mrb[2].mxu1 }
 0x3ba   : > { %v7469_v24 = vpop.f32.mrb[3].mxu0  ;;  %v7525_v18 = vpop.f32.mrb[3].mxu1 }
 0x3bb   : > { %v7470_v35 = vadd.f32 %v7469_v24, %v7468_v17  ;;  %v7526_v40 = vadd.f32 %v7525_v18, %v7524_v31 }
 0x3bd   : > { %v3545_v30 = vmax.f32 %v7470_v35, %v7526_v40  ;;  %v7471_v62 = vpop.f32.mrb[4].mxu0  ;;  %v7527_v25 = vpop.f32.mrb[4].mxu1 }
 0x3be   : > { %v7472_v27 = vpop.f32.mrb[5].mxu0  ;;  %v7528_v32 = vpop.f32.mrb[5].mxu1 }
 0x3bf   : > { %v10769_v26 = vadd.f32 %v7472_v27, %v7471_v62  ;;  %v10771_v22 = vadd.f32 %v7528_v32, %v7527_v25 }
 0x3c1   : > { %v3546_v12 = vmax.f32 %v10769_v26, %v10771_v22  ;;  %v7474_v4 = vpop.f32.mrb[6].mxu0  ;;  %v7530_v41 = vpop.f32.mrb[6].mxu1 }
 0x3c2   : > { %v7475_v49 = vpop.f32.mrb[7].mxu0  ;;  %v7531_v19 = vpop.f32.mrb[7].mxu1 }
 0x3c3   : > { %v10775_v7 = vadd.f32 %v7475_v49, %v7474_v4  ;;  %v10777_v33 = vadd.f32 %v7531_v19, %v7530_v41 }
 0x3c5   : > { %v3547_v58 = vmax.f32 %v10775_v7, %v10777_v33  ;;  %v7477_v53 = vpop.f32.mrb[8].mxu0  ;;  %v7533_v37 = vpop.f32.mrb[8].mxu1 }
 0x3c6   : > { %v7478_v8 = vpop.f32.mrb[9].mxu0  ;;  %v7534_v43 = vpop.f32.mrb[9].mxu1 }
 0x3c7   : > { %v10781_v39 = vadd.f32 %v7478_v8, %v7477_v53  ;;  %v10783_v13 = vadd.f32 %v7534_v43, %v7533_v37 }
 0x3c9   : > { %v3548_v29 = vmax.f32 %v10781_v39, %v10783_v13  ;;  %v7480_v2 = vpop.f32.mrb[10].mxu0  ;;  %v7536_v57 = vpop.f32.mrb[10].mxu1 }
 0x3ca   : > { %v7481_v47 = vpop.f32.mrb[11].mxu0  ;;  %v7537_v3 = vpop.f32.mrb[11].mxu1 }
 0x3cb   : > { %v10787_v21 = vadd.f32 %v7481_v47, %v7480_v2  ;;  %v10789_v17 = vadd.f32 %v7537_v3, %v7536_v57 }
 0x3cd   : > { %v3549_v31 = vmax.f32 %v10787_v21, %v10789_v17  ;;  %v7483_v24 = vpop.f32.mrb[12].mxu0  ;;  %v7539_v18 = vpop.f32.mrb[12].mxu1 }
 0x3ce   : > { %v7484_v35 = vpop.f32.mrb[13].mxu0  ;;  %v7540_v40 = vpop.f32.mrb[13].mxu1 }
 0x3cf   : > { %v10793_v62 = vadd.f32 %v7484_v35, %v7483_v24  ;;  %v10795_v25 = vadd.f32 %v7540_v40, %v7539_v18 }
 0x3d1   : > { %v3550_v27 = vmax.f32 %v10793_v62, %v10795_v25  ;;  %v7486_v32 = vpop.f32.mrb[14].mxu0  ;;  %v7542_v26 = vpop.f32.mrb[14].mxu1 }
 0x3d2   : > { %v7487_v22 = vpop.f32.mrb[15].mxu0  ;;  %v7543_v4 = vpop.f32.mrb[15].mxu1 }
 0x3d3   : > { %v10799_v41 = vadd.f32 %v7487_v22, %v7486_v32  ;;  %v10801_v49 = vadd.f32 %v7543_v4, %v7542_v26 }
 0x3d5   : > { %v3551_v19 = vmax.f32 %v10799_v41, %v10801_v49  ;;  %v7577_v53 = vpop.f32.mrb[16].mxu0  ;;  %v7633_v37 = vpop.f32.mrb[16].mxu1  ;;  %v10918_v49 = vsel %vm3878_vm10, 1.0, %v11898_v5 }
 0x3d6   : > { %v7578_v8 = vpop.f32.mrb[17].mxu0  ;;  %v7634_v43 = vpop.f32.mrb[17].mxu1 }
 0x3d7   : > { %v7579_v2 = vadd.f32 %v7578_v8, %v7577_v53  ;;  %v7635_v57 = vadd.f32 %v7634_v43, %v7633_v37 }
 0x3d9   : > { %v3697_v47 = vmax.f32 %v3544_v1, %v7579_v2  ;;  %v7580_v3 = vpop.f32.mrb[18].mxu0  ;;  %v7636_v24 = vpop.f32.mrb[18].mxu1  ;;  %v10809_v2 = vsel %vm3872_vm4, 1.0, %v11898_v5 }
 0x3da   : > { %v7581_v18 = vpop.f32.mrb[19].mxu0  ;;  %v7637_v35 = vpop.f32.mrb[19].mxu1 }
 0x3db   : > { %v3850_v40 = vmax.f32 %v3697_v47, %v7635_v57  ;;  %v7582_v61 = vadd.f32 %v7581_v18, %v7580_v3  ;;  %v7638_v32 = vadd.f32 %v7637_v35, %v7636_v24 }
 0x3dd   : > { %3863 = vst.msk [vmem:[#allocation3 + $0x10] sm:$0xff] %vm11623_vm2, %v3850_v40  ;;  %v3698_v26 = vmax.f32 %v3545_v30, %v7582_v61  ;;  %v7583_v22 = vpop.f32.mrb[20].mxu0  ;;  %v7639_v4 = vpop.f32.mrb[20].mxu1  ;;  %v4360_v61 = vld [vmem:[%s11553_s3 + $0x30] sm:$0xff]  ;;  %v10833_v40 = vsel %vm3873_vm5, 1.0, %v11898_v5  ;;  %vm11622_vm5 = vcmask 523264  }
 0x3de   : > { %v7584_v36 = vpop.f32.mrb[21].mxu0  ;;  %v7640_v50 = vpop.f32.mrb[21].mxu1 }
 0x3df   : > { %v3851_v63 = vmax.f32 %v3698_v26, %v7638_v32  ;;  %v7585_v46 = vadd.f32 %v7584_v36, %v7583_v22  ;;  %v7641_v6 = vadd.f32 %v7640_v50, %v7639_v4  ;;  %v4361_v50 = vld [vmem:[%s11553_s3 + $0x38] sm:$0xff] }
 0x3e0   : > { %v10830_v24 = vpack.c.bf16 %v4361_v50, %v4360_v61 }
 0x3e1   : > { %3864 = vst.msk [vmem:[#allocation3 + $0x18] sm:$0xff] %vm11623_vm2, %v3851_v63  ;;  %v3699_v1 = vmax.f32 %v3546_v12, %v7585_v46  ;;  %v7586_v53 = vpop.f32.mrb[22].mxu0  ;;  %v7642_v37 = vpop.f32.mrb[22].mxu1 }
 0x3e2   : > { %v7587_v8 = vpop.f32.mrb[23].mxu0  ;;  %v7643_v43 = vpop.f32.mrb[23].mxu1 }
 0x3e3   : > { %v3852_v36 = vmax.f32 %v3699_v1, %v7641_v6  ;;  %v7588_v30 = vadd.f32 %v7587_v8, %v7586_v53  ;;  %v7644_v57 = vadd.f32 %v7643_v43, %v7642_v37 }
 0x3e4   : > { %v10818_v46 = vld [vmem:[#allocation3 + $0x10] sm:$0xff] }
 0x3e5   : > { %v10820_v63 = vld [vmem:[#allocation3 + $0xf] sm:$0xff]  ;;  %3865 = vst.msk [vmem:[#allocation3 + $0x20] sm:$0xff] %vm11623_vm2, %v3852_v36  ;;  %v3700_v12 = vmax.f32 %v3547_v58, %v7588_v30  ;;  %v7589_v47 = vpop.f32.mrb[24].mxu0  ;;  %7829 = vmatmul.mubr.msk.f32.vlgmr.msra.gmra.mrb[32].mxu1 %vm11623_vm2, %v10818_v46  ;;  %v7645_v3 = vpop.f32.mrb[24].mxu1 }
 0x3e6   : > { %v3912_v6 = vmul.f32 %v10820_v63, %v10809_v2  ;;  %v7590_v18 = vpop.f32.mrb[25].mxu0  ;;  %v7646_v35 = vpop.f32.mrb[25].mxu1 }
 0x3e7   : > { %v3853_v32 = vmax.f32 %v3700_v12, %v7644_v57  ;;  %v7591_v26 = vadd.f32 %v7590_v18, %v7589_v47  ;;  %v7647_v22 = vadd.f32 %v7646_v35, %v7645_v3  ;;  %v10869_v3 = vsel %vm3875_vm7, 1.0, %v11898_v5 }
 0x3e8   : > { %7845 = vmatmul.mubr.msk.f32.vlgmr.msra.gmra.mrb[32].mxu0 %vm11623_vm2, %v3912_v6  ;;  %v10837_v7 = vld [vmem:[#allocation3 + $0x18] sm:$0xff] }
 0x3e9   : > { %v10839_v33 = vld [vmem:[#allocation3 + $0x17] sm:$0xff]  ;;  %8244 = vmatpush3.bf16.msra.mxu0 %v10766_v9  ;;  %3866 = vst.msk [vmem:[#allocation3 + $0x28] sm:$0xff] %vm11623_vm2, %v3853_v32  ;;  %v3701_v58 = vmax.f32 %v3548_v29, %v7591_v26  ;;  %v7592_v4 = vpop.f32.mrb[26].mxu0  ;;  %7831 = vmatprep.mubr.msk.f32.mxu1 %vm11623_vm2, %v10837_v7  ;;  %v7648_v1 = vpop.f32.mrb[26].mxu1  ;;  %v10852_v9 = vsel %vm3874_vm6, 1.0, %v11898_v5 }
 0x3ea   : > { %v3913_v53 = vmul.f32 %v10839_v33, %v10833_v40  ;;  %8246 = vmatprep.subr.bf16.mxu0 %v10830_v24  ;;  %v7593_v37 = vpop.f32.mrb[27].mxu0  ;;  %v7649_v8 = vpop.f32.mrb[27].mxu1 }
 0x3eb   : > { %v3854_v43 = vmax.f32 %v3701_v58, %v7647_v22  ;;  %v7594_v61 = vadd.f32 %v7593_v37, %v7592_v4  ;;  %v7650_v50 = vadd.f32 %v7649_v8, %v7648_v1  ;;  %v10886_v1 = vsel %vm3876_vm8, 1.0, %v11898_v5 }
 0x3ec   : > { %7847 = vmatprep.mubr.msk.f32.mxu0 %vm11623_vm2, %v3913_v53  ;;  %v10856_v39 = vld [vmem:[#allocation3 + $0x20] sm:$0xff] }
 0x3ed   : > { %v10858_v13 = vld [vmem:[#allocation3 + $0x1f] sm:$0xff]  ;;  %3867 = vst.msk [vmem:[#allocation3 + $0x30] sm:$0xff] %vm11623_vm2, %v3854_v43  ;;  %v3702_v29 = vmax.f32 %v3549_v31, %v7594_v61  ;;  %v7595_v36 = vpop.f32.mrb[28].mxu0  ;;  %7832 = vmatmul.mubr.msk.f32.gmra.mrb[34].mxu1 %vm11623_vm2, %v10856_v39  ;;  %v7651_v30 = vpop.f32.mrb[28].mxu1  ;;  %v10903_v61 = vsel %vm3877_vm9, 1.0, %v11898_v5 }
 0x3ee   : > { %v3914_v57 = vmul.f32 %v10858_v13, %v10852_v9  ;;  %v7596_v12 = vpop.f32.mrb[29].mxu0  ;;  %v7652_v47 = vpop.f32.mrb[29].mxu1  ;;  %v4354_v55 = vmul.f32 %v10858_v13, %v10833_v40 }
 0x3ef   : > { %v3855_v6 = vmax.f32 %v3702_v29, %v7650_v50  ;;  %v7597_v18 = vadd.f32 %v7596_v12, %v7595_v36  ;;  %v7653_v35 = vadd.f32 %v7652_v47, %v7651_v30  ;;  %v4189_v30 = vld [vmem:[#allocation3 + $0x9] sm:$0xff] }
 0x3f0   : > { %7848 = vmatmul.mubr.msk.f32.gmra.mrb[34].mxu0 %vm11623_vm2, %v3914_v57  ;;  %v10873_v21 = vld [vmem:[#allocation3 + $0x28] sm:$0xff] }
 0x3f1   : > { %v10875_v17 = vld [vmem:[#allocation3 + $0x27] sm:$0xff]  ;;  %3868 = vst.msk [vmem:[#allocation3 + $0x38] sm:$0xff] %vm11623_vm2, %v3855_v6  ;;  %v3703_v31 = vmax.f32 %v3550_v27, %v7597_v18  ;;  %v7598_v32 = vpop.f32.mrb[30].mxu0  ;;  %7834 = vmatprep.mubr.msk.f32.mxu1 %vm11623_vm2, %v10873_v21  ;;  %v7654_v26 = vpop.f32.mrb[30].mxu1  ;;  %v10936_v18 = vsel %vm3888_vm0, 1.0, %v11898_v5 }
 0x3f2   : > { %v3915_v22 = vmul.f32 %v10875_v17, %v10869_v3  ;;  %v7599_v58 = vpop.f32.mrb[31].mxu0  ;;  %v7655_v4 = vpop.f32.mrb[31].mxu1 }
 0x3f3   : > { %v3856_v53 = vmax.f32 %v3703_v31, %v7653_v35  ;;  %v7600_v37 = vadd.f32 %v7599_v58, %v7598_v32  ;;  %v7656_v8 = vadd.f32 %v7655_v4, %v7654_v26  ;;  %v10938_v35 = vld [vmem:[#allocation3 + $0x11] sm:$0xff]  ;;  %v10948_v26 = vsel %vm3889_vm12, 1.0, %v11898_v5 }
 0x3f4   : > { %7850 = vmatprep.mubr.msk.f32.mxu0 %vm11623_vm2, %v3915_v22  ;;  %v10890_v62 = vld [vmem:[#allocation3 + $0x30] sm:$0xff]  ;;  %v4508_v32 = vld [vmem:[%s11553_s3 + $0x48] sm:$0xff]  ;;  %v4198_v58 = vmul.f32 %v10938_v35, %v10936_v18  ;;  %vm5646_vm12 = vcmask 31744  }
 0x3f5   : > { %v10892_v25 = vld [vmem:[#allocation3 + $0x2f] sm:$0xff]  ;;  %3869 = vst.msk [vmem:[#allocation3 + $0x40] sm:$0xff] %vm11623_vm2, %v3856_v53  ;;  %v3704_v27 = vmax.f32 %v3551_v19, %v7600_v37  ;;  %7835 = vmatmul.mubr.msk.f32.gmra.mrb[36].mxu1 %vm11623_vm2, %v10890_v62  ;;  %v10922_v19 = vsel %vm3887_vm11, 1.0, %v11898_v5  ;;  %v10950_v22 = vld [vmem:[#allocation3 + $0x19] sm:$0xff]  ;;  %v10960_v37 = vsel %vm3890_vm13, 1.0, %v11898_v5  ;;  %vm5673_vm13 = vcmask 1043456  }
 0x3f6   : > { %v3916_v43 = vmul.f32 %v10892_v25, %v10886_v1  ;;  %v4197_v6 = vmul.f32 %v4189_v30, %v10922_v19  ;;  %v4507_v31 = vld [vmem:[%s11553_s3 + $0x40] sm:$0xff]  ;;  %v4199_v53 = vmul.f32 %v10950_v22, %v10948_v26  ;;  %v10979_v30 = vsel %vm3892_vm15, 1.0, %v11898_v5  ;;  %5647 = vst.msk [vmem:[#allocation4] sm:$0xff] %vm5646_vm12, %v11898_v5  ;;  %5648 = vst.msk [vmem:[#allocation4 + $0x18] sm:$0xff] %vm5646_vm12, %v11898_v5 }
 0x3f7   : > { %v3857_v50 = vmax.f32 %v3704_v27, %v7656_v8  ;;  %v8249_v4 = vpack.c.bf16 %v4508_v32, %v4507_v31  ;;  %v10962_v8 = vld [vmem:[#allocation3 + $0x21] sm:$0xff]  ;;  %v10966_v27 = vsel %vm3891_vm14, 1.0, %v11898_v5 }
 0x3f8   : > { %7851 = vmatmul.mubr.msk.f32.gmra.mrb[36].mxu0 %vm11623_vm2, %v3916_v43  ;;  %v10907_v29 = vld [vmem:[#allocation3 + $0x38] sm:$0xff]  ;;  %v10968_v43 = vld [vmem:[#allocation3 + $0x29] sm:$0xff] }
 0x3f9   : > { %v10909_v36 = vld [vmem:[#allocation3 + $0x37] sm:$0xff]  ;;  %3870 = vst.msk [vmem:[#allocation3 + $0x48] sm:$0xff] %vm11623_vm2, %v3857_v50  ;;  %7837 = vmatprep.mubr.msk.f32.mxu1 %vm11623_vm2, %v10907_v29  ;;  %v4200_v50 = vmul.f32 %v10962_v8, %v10960_v37 }
 0x3fa   : > { %v3917_v41 = vmul.f32 %v10909_v36, %v10903_v61 }
 0x3fc   : > { %7853 = vmatprep.mubr.msk.f32.mxu0 %vm11623_vm2, %v3917_v41  ;;  %v10925_v57 = vld [vmem:[#allocation3 + $0x40] sm:$0xff]  ;;  %v4201_v41 = vmul.f32 %v10968_v43, %v10966_v27 }
 0x3fd   : > { %v10927_v12 = vld [vmem:[#allocation3 + $0x3f] sm:$0xff]  ;;  %7838 = vmatmul.mubr.msk.f32.gmra.mrb[38].mxu1 %vm11623_vm2, %v10925_v57 }
 0x3fe   : > { %v3918_v47 = vmul.f32 %v10927_v12, %v10918_v49 }
 0x400   : > { %7854 = vmatmul.mubr.msk.f32.gmra.mrb[38].mxu0 %vm11623_vm2, %v3918_v47  ;;  %v10981_v47 = vld [vmem:[#allocation3 + $0x31] sm:$0xff] }
 0x401   : > { %7860 = vmatprep.mubr.msk.f32.mxu0 %vm11623_vm2, %v4197_v6  ;;  %v10985_v6 = vsel %vm3893_vm1, 1.0, %v11898_v5  ;;  %v4202_v31 = vmul.f32 %v10981_v47, %v10979_v30 }
 0x404   : > { %7861 = vmatmul.mubr.msk.f32.vlgmr.msra.gmra.mrb[32].mxu0 %vm11623_vm2, %v4198_v58  ;;  %v10996_v58 = vsel %vm3894_vm3, 1.0, %v11898_v5 }
 0x405   : > { %7863 = vmatprep.mubr.msk.f32.mxu0 %vm11623_vm2, %v4199_v53  ;;  %8248 = vmatpush3.bf16.msra.mxu0 %v10830_v24  ;;  %v10987_v24 = vld [vmem:[#allocation3 + $0x39] sm:$0xff]  ;;  %v10998_v53 = vld [vmem:[#allocation3 + $0x41] sm:$0xff] }
 0x406   : > { %8250 = vmatprep.subr.bf16.mxu0 %v8249_v4  ;;  %v4203_v32 = vmul.f32 %v10987_v24, %v10985_v6 }
 0x408   : > { %7864 = vmatmul.mubr.msk.f32.gmra.mrb[34].mxu0 %vm11623_vm2, %v4200_v50  ;;  %v4204_v50 = vmul.f32 %v10998_v53, %v10996_v58 }
 0x409   : > { %7866 = vmatprep.mubr.msk.f32.mxu0 %vm11623_vm2, %v4201_v41  ;;  %v4352_v41 = vmul.f32 %v10820_v63, %v10755_v42  ;;  %v4355_v63 = vmul.f32 %v10875_v17, %v10852_v9 }
 0x40c   : > { %7867 = vmatmul.mubr.msk.f32.gmra.mrb[36].mxu0 %vm11623_vm2, %v4202_v31  ;;  %v4353_v31 = vmul.f32 %v10839_v33, %v10809_v2 }
 0x40d   : > { %7869 = vmatprep.mubr.msk.f32.mxu0 %vm11623_vm2, %v4203_v32  ;;  %v8253_v32 = vpack.c.bf16 %v4663_v60, %v4662_v54  ;;  %v4357_v60 = vmul.f32 %v10909_v36, %v10886_v1  ;;  %v4358_v54 = vmul.f32 %v10927_v12, %v10903_v61 }
 0x410   : > { %7870 = vmatmul.mubr.msk.f32.gmra.mrb[38].mxu0 %vm11623_vm2, %v4204_v50  ;;  %v4356_v50 = vmul.f32 %v10892_v25, %v10869_v3 }
 0x411   : > { %7876 = vmatprep.mubr.msk.f32.mxu0 %vm11623_vm2, %v4352_v41  ;;  %v4351_v41 = vld [vmem:[#allocation3 + $0x47] sm:$0xff] }
 0x414   : > { %7877 = vmatmul.mubr.msk.f32.vlgmr.msra.gmra.mrb[32].mxu0 %vm11623_vm2, %v4353_v31  ;;  %v4818_v31 = vld [vmem:[%s11553_s3 + $0x68] sm:$0xff] }
 0x415   : > { %7879 = vmatprep.mubr.msk.f32.mxu0 %vm11623_vm2, %v4354_v55  ;;  %8252 = vmatpush3.bf16.msra.mxu0 %v8249_v4  ;;  %v4359_v55 = vmul.f32 %v4351_v41, %v10918_v49  ;;  %v4817_v4 = vld [vmem:[%s11553_s3 + $0x60] sm:$0xff] }
 0x416   : > { %8254 = vmatprep.subr.bf16.mxu0 %v8253_v32 }
 0x418   : > { %7880 = vmatmul.mubr.msk.f32.gmra.mrb[34].mxu0 %vm11623_vm2, %v4355_v63  ;;  %v8257_v63 = vpack.c.bf16 %v4818_v31, %v4817_v4  ;;  %v4656_v4 = vmul.f32 %v10962_v8, %v10948_v26  ;;  %v4658_v31 = vmul.f32 %v10981_v47, %v10966_v27 }
 0x419   : > { %7882 = vmatprep.mubr.msk.f32.mxu0 %vm11623_vm2, %v4356_v50  ;;  %v4654_v50 = vmul.f32 %v10938_v35, %v10922_v19  ;;  %v4657_v35 = vmul.f32 %v10968_v43, %v10960_v37 }
 0x41c   : > { %7883 = vmatmul.mubr.msk.f32.gmra.mrb[36].mxu0 %vm11623_vm2, %v4357_v60  ;;  %v4965_v60 = vld [vmem:[%s11553_s3 + $0x78] sm:$0xff] }
 0x41d   : > { %7885 = vmatprep.mubr.msk.f32.mxu0 %vm11623_vm2, %v4358_v54  ;;  %v4655_v54 = vmul.f32 %v10950_v22, %v10936_v18 }
 0x420   : > { %7886 = vmatmul.mubr.msk.f32.gmra.mrb[38].mxu0 %vm11623_vm2, %v4359_v55 }
 0x421   : > { %7892 = vmatprep.mubr.msk.f32.mxu0 %vm11623_vm2, %v10818_v46  ;;  %v4506_v46 = vld [vmem:[#allocation3 + $0x48] sm:$0xff] }
 0x424   : > { %7893 = vmatmul.mubr.msk.f32.vlgmr.msra.gmra.mrb[32].mxu0 %vm11623_vm2, %v10837_v7 }
 0x425   : > { %7895 = vmatprep.mubr.msk.f32.mxu0 %vm11623_vm2, %v10856_v39  ;;  %8256 = vmatpush3.bf16.msra.mxu0 %v8253_v32  ;;  %v4964_v32 = vld [vmem:[%s11553_s3 + $0x70] sm:$0xff] }
 0x426   : > { %8258 = vmatprep.subr.bf16.mxu0 %v8257_v63  ;;  %v8261_v55 = vpack.c.bf16 %v4965_v60, %v4964_v32  ;;  %v4660_v32 = vmul.f32 %v10998_v53, %v10985_v6  ;;  %v4653_v60 = vld [vmem:[#allocation3 + $0x49] sm:$0xff] }
 0x428   : > { %7896 = vmatmul.mubr.msk.f32.gmra.mrb[34].mxu0 %vm11623_vm2, %v10873_v21 }
 0x429   : > { %7898 = vmatprep.mubr.msk.f32.mxu0 %vm11623_vm2, %v10890_v62 }
 0x42c   : > { %7899 = vmatmul.mubr.msk.f32.gmra.mrb[36].mxu0 %vm11623_vm2, %v10907_v29 }
 0x42d   : > { %7901 = vmatprep.mubr.msk.f32.mxu0 %vm11623_vm2, %v10925_v57 }
 0x430   : > { %7902 = vmatmul.mubr.msk.f32.gmra.mrb[38].mxu0 %vm11623_vm2, %v4506_v46 }
 0x431   : > { %7908 = vmatprep.mubr.msk.f32.mxu0 %vm11623_vm2, %v4654_v50  ;;  %v4659_v50 = vmul.f32 %v10987_v24, %v10979_v30 }
 0x434   : > { %7909 = vmatmul.mubr.msk.f32.vlgmr.msra.gmra.mrb[32].mxu0 %vm11623_vm2, %v4655_v54  ;;  %v4809_v54 = vmul.f32 %v10839_v33, %v10755_v42  ;;  %v4812_v33 = vmul.f32 %v10892_v25, %v10852_v9 }
 0x435   : > { %7911 = vmatprep.mubr.msk.f32.mxu0 %vm11623_vm2, %v4656_v4  ;;  %8260 = vmatpush3.bf16.msra.mxu0 %v8257_v63  ;;  %v4661_v63 = vmul.f32 %v4653_v60, %v10996_v58  ;;  %v5119_v4 = vld [vmem:[%s11553_s3 + $0x80] sm:$0xff] }
 0x436   : > { %8262 = vmatprep.subr.bf16.mxu0 %v8261_v55 }
 0x438   : > { %7912 = vmatmul.mubr.msk.f32.gmra.mrb[34].mxu0 %vm11623_vm2, %v4657_v35  ;;  %v5120_v35 = vld [vmem:[%s11553_s3 + $0x88] sm:$0xff] }
 0x439   : > { %7914 = vmatprep.mubr.msk.f32.mxu0 %vm11623_vm2, %v4658_v31  ;;  %v4810_v31 = vmul.f32 %v10858_v13, %v10809_v2  ;;  %v4814_v13 = vmul.f32 %v10927_v12, %v10886_v1  ;;  %v5116_v12 = vmul.f32 %v10998_v53, %v10979_v30 }
 0x43c   : > { %7915 = vmatmul.mubr.msk.f32.gmra.mrb[36].mxu0 %vm11623_vm2, %v4659_v50  ;;  %v8265_v50 = vpack.c.bf16 %v5120_v35, %v5119_v4  ;;  %v11150_v4 = vand.u32 3, %v11859_v59 }
 0x43d   : > { %7917 = vmatprep.mubr.msk.f32.mxu0 %vm11623_vm2, %v4660_v32  ;;  %v4811_v32 = vmul.f32 %v10875_v17, %v10833_v40  ;;  %v4815_v17 = vmul.f32 %v4351_v41, %v10903_v61 }
 0x43e   : > { %vm5651_vm14 = vcmp.ge.s32.totalorder %v11150_v4, 1  ;;  %vm5655_vm1 = vcmp.le.s32.totalorder %v11150_v4, 2 }
 0x440   : > { %7918 = vmatmul.mubr.msk.f32.gmra.mrb[38].mxu0 %vm11623_vm2, %v4661_v63  ;;  %v4813_v63 = vmul.f32 %v10909_v36, %v10869_v3  ;;  %v4963_v36 = vld [vmem:[#allocation3 + $0x50] sm:$0xff] }
 0x441   : > { %7924 = vmatprep.mubr.msk.f32.mxu0 %vm11623_vm2, %v4809_v54  ;;  %v4808_v54 = vld [vmem:[#allocation3 + $0x4f] sm:$0xff] }
 0x442   : > { %v4816_v25 = vmul.f32 %v4808_v54, %v10918_v49 }
 0x444   : > { %7925 = vmatmul.mubr.msk.f32.vlgmr.msra.gmra.mrb[32].mxu0 %vm11623_vm2, %v4810_v31  ;;  %v5289_v31 = vmul.u32 2, %v11150_v4 }
 0x445   : > { %7927 = vmatprep.mubr.msk.f32.mxu0 %vm11623_vm2, %v4811_v32  ;;  %8264 = vmatpush3.bf16.msra.mxu0 %v8261_v55 }
 0x446   : > { %8266 = vmatprep.subr.bf16.mxu0 %v8265_v50 }
 0x448   : > { %7928 = vmatmul.mubr.msk.f32.gmra.mrb[34].mxu0 %vm11623_vm2, %v4812_v33 }
 0x449   : > { %7930 = vmatprep.mubr.msk.f32.mxu0 %vm11623_vm2, %v4813_v63 }
 0x44c   : > { %7931 = vmatmul.mubr.msk.f32.gmra.mrb[36].mxu0 %vm11623_vm2, %v4814_v13 }
 0x44d   : > { %7933 = vmatprep.mubr.msk.f32.mxu0 %vm11623_vm2, %v4815_v17  ;;  %v7359_v17 = vld [vmem:[%s11554_s4] ss:$0 sm:$0xff] }
 0x450   : > { %7934 = vmatmul.mubr.msk.f32.gmra.mrb[38].mxu0 %vm11623_vm2, %v4816_v25 }
 0x451   : > { %7940 = vmatprep.mubr.msk.f32.mxu0 %vm11623_vm2, %v10837_v7  ;;  %v5111_v7 = vmul.f32 %v10950_v22, %v10922_v19  ;;  %v5117_v22 = vmul.f32 %v4653_v60, %v10985_v6 }
 0x454   : > { %7941 = vmatmul.mubr.msk.f32.vlgmr.msra.gmra.mrb[32].mxu0 %vm11623_vm2, %v10856_v39  ;;  %v5112_v39 = vmul.f32 %v10962_v8, %v10936_v18 }
 0x455   : > { %7943 = vmatprep.mubr.msk.f32.mxu0 %vm11623_vm2, %v10873_v21  ;;  %8268 = vmatpush3.bf16.msra.mxu0 %v8265_v50  ;;  %v5113_v21 = vmul.f32 %v10968_v43, %v10948_v26 }
 0x458   : > { %7944 = vmatmul.mubr.msk.f32.gmra.mrb[34].mxu0 %vm11623_vm2, %v10890_v62  ;;  %v5114_v62 = vmul.f32 %v10981_v47, %v10960_v37 }
 0x459   : > { %7946 = vmatprep.mubr.msk.f32.mxu0 %vm11623_vm2, %v10907_v29  ;;  %v5115_v29 = vmul.f32 %v10987_v24, %v10966_v27 }
 0x45c   : > { %7947 = vmatmul.mubr.msk.f32.gmra.mrb[36].mxu0 %vm11623_vm2, %v10925_v57  ;;  %v5110_v57 = vld [vmem:[#allocation3 + $0x51] sm:$0xff] }
 0x45d   : > { %7949 = vmatprep.mubr.msk.f32.mxu0 %vm11623_vm2, %v4506_v46  ;;  %v5118_v8 = vmul.f32 %v5110_v57, %v10996_v58  ;;  %v5283_v46 = vshra.s32 %v11859_v59, 2 }
 0x45f   : > { %v5285_v53 = vmul.u32 2, %v5283_v46 }
 0x460   : > { %7950 = vmatmul.mubr.msk.f32.gmra.mrb[38].mxu0 %vm11623_vm2, %v4963_v36 }
 0x461   : > { %7956 = vmatprep.mubr.msk.f32.mxu0 %vm11623_vm2, %v5111_v7  ;;  %v5287_v35 = vmul.u32 8, %v5285_v53 }
 0x463   : > { %v11153_v50 = vadd.s32 %v5289_v31, %v5287_v35 }
 0x464   : > { %7957 = vmatmul.mubr.msk.f32.vlgmr.msra.gmra.mrb[32].mxu0 %vm11623_vm2, %v5112_v39 }
 0x465   : > { %7959 = vmatprep.mubr.msk.f32.mxu0 %vm11623_vm2, %v5113_v21  ;;  %vm5293_vm4 = vcmp.eq.s32.totalorder %v10158_v52, %v11153_v50 }
 0x466   : > { %v5295_v32 = vsel %vm5293_vm4, 1.0, %v11898_v5 }
 0x467   : > { %7984 = vmatprep.mubr.msk.f32.mxu1 %vm11622_vm5, %v5295_v32  ;;  %v11166_v32 = vand.u32 3, %v11885_v11 }
 0x468   : > { %7960 = vmatmul.mubr.msk.f32.gmra.mrb[34].mxu0 %vm11623_vm2, %v5114_v62  ;;  %v5284_v62 = vshra.s32 %v11885_v11, 2 }
 0x469   : > { %7962 = vmatprep.mubr.msk.f32.mxu0 %vm11623_vm2, %v5115_v29  ;;  %vm5652_vm15 = vcmp.ge.s32.totalorder %v11166_v32, 1  ;;  %vm5656_vm3 = vcmp.le.s32.totalorder %v11166_v32, 2 }
 0x46a   : > { %v5658_v4 = vsel %vm5656_vm3, 1.0, %v11898_v5 }
 0x46c   : > { %7963 = vmatmul.mubr.msk.f32.gmra.mrb[36].mxu0 %vm11623_vm2, %v5116_v12 }
 0x46d   : > { %7965 = vmatprep.mubr.msk.f32.mxu0 %vm11623_vm2, %v5117_v22 }
 0x470   : > { %7966 = vmatmul.mubr.msk.f32.gmra.mrb[38].mxu0 %vm11623_vm2, %v5118_v8 }
 0x4b8   : > { %v7830_v43 = vpop.f32.mrb[32].mxu1 }
 0x4b9   : > { %v4021_v47 = vpop.f32.mrb[33].mxu1 }
 0x4c0   : > { %v7833_v24 = vpop.f32.mrb[34].mxu1 }
 0x4c1   : > { %v4031_v41 = vpop.f32.mrb[35].mxu1 }
 0x4c8   : > { %v7836_v55 = vpop.f32.mrb[36].mxu1 }
 0x4c9   : > { %v4041_v60 = vpop.f32.mrb[37].mxu1 }
 0x4d0   : > { %v7839_v33 = vpop.f32.mrb[38].mxu1 }
 0x4d1   : > { %v4051_v63 = vpop.f32.mrb[39].mxu1 }
 0x537   : > { %v7958_v13 = vpop.f32.mrb[32].mxu0 }
 0x538   : > { %v8353_v54 = vadd.f32 %v7958_v13, %v7830_v43  ;;  %v5211_v25 = vpop.f32.mrb[33].mxu0  ;;  %v5286_v43 = vmul.u32 2, %v5284_v62 }
 0x539   : > { %v8354_v36 = vadd.f32 %v5211_v25, %v4021_v47 }
 0x53a   : > { %v5266_v7 = vadd.f32 %v8353_v54, %v7359_v17 }
 0x53b   : > { %v5265_v39 = vadd.f32 %v8354_v36, %v7359_v17  ;;  %v7961_v21 = vpop.f32.mrb[34].mxu0 }
 0x53c   : > { %v5274_v29 = vmax.f32 %v5266_v7, 0.0  ;;  %v8355_v57 = vadd.f32 %v7961_v21, %v7833_v24  ;;  %v5221_v12 = vpop.f32.mrb[35].mxu0  ;;  %v5288_v21 = vmul.u32 8, %v5286_v43 }
 0x53d   : > { %v5273_v22 = vmax.f32 %v5265_v39, 0.0  ;;  %v8356_v8 = vadd.f32 %v5221_v12, %v4031_v41 }
 0x53e   : > { %v5268_v46 = vadd.f32 %v8355_v57, %v7359_v17 }
 0x53f   : > { %v11163_v53 = vpack.c.bf16 %v5274_v29, %v5273_v22  ;;  %v5267_v35 = vadd.f32 %v8356_v8, %v7359_v17  ;;  %v7964_v31 = vpop.f32.mrb[36].mxu0  ;;  %v5290_v29 = vmul.u32 2, %v11166_v32 }
 0x540   : > { %v5276_v47 = vmax.f32 %v5268_v46, 0.0  ;;  %v8357_v13 = vadd.f32 %v7964_v31, %v7836_v55  ;;  %v5231_v54 = vpop.f32.mrb[37].mxu0 }
 0x541   : > { %v5275_v25 = vmax.f32 %v5267_v35, 0.0  ;;  %v8358_v36 = vadd.f32 %v5231_v54, %v4041_v60  ;;  %8270 = vmatprep.subr.bf16.mxu1 %v11163_v53  ;;  %v5292_v35 = vadd.s32 %v5290_v29, %v5288_v21  ;;  %v5468_v54 = vadd.s32 8, %v11153_v50 }
 0x542   : > { %v5270_v24 = vadd.f32 %v8357_v13, %v7359_v17  ;;  %8272 = vmatpush3.bf16.msra.mxu1 %v11163_v53 }
 0x543   : > { %v11170_v41 = vpack.c.bf16 %v5276_v47, %v5275_v25  ;;  %v5269_v7 = vadd.f32 %v8358_v36, %v7359_v17  ;;  %v7967_v39 = vpop.f32.mrb[38].mxu0  ;;  %v5379_v47 = vadd.s32 1, %v11153_v50  ;;  %vm5294_vm6 = vcmp.eq.s32.totalorder %v10158_v52, %v5292_v35 }
 0x544   : > { %v5278_v57 = vmax.f32 %v5270_v24, 0.0  ;;  %v8359_v12 = vadd.f32 %v7967_v39, %v7839_v33  ;;  %v5241_v62 = vpop.f32.mrb[39].mxu0  ;;  %v5296_v33 = vsel %vm5294_vm6, 1.0, %v11898_v5  ;;  %vm5470_vm9 = vcmp.eq.s32.totalorder %v10158_v52, %v5468_v54 }
 0x545   : > { %v5277_v22 = vmax.f32 %v5269_v7, 0.0  ;;  %v8360_v55 = vadd.f32 %v5241_v62, %v4051_v63  ;;  %8274 = vmatprep.subr.bf16.mxu1 %v11170_v41  ;;  %vm5381_vm7 = vcmp.eq.s32.totalorder %v10158_v52, %v5379_v47  ;;  %v5472_v36 = vsel %vm5470_vm9, 1.0, %v11898_v5 }
 0x546   : > { %v5272_v60 = vadd.f32 %v8359_v12, %v7359_v17  ;;  %8276 = vmatpush3.bf16.msra.mxu1 %v11170_v41  ;;  %v5383_v63 = vsel %vm5381_vm7, 1.0, %v11898_v5  ;;  %v5469_v24 = vadd.s32 8, %v5292_v35  ;;  %v5557_v7 = vadd.s32 9, %v11153_v50 }
 0x547   : > { %v8277_v8 = vpack.c.bf16 %v5278_v57, %v5277_v22  ;;  %v5271_v46 = vadd.f32 %v8360_v55, %v7359_v17  ;;  %v5380_v17 = vadd.s32 1, %v5292_v35  ;;  %v5558_v50 = vadd.s32 9, %v5292_v35 }
 0x548   : > { %v5280_v31 = vmax.f32 %v5272_v60, 0.0  ;;  %vm5471_vm10 = vcmp.eq.s32.totalorder %v10158_v52, %v5469_v24  ;;  %vm5559_vm11 = vcmp.eq.s32.totalorder %v10158_v52, %v5557_v7  ;;  %v5840_v24 = vld [vmem:[%s11555_s5 + $0x8] sm:$0xf]  ;;  %v5654_v7 = vsel %vm5652_vm15, 1.0, %v11898_v5 }
 0x549   : > { %v5279_v13 = vmax.f32 %v5271_v46, 0.0  ;;  %8278 = vmatprep.subr.bf16.mxu1 %v8277_v8  ;;  %vm5382_vm8 = vcmp.eq.s32.totalorder %v10158_v52, %v5380_v17  ;;  %v5473_v39 = vsel %vm5471_vm10, 1.0, %v11898_v5  ;;  %v5561_v21 = vsel %vm5559_vm11, 1.0, %v11898_v5 }
 0x54a   : > { %8280 = vmatpush3.bf16.msra.mxu1 %v8277_v8  ;;  %v5384_v25 = vsel %vm5382_vm8, 1.0, %v11898_v5  ;;  %vm5560_vm0 = vcmp.eq.s32.totalorder %v10158_v52, %v5558_v50 }
 0x54b   : > { %v8281_v43 = vpack.c.bf16 %v5280_v31, %v5279_v13  ;;  %v5562_v29 = vsel %vm5560_vm0, 1.0, %v11898_v5 }
 0x54d   : > { %8282 = vmatprep.subr.bf16.mxu1 %v8281_v43 }
 0x54e   : > { %8284 = vmatpush3.bf16.msra.mxu1 %v8281_v43 }
 0x54f   : > { %8286 = vmatprep.subr.bf16.mxu1 %v11163_v53 }
 0x551   : > { %7985 = vmatmul.mubr.msk.f32.vlgmr.msra.gmra.mrb[40].mxu1 %vm11622_vm5, %v5296_v33 }
 0x552   : > { %8288 = vmatpush3.bf16.msra.mxu1 %v11163_v53  ;;  %8003 = vmatprep.mubr.msk.f32.mxu1 %vm11622_vm5, %v5383_v63  ;;  %v5653_v63 = vsel %vm5651_vm14, 1.0, %v11898_v5 }
 0x553   : > { %8290 = vmatprep.subr.bf16.mxu1 %v11170_v41 }
 0x556   : > { %8292 = vmatpush3.bf16.msra.mxu1 %v11170_v41 }
 0x557   : > { %8294 = vmatprep.subr.bf16.mxu1 %v8277_v8 }
 0x55a   : > { %8296 = vmatpush3.bf16.msra.mxu1 %v8277_v8 }
 0x55b   : > { %8298 = vmatprep.subr.bf16.mxu1 %v8281_v43 }
 0x55e   : > { %8300 = vmatpush3.bf16.msra.mxu1 %v8281_v43 }
 0x55f   : > { %8302 = vmatprep.subr.bf16.mxu1 %v11163_v53 }
 0x561   : > { %8004 = vmatmul.mubr.msk.f32.vlgmr.msra.gmra.mrb[42].mxu1 %vm11622_vm5, %v5384_v25 }
 0x562   : > { %8304 = vmatpush3.bf16.msra.mxu1 %v11163_v53  ;;  %8022 = vmatprep.mubr.msk.f32.mxu1 %vm11622_vm5, %v5472_v36 }
 0x563   : > { %8306 = vmatprep.subr.bf16.mxu1 %v11170_v41 }
 0x566   : > { %8308 = vmatpush3.bf16.msra.mxu1 %v11170_v41 }
 0x567   : > { %8310 = vmatprep.subr.bf16.mxu1 %v8277_v8 }
 0x56a   : > { %8312 = vmatpush3.bf16.msra.mxu1 %v8277_v8 }
 0x56b   : > { %8314 = vmatprep.subr.bf16.mxu1 %v8281_v43 }
 0x56e   : > { %8316 = vmatpush3.bf16.msra.mxu1 %v8281_v43 }
 0x56f   : > { %8318 = vmatprep.subr.bf16.mxu1 %v11163_v53 }
 0x571   : > { %8023 = vmatmul.mubr.msk.f32.vlgmr.msra.gmra.mrb[44].mxu1 %vm11622_vm5, %v5473_v39 }
 0x572   : > { %8320 = vmatpush3.bf16.msra.mxu1 %v11163_v53  ;;  %8041 = vmatprep.mubr.msk.f32.mxu1 %vm11622_vm5, %v5561_v21  ;;  %v5666_v53 = vld [vmem:[%s11555_s5 + $0x4] sm:$0xf]  ;;  %v5657_v21 = vsel %vm5655_vm1, 1.0, %v11898_v5 }
 0x573   : > { %8322 = vmatprep.subr.bf16.mxu1 %v11170_v41 }
 0x576   : > { %8324 = vmatpush3.bf16.msra.mxu1 %v11170_v41  ;;  %v5663_v41 = vld [vmem:[%s11555_s5] sm:$0xf] }
 0x577   : > { %8326 = vmatprep.subr.bf16.mxu1 %v8277_v8 }
 0x57a   : > { %8328 = vmatpush3.bf16.msra.mxu1 %v8277_v8 }
 0x57b   : > { %8330 = vmatprep.subr.bf16.mxu1 %v8281_v43 }
 0x57e   : > { %8332 = vmatpush3.bf16.msra.mxu1 %v8281_v43 }
 0x57f   : > { %8044 = vmatprep.subr.msk.mxu1 %vm5673_vm13, %v5666_v53 }
 0x581   : > { %8042 = vmatmul.mubr.msk.f32.vlgmr.msra.gmra.mrb[46].mxu1 %vm11622_vm5, %v5562_v29 }
 0x582   : > { %8045 = vmatpush3.msk.msra.mxu1 %vm5673_vm13, %v5666_v53 }
 0x583   : > { %8049 = vmatprep.subr.msk.mxu1 %vm5673_vm13, %v5663_v41 }
 0x624   : > { %v7986_v57 = vpop.f32.mrb[40].mxu1 }
 0x625   : > { %v5370_v12 = vpop.f32.mrb[41].mxu1 }
 0x634   : > { %v8005_v62 = vpop.f32.mrb[42].mxu1 }
 0x635   : > { %v5467_v22 = vmax.f32 %v7986_v57, %v8005_v62  ;;  %v5457_v55 = vpop.f32.mrb[43].mxu1  ;;  %v5931_v57 = vld [vmem:[%s11555_s5 + $0xc] sm:$0xf] }
 0x636   : > { %v5466_v60 = vmax.f32 %v5370_v12, %v5457_v55  ;;  %v6020_v55 = vld [vmem:[%s11555_s5 + $0x10] sm:$0xf] }
 0x644   : > { %v8024_v8 = vpop.f32.mrb[44].mxu1 }
 0x645   : > { %v5556_v46 = vmax.f32 %v5467_v22, %v8024_v8  ;;  %v5546_v35 = vpop.f32.mrb[45].mxu1  ;;  %v6111_v8 = vld [vmem:[%s11555_s5 + $0x14] sm:$0xf] }
 0x646   : > { %v5555_v31 = vmax.f32 %v5466_v60, %v5546_v35 }
 0x654   : > { %v8043_v47 = vpop.f32.mrb[46].mxu1 }
 0x655   : > { %v5645_v13 = vmax.f32 %v5556_v46, %v8043_v47  ;;  %v5635_v43 = vpop.f32.mrb[47].mxu1 }
 0x656   : > { %v5644_v33 = vmax.f32 %v5555_v31, %v5635_v43 }
 0x657   : > { %5650 = vst.msk [vmem:[#allocation4 + $0x10] sm:$0xff] %vm5646_vm12, %v5645_v13  ;;  %v6202_v13 = vld [vmem:[%s11555_s5 + $0x18] sm:$0xf] }
 0x658   : > { %5649 = vst.msk [vmem:[#allocation4 + $0x8] sm:$0xff] %vm5646_vm12, %v5644_v33 }
 0x65e   : > { %v6019_v31 = vld [vmem:[#allocation4 + $0x10] sm:$0xff] }
 0x65f   : > { %v5664_v17 = vld [vmem:[#allocation4 + $0x4] sm:$0xff]  ;;  %v5665_v54 = vld [vmem:[#allocation4 + $0xc] sm:$0xff] }
 0x660   : > { %v5659_v25 = vld [vmem:[#allocation4 + $0x3] sm:$0xff]  ;;  %8046 = vmatprep.mubr.msk.f32.mxu1 %vm5646_vm12, %v5664_v17  ;;  %v5660_v39 = vld [vmem:[#allocation4 + $0xb] sm:$0xff] }
 0x661   : > { %v5661_v36 = vmul.f32 %v5659_v25, %v5653_v63  ;;  %8047 = vmatmul.mubr.msk.f32.vlgmr.msra.gmra.mrb[48].mxu1 %vm5646_vm12, %v5665_v54  ;;  %v5836_v50 = vld [vmem:[#allocation4 + $0x5] sm:$0xff]  ;;  %v5662_v29 = vmul.f32 %v5660_v39, %v5654_v7  ;;  %v5928_v32 = vld [vmem:[#allocation4 + $0xf] sm:$0xff]  ;;  %v6200_v17 = vmul.f32 %v5660_v39, %v5653_v63 }
 0x662   : > { %8050 = vmatpush3.msk.msra.mxu1 %vm5673_vm13, %v5663_v41  ;;  %v5838_v53 = vmul.f32 %v5836_v50, %v5657_v21  ;;  %v5837_v41 = vld [vmem:[#allocation4 + $0xd] sm:$0xff]  ;;  %v5930_v60 = vmul.f32 %v5928_v32, %v5654_v7  ;;  %v6495_v32 = vshra.s32 %v10449_v38, 1 }
 0x663   : > { %8051 = vmatprep.mubr.msk.f32.mxu1 %vm5646_vm12, %v5661_v36  ;;  %8054 = vmatprep.subr.msk.mxu1 %vm5673_vm13, %v5840_v24  ;;  %v5927_v12 = vld [vmem:[#allocation4 + $0x7] sm:$0xff]  ;;  %v5839_v62 = vmul.f32 %v5837_v41, %v5658_v4  ;;  %v6108_v43 = vld [vmem:[#allocation4 + $0x11] sm:$0xff]  ;;  %v6380_v39 = vmul.f32 %v5837_v41, %v5657_v21  ;;  %v11900_v41 = vshra.s32 %v11885_v11, 3 }
 0x664   : > { %v5929_v22 = vmul.f32 %v5927_v12, %v5653_v63  ;;  %v6018_v46 = vld [vmem:[#allocation4 + $0x8] sm:$0xff]  ;;  %v6110_v33 = vmul.f32 %v6108_v43, %v5658_v4  ;;  %v6199_v36 = vld [vmem:[#allocation4 + $0x13] sm:$0xff] }
 0x665   : > { %v6107_v35 = vld [vmem:[#allocation4 + $0x9] sm:$0xff]  ;;  %v6290_v63 = vld [vmem:[#allocation4 + $0x14] sm:$0xff] }
 0x666   : > { %v6109_v47 = vmul.f32 %v6107_v35, %v5657_v21  ;;  %v6291_v25 = vld [vmem:[%s11555_s5 + $0x1c] sm:$0xf]  ;;  %v6382_v50 = vld [vmem:[%s11555_s5 + $0x20] sm:$0xf] }
 0x669   : > { %8052 = vmatmul.mubr.msk.f32.vlgmr.msra.gmra.mrb[48].mxu1 %vm5646_vm12, %v5662_v29 }
 0x66a   : > { %8055 = vmatpush3.msk.msra.mxu1 %vm5673_vm13, %v5840_v24  ;;  %8056 = vmatprep.mubr.msk.f32.mxu1 %vm5646_vm12, %v5838_v53  ;;  %v6201_v24 = vmul.f32 %v6199_v36, %v5654_v7  ;;  %v6379_v7 = vld [vmem:[#allocation4 + $0x15] sm:$0xff]  ;;  %v11899_v53 = vshra.s32 %v11859_v59, 3  ;;  %v11904_v36 = vshra.s32 %v11889_v48, 3 }
 0x66b   : > { %8059 = vmatprep.subr.msk.mxu1 %vm5673_vm13, %v5931_v57  ;;  %v6381_v29 = vmul.f32 %v6379_v7, %v5658_v4  ;;  %v11901_v4 = vshra.s32 %v11886_v15, 3  ;;  %v11905_v7 = vshra.s32 %v11891_v28, 3 }
 0x671   : > { %8057 = vmatmul.mubr.msk.f32.vlgmr.msra.gmra.mrb[48].mxu1 %vm5646_vm12, %v5839_v62 }
 0x672   : > { %8060 = vmatpush3.msk.msra.mxu1 %vm5673_vm13, %v5931_v57  ;;  %8061 = vmatprep.mubr.msk.f32.mxu1 %vm5646_vm12, %v5929_v22  ;;  %v6478_v57 = vshra.s32 %v11899_v53, 1  ;;  %v6479_v22 = vshra.s32 %v11900_v41, 1 }
 0x673   : > { %8064 = vmatprep.subr.msk.mxu1 %vm5673_vm13, %v6020_v55 }
 0x674   : > { %v6486_v12 = vmul.u32 4, %v6478_v57 }
 0x679   : > { %8062 = vmatmul.mubr.msk.f32.vlgmr.msra.gmra.mrb[48].mxu1 %vm5646_vm12, %v5930_v60  ;;  %v6487_v60 = vmul.u32 4, %v6479_v22 }
 0x67a   : > { %8065 = vmatpush3.msk.msra.mxu1 %vm5673_vm13, %v6020_v55  ;;  %8066 = vmatprep.mubr.msk.f32.mxu1 %vm5646_vm12, %v6018_v46  ;;  %v6480_v55 = vshra.s32 %v11901_v4, 1  ;;  %v6496_v46 = vshra.s32 %v10454_v56, 1 }
 0x67b   : > { %8069 = vmatprep.subr.msk.mxu1 %vm5673_vm13, %v6111_v8  ;;  %v6503_v43 = vadd.s32 %v6495_v32, %v6487_v60 }
 0x67d   : > { %vm6511_vm6 = vcmp.eq.s32.totalorder %v10158_v52, %v6503_v43  ;;  %v6974_v43 = vand.u32 15, %v10158_v52 }
 0x67e   : > { %v6519_v4 = vsel %vm6511_vm6, 1.0, %v11898_v5 }
 0x681   : > { %8067 = vmatmul.mubr.msk.f32.vlgmr.msra.gmra.mrb[48].mxu1 %vm5646_vm12, %v6019_v31  ;;  %v11903_v31 = vshra.s32 %v11888_v34, 3 }
 0x682   : > { %8070 = vmatpush3.msk.msra.mxu1 %vm5673_vm13, %v6111_v8  ;;  %8071 = vmatprep.mubr.msk.f32.mxu1 %vm5646_vm12, %v6109_v47  ;;  %v6488_v8 = vmul.u32 4, %v6480_v55 }
 0x683   : > { %8074 = vmatprep.subr.msk.mxu1 %vm5673_vm13, %v6202_v13  ;;  %v6482_v47 = vshra.s32 %v11903_v31, 1 }
 0x689   : > { %8072 = vmatmul.mubr.msk.f32.vlgmr.msra.gmra.mrb[48].mxu1 %vm5646_vm12, %v6110_v33  ;;  %v6504_v33 = vadd.s32 %v6496_v46, %v6488_v8  ;;  %v6501_v8 = vshra.s32 %v10559_v44, 1 }
 0x68a   : > { %8075 = vmatpush3.msk.msra.mxu1 %vm5673_vm13, %v6202_v13  ;;  %8076 = vmatprep.mubr.msk.f32.mxu1 %vm5646_vm12, %v6200_v17  ;;  %v7395_v13 = vld [vmem:[%s11556_s6] ss:$0 sm:$0xff] }
 0x68b   : > { %8079 = vmatprep.subr.msk.mxu1 %vm5673_vm13, %v6291_v25  ;;  %vm6512_vm7 = vcmp.eq.s32.totalorder %v10158_v52, %v6504_v33  ;;  %v6976_v33 = vshra.s32 %v10158_v52, 4 }
 0x68c   : > { %v6520_v55 = vsel %vm6512_vm7, 1.0, %v11898_v5 }
 0x691   : > { %8077 = vmatmul.mubr.msk.f32.vlgmr.msra.gmra.mrb[48].mxu1 %vm5646_vm12, %v6201_v24  ;;  %v6483_v24 = vshra.s32 %v11904_v36, 1  ;;  %v6982_v36 = vshra.s32 %v6974_v43, 1 }
 0x692   : > { %8080 = vmatpush3.msk.msra.mxu1 %vm5673_vm13, %v6291_v25  ;;  %8081 = vmatprep.mubr.msk.f32.mxu1 %vm5646_vm12, %v5665_v54  ;;  %v6494_v54 = vshra.s32 %v10177_v16, 1  ;;  %v11902_v16 = vshra.s32 %v11887_v51, 3  ;;  %v6497_v25 = vshra.s32 %v10469_v45, 1 }
 0x693   : > { %8084 = vmatprep.subr.msk.mxu1 %vm5673_vm13, %v6382_v50  ;;  %v6491_v45 = vmul.u32 4, %v6483_v24 }
 0x694   : > { %v6502_v62 = vadd.s32 %v6494_v54, %v6486_v12  ;;  %v6481_v35 = vshra.s32 %v11902_v16, 1  ;;  %v6499_v54 = vshra.s32 %v10507_v23, 1 }
 0x696   : > { %vm6510_vm4 = vcmp.eq.s32.totalorder %v10158_v52, %v6502_v62  ;;  %v6489_v17 = vmul.u32 4, %v6481_v35  ;;  %v11906_v62 = vshra.s32 %v11894_v20, 3  ;;  %v6507_v32 = vadd.s32 %v6499_v54, %v6491_v45 }
 0x697   : > { %v6518_v21 = vsel %vm6510_vm4, 1.0, %v11898_v5 }
 0x698   : > { %v6505_v57 = vadd.s32 %v6497_v25, %v6489_v17  ;;  %vm6515_vm10 = vcmp.eq.s32.totalorder %v10158_v52, %v6507_v32 }
 0x699   : > { %8082 = vmatmul.mubr.msk.f32.vlgmr.msra.gmra.mrb[48].mxu1 %vm5646_vm12, %v6290_v63  ;;  %v6490_v63 = vmul.u32 4, %v6482_v47  ;;  %v6523_v44 = vsel %vm6515_vm10, 1.0, %v11898_v5  ;;  %v6975_v47 = vand.u32 15, %v10208_v0 }
 0x69a   : > { %8085 = vmatpush3.msk.msra.mxu1 %vm5673_vm13, %v6382_v50  ;;  %8086 = vmatprep.mubr.msk.f32.mxu1 %vm5646_vm12, %v6380_v39  ;;  %v6498_v39 = vshra.s32 %v10482_v10, 1  ;;  %v6500_v10 = vshra.s32 %v10532_v14, 1  ;;  %vm6513_vm8 = vcmp.eq.s32.totalorder %v10158_v52, %v6505_v57 }
 0x69b   : > { %v6521_v14 = vsel %vm6513_vm8, 1.0, %v11898_v5  ;;  %v6983_v25 = vshra.s32 %v6975_v47, 1 }
 0x69c   : > { %v6506_v41 = vadd.s32 %v6498_v39, %v6490_v63 }
 0x69e   : > { %vm6514_vm9 = vcmp.eq.s32.totalorder %v10158_v52, %v6506_v41 }
 0x69f   : > { %v6522_v46 = vsel %vm6514_vm9, 1.0, %v11898_v5 }
 0x6a1   : > { %8087 = vmatmul.mubr.msk.f32.vlgmr.msra.gmra.mrb[48].mxu1 %vm5646_vm12, %v6381_v29  ;;  %v6484_v29 = vshra.s32 %v11905_v7, 1  ;;  %v11371_v7 = vld [vmem:[%s11557_s7 + $0x1] ss:$0 sm:$0xff] }
 0x6a2   : > { %8093 = vmatprep.mubr.msk.f32.mxu1 %vm11623_vm2, %v6518_v21  ;;  %v6485_v21 = vshra.s32 %v11906_v62, 1 }
 0x6a3   : > { %v6492_v22 = vmul.u32 4, %v6484_v29 }
 0x6a4   : > { %v6493_v60 = vmul.u32 4, %v6485_v21 }
 0x6a5   : > { %v6508_v23 = vadd.s32 %v6500_v10, %v6492_v22  ;;  %v11380_v10 = vld [vmem:[%s11557_s7 + $0x4] ss:$0 sm:$0xff] }
 0x6a6   : > { %v6509_v16 = vadd.s32 %v6501_v8, %v6493_v60 }
 0x6a7   : > { %vm6516_vm11 = vcmp.eq.s32.totalorder %v10158_v52, %v6508_v23 }
 0x6a8   : > { %v6524_v35 = vsel %vm6516_vm11, 1.0, %v11898_v5  ;;  %vm6517_vm0 = vcmp.eq.s32.totalorder %v10158_v52, %v6509_v16  ;;  %v8481_v52 = vmov 1.0|1.0  }
 0x6a9   : > { %v6525_v31 = vsel %vm6517_vm0, 1.0, %v11898_v5 }
 0x774   : > { %v8088_v38 = vpop.f32.mrb[48].mxu1 }
 0x775   : > { %v6477_v56 = vadd.f32 %v8088_v38, %v7395_v13  ;;  %v6458_v50 = vpop.f32.mrb[49].mxu1  ;;  %v6978_v38 = vshra.s32 %v6976_v33, 1 }
 0x776   : > { %v6476_v53 = vadd.f32 %v7395_v13, %v6458_v50  ;;  %v6977_v13 = vshra.s32 %v10208_v0, 4 }
 0x778   : > { %v8333_v12 = vpack.c.bf16 %v6477_v56, %v6476_v53  ;;  %v6979_v17 = vshra.s32 %v6977_v13, 1  ;;  %v6980_v56 = vmul.u32 8, %v6978_v38 }
 0x77a   : > { %8334 = vmatprep.subr.bf16.mxu1 %v8333_v12  ;;  %v6981_v24 = vmul.u32 8, %v6979_v17  ;;  %v6984_v63 = vadd.s32 %v6982_v36, %v6980_v56  ;;  %v11402_v17 = vld [vmem:[%s11557_s7 + $0x3] ss:$0 sm:$0xff] }
 0x77b   : > { %8336 = vmatpush3.bf16.msra.mxu1 %v8333_v12 }
 0x77c   : > { %v6985_v50 = vadd.s32 %v6983_v25, %v6981_v24  ;;  %vm6986_vm3 = vcmp.eq.s32.totalorder %v11859_v59, %v6984_v63  ;;  %vm6988_vm4 = vcmp.eq.s32.totalorder %v11885_v11, %v6984_v63  ;;  %vm6990_vm6 = vcmp.eq.s32.totalorder %v11886_v15, %v6984_v63 }
 0x77d   : > { %vm6992_vm7 = vcmp.eq.s32.totalorder %v11887_v51, %v6984_v63  ;;  %vm8339_vm8 = vmpackc.low %vm6988_vm4, %vm6986_vm3  ;;  %vm6996_vm5 = vcmp.eq.s32.totalorder %v11889_v48, %v6984_v63 }
 0x77e   : > { %8094 = vmatmul.mubr.msk.f32.vlgmr.msra.gmra.mrb[50].mxu1 %vm11623_vm2, %v6519_v4  ;;  %vm6987_vm12 = vcmp.eq.s32.totalorder %v11859_v59, %v6985_v50  ;;  %vm6989_vm13 = vcmp.eq.s32.totalorder %v11885_v11, %v6985_v50  ;;  %vm6991_vm14 = vcmp.eq.s32.totalorder %v11886_v15, %v6985_v50  ;;  %vm6993_vm15 = vcmp.eq.s32.totalorder %v11887_v51, %v6985_v50  ;;  %vm8343_vm0 = vmpackc.low %vm6992_vm7, %vm6990_vm6  ;;  %v6675_v11 = vld [vmem:[#allocation5 + $0x7] sm:$0xff]  ;;  %v11385_v4 = vld [vmem:[%s11557_s7 + $0x7] ss:$0 sm:$0xff] }
 0x77f   : > { %8096 = vmatprep.mubr.msk.f32.mxu1 %vm11623_vm2, %v6520_v55  ;;  %vm8337_vm1 = vmpackc.low %vm6989_vm13, %vm6987_vm12  ;;  %vm6995_vm9 = vcmp.eq.s32.totalorder %v11888_v34, %v6985_v50  ;;  %vm6997_vm10 = vcmp.eq.s32.totalorder %v11889_v48, %v6985_v50  ;;  %vm6994_vm13 = vcmp.eq.s32.totalorder %v11888_v34, %v6984_v63  ;;  %vm11907_vm6 = vcmask 130048  }
 0x780   : > { %8338 = vmatprep.subr.msk.bf16.mxu1 %vm8337_vm1, %v8481_v52  ;;  %vm8341_vm11 = vmpackc.low %vm6993_vm15, %vm6991_vm14  ;;  %vm7001_vm1 = vcmp.eq.s32.totalorder %v11894_v20, %v6985_v50  ;;  %vm7000_vm14 = vcmp.eq.s32.totalorder %v11894_v20, %v6984_v63  ;;  %v6683_v48 = vmul.f32 %v6675_v11, %v10755_v42  ;;  %v6712_v20 = vld [vmem:[#allocation5 + $0x8] sm:$0xff]  ;;  %v11417_v11 = vld [vmem:[%s11557_s7 + $0x5] ss:$0 sm:$0xff] }
 0x781   : > { %8340 = vmatpush1.bf16.msk.msra.mxu1 %vm8339_vm8, %v8481_v52  ;;  %vm8345_vm12 = vmpackc.low %vm6997_vm10, %vm6995_vm9  ;;  %vm6998_vm8 = vcmp.eq.s32.totalorder %v11891_v28, %v6984_v63  ;;  %v6725_v45 = vmul.f32 %v11371_v7, %v6712_v20 }
 0x782   : > { %8097 = vmatmul.mubr.msk.f32.gmra.mrb[52].mxu1 %vm11623_vm2, %v6521_v14  ;;  %8342 = vmatprep.subr.msk.bf16.mxu1 %vm8341_vm11, %v8481_v52  ;;  %vm8347_vm3 = vmpackc.low %vm6996_vm5, %vm6994_vm13 }
 0x783   : > { %8099 = vmatprep.mubr.msk.f32.mxu1 %vm11623_vm2, %v6522_v46  ;;  %vm8351_vm15 = vmpackc.low %vm7000_vm14, %vm6998_vm8 }
 0x784   : > { %vm11908_vm7 = vmmov %vm11907_vm6 }
 0x785   : > { %8344 = vmatpush1.bf16.msk.msra.mxu1 %vm8343_vm0, %v8481_v52 }
 0x786   : > { %8100 = vmatmul.mubr.msk.f32.gmra.mrb[54].mxu1 %vm11623_vm2, %v6523_v44  ;;  %8346 = vmatprep.subr.msk.bf16.mxu1 %vm8345_vm12, %v8481_v52  ;;  %vm11915_vm12 = vcmask 523264  }
 0x787   : > { %8102 = vmatprep.mubr.msk.f32.mxu1 %vm11623_vm2, %v6524_v35  ;;  %vm11916_vm13 = vmmov %vm11915_vm12 }
 0x789   : > { %8348 = vmatpush1.bf16.msk.msra.mxu1 %vm8347_vm3, %v8481_v52 }
 0x78a   : > { %8103 = vmatmul.mubr.msk.f32.gmra.mrb[56].mxu1 %vm11623_vm2, %v6525_v31  ;;  %vm6999_vm2 = vcmp.eq.s32.totalorder %v11891_v28, %v6985_v50  ;;  %v11366_v28 = vld [vmem:[%s11557_s7] ss:$0 sm:$0xff]  ;;  %v11395_v31 = vld [vmem:[%s11557_s7 + $0x2] ss:$0 sm:$0xff] }
 0x78b   : > { %7088 = vmatprep.mubr.f32.mxu1 %v11898_v5  ;;  %vm8349_vm4 = vmpackc.low %vm7001_vm1, %vm6999_vm2  ;;  %v6696_v12 = vmul.f32 %v11366_v28, %v6683_v48 }
 0x78c   : > { %8350 = vmatprep.subr.msk.bf16.mxu1 %vm8349_vm4, %v8481_v52  ;;  %vm11909_vm2 = vmmov %vm11907_vm6 }
 0x78d   : > { %8352 = vmatpush1.bf16.msk.msra.mxu1 %vm8351_vm15, %v8481_v52  ;;  %vm11910_vm5 = vmmov %vm11909_vm2  ;;  %v6733_v8 = vadd.f32 %v6725_v45, %v6696_v12 }
 0x78e   : > { %vm11911_vm9 = vmmov %vm11909_vm2 }
 0x78f   : > { %vm11912_vm10 = vmmov %vm11909_vm2 }
 0x790   : > { %vm11913_vm11 = vmmov %vm11909_vm2 }
 0x791   : > { %vm11914_vm0 = vmmov %vm11909_vm2 }
 0x851   : > { %v8095_v0 = vpop.f32.mrb[50].mxu1 }
 0x852   : > { %v6656_v15 = vmax.f32 %v8095_v0, 0.0  ;;  %v6616_v51 = vpop.f32.mrb[51].mxu1 }
 0x853   : > { %v6655_v34 = vmax.f32 %v6616_v51, 0.0  ;;  %v11423_v51 = vld [vmem:[%s11557_s7 + $0x6] ss:$0 sm:$0xff] }
 0x854   : > { %6668 = vst.msk [vmem:[#allocation5 + $0x18] sm:$0xff] %vm11907_vm6, %v6656_v15 }
 0x855   : > { %6667 = vst.msk [vmem:[#allocation5 + $0x10] sm:$0xff] %vm11908_vm7, %v6655_v34  ;;  %v8098_v39 = vpop.f32.mrb[52].mxu1 }
 0x856   : > { %v6658_v29 = vmax.f32 %v8098_v39, 0.0  ;;  %v6626_v53 = vpop.f32.mrb[53].mxu1 }
 0x857   : > { %v6657_v57 = vmax.f32 %v6626_v53, 0.0 }
 0x858   : > { %6670 = vst.msk [vmem:[#allocation5 + $0x28] sm:$0xff] %vm11909_vm2, %v6658_v29  ;;  %v11433_v29 = vld [vmem:[%s11557_s7 + $0x8] ss:$0 sm:$0xff] }
 0x859   : > { %6669 = vst.msk [vmem:[#allocation5 + $0x20] sm:$0xff] %vm11910_vm5, %v6657_v57  ;;  %v8101_v54 = vpop.f32.mrb[54].mxu1 }
 0x85a   : > { %v6660_v62 = vmax.f32 %v8101_v54, 0.0  ;;  %v6636_v21 = vpop.f32.mrb[55].mxu1 }
 0x85b   : > { %v6659_v41 = vmax.f32 %v6636_v21, 0.0  ;;  %v6714_v22 = vld [vmem:[#allocation5 + $0x18] sm:$0xff] }
 0x85c   : > { %6672 = vst.msk [vmem:[#allocation5 + $0x38] sm:$0xff] %vm11911_vm9, %v6660_v62  ;;  %v6676_v55 = vld [vmem:[#allocation5 + $0xf] sm:$0xff]  ;;  %v6677_v32 = vld [vmem:[#allocation5 + $0x17] sm:$0xff]  ;;  %v6727_v16 = vmul.f32 %v11371_v7, %v6714_v22  ;;  %v6815_v25 = vmul.f32 %v11380_v10, %v6714_v22  ;;  %v11406_v38 = vmul.f32 %v11385_v4, %v6714_v22 }
 0x85d   : > { %v6713_v60 = vld [vmem:[#allocation5 + $0x10] sm:$0xff]  ;;  %6671 = vst.msk [vmem:[#allocation5 + $0x30] sm:$0xff] %vm11912_vm10, %v6659_v41  ;;  %v8104_v23 = vpop.f32.mrb[56].mxu1  ;;  %v6684_v14 = vmul.f32 %v6676_v55, %v10809_v2  ;;  %v6685_v46 = vmul.f32 %v6677_v32, %v10833_v40  ;;  %v6779_v47 = vmul.f32 %v6676_v55, %v10755_v42  ;;  %v6861_v15 = vmul.f32 %v6677_v32, %v10755_v42 }
 0x85e   : > { %v6741_v44 = vld [vmem:[#allocation5 + $0x9] sm:$0xff]  ;;  %v6742_v35 = vld [vmem:[#allocation5 + $0x11] sm:$0xff]  ;;  %v6662_v13 = vmax.f32 %v8104_v23, 0.0  ;;  %v6646_v43 = vpop.f32.mrb[57].mxu1  ;;  %v6726_v56 = vmul.f32 %v11371_v7, %v6713_v60  ;;  %v6780_v48 = vmul.f32 %v6677_v32, %v10809_v2  ;;  %v6814_v54 = vmul.f32 %v11380_v10, %v6713_v60 }
 0x85f   : > { %v6749_v33 = vmul.f32 %v6741_v44, %v10922_v19  ;;  %v6661_v36 = vmax.f32 %v6646_v43, 0.0  ;;  %v6698_v24 = vmul.f32 %v11366_v28, %v6685_v46  ;;  %v6750_v50 = vmul.f32 %v6742_v35, %v10936_v18 }
 0x860   : > { %6674 = vst.msk [vmem:[#allocation5 + $0x48] sm:$0xff] %vm11913_vm11, %v6662_v13  ;;  %v6743_v63 = vld [vmem:[#allocation5 + $0x19] sm:$0xff]  ;;  %v6831_v0 = vmul.f32 %v6742_v35, %v10922_v19  ;;  %v6697_v34 = vmul.f32 %v11366_v28, %v6684_v14  ;;  %v6792_v39 = vmul.f32 %v11402_v17, %v6779_v47  ;;  %v6744_v57 = vld [vmem:[#allocation5 + $0x21] sm:$0xff]  ;;  %v6874_v41 = vmul.f32 %v11423_v51, %v6861_v15 }
 0x861   : > { %v6762_v52 = vmul.f32 %v11395_v31, %v6749_v33  ;;  %6673 = vst.msk [vmem:[#allocation5 + $0x40] sm:$0xff] %vm11914_vm0, %v6661_v36  ;;  %v6913_v20 = vmul.f32 %v6743_v63, %v10922_v19  ;;  %v6751_v42 = vmul.f32 %v6743_v63, %v10948_v26  ;;  %v6715_v53 = vld [vmem:[#allocation5 + $0x20] sm:$0xff]  ;;  %v6735_v12 = vadd.f32 %v6727_v16, %v6698_v24  ;;  %v6716_v36 = vld [vmem:[#allocation5 + $0x28] sm:$0xff] }
 0x862   : > { %v6832_v62 = vmul.f32 %v6743_v63, %v10936_v18  ;;  %v6844_v21 = vmul.f32 %v11417_v11, %v6831_v0  ;;  %v6678_v19 = vld [vmem:[#allocation5 + $0x1f] sm:$0xff]  ;;  %v6734_v22 = vadd.f32 %v6726_v56, %v6697_v34  ;;  %v6752_v55 = vmul.f32 %v6744_v57, %v10960_v37 }
 0x863   : > { %v6770_v45 = vadd.f32 %v6762_v52, %v6733_v8  ;;  %v6926_v23 = vmul.f32 %v11433_v29, %v6913_v20  ;;  %v6728_v14 = vmul.f32 %v11371_v7, %v6715_v53  ;;  %v6763_v46 = vmul.f32 %v11395_v31, %v6750_v50  ;;  %v6679_v8 = vld [vmem:[#allocation5 + $0x27] sm:$0xff] }
 0x864   : > { %v6764_v60 = vmul.f32 %v11395_v31, %v6751_v42  ;;  %v6765_v16 = vmul.f32 %v11395_v31, %v6752_v55  ;;  %v6793_v44 = vmul.f32 %v11402_v17, %v6780_v48  ;;  %v6816_v35 = vmul.f32 %v11380_v10, %v6715_v53 }
 0x865   : > { %v6800_v32 = vadd.f32 %v6792_v39, %v6770_v45  ;;  %v6771_v13 = vadd.f32 %v6763_v46, %v6734_v22  ;;  %v6833_v43 = vmul.f32 %v6744_v57, %v10948_v26  ;;  %v6862_v33 = vmul.f32 %v6678_v19, %v10809_v2  ;;  %v6745_v45 = vld [vmem:[#allocation5 + $0x29] sm:$0xff] }
 0x866   : > { %v6914_v24 = vmul.f32 %v6744_v57, %v10936_v18  ;;  %v6686_v56 = vmul.f32 %v6678_v19, %v10852_v9  ;;  %v6781_v50 = vmul.f32 %v6678_v19, %v10833_v40  ;;  %v6687_v63 = vmul.f32 %v6679_v8, %v10869_v3 }
 0x867   : > { %v6822_v47 = vadd.f32 %v6814_v54, %v6800_v32  ;;  %v6801_v0 = vadd.f32 %v6793_v44, %v6771_v13  ;;  %v6845_v15 = vmul.f32 %v11417_v11, %v6832_v62  ;;  %v6897_v34 = vmul.f32 %v11385_v4, %v6715_v53 }
 0x868   : > { %v6699_v48 = vmul.f32 %v11366_v28, %v6686_v56  ;;  %v6700_v39 = vmul.f32 %v11366_v28, %v6687_v63  ;;  %v6729_v2 = vmul.f32 %v11371_v7, %v6716_v36  ;;  %v6772_v20 = vadd.f32 %v6764_v60, %v6735_v12 }
 0x869   : > { %v6852_v52 = vadd.f32 %v6844_v21, %v6822_v47  ;;  %v6823_v42 = vadd.f32 %v6815_v25, %v6801_v0  ;;  %v6875_v57 = vmul.f32 %v11423_v51, %v6862_v33  ;;  %v6794_v54 = vmul.f32 %v11402_v17, %v6781_v50  ;;  %v6717_v47 = vld [vmem:[#allocation5 + $0x30] sm:$0xff] }
 0x86a   : > { %v6927_v21 = vmul.f32 %v11433_v29, %v6914_v24  ;;  %v6736_v19 = vadd.f32 %v6728_v14, %v6699_v48  ;;  %v6782_v62 = vmul.f32 %v6679_v8, %v10852_v9  ;;  %v6863_v53 = vmul.f32 %v6679_v8, %v10833_v40  ;;  %v6680_v8 = vld [vmem:[#allocation5 + $0x2f] sm:$0xff] }
 0x86b   : > { %v6882_v18 = vadd.f32 %v6874_v41, %v6852_v52  ;;  %v6853_v55 = vadd.f32 %v6845_v15, %v6823_v42  ;;  %v6802_v32 = vadd.f32 %v6794_v54, %v6772_v20  ;;  %v6817_v12 = vmul.f32 %v11380_v10, %v6716_v36  ;;  %v6746_v41 = vld [vmem:[#allocation5 + $0x31] sm:$0xff] }
 0x86c   : > { %v6737_v25 = vadd.f32 %v6729_v2, %v6700_v39  ;;  %v6846_v46 = vmul.f32 %v11417_v11, %v6833_v43  ;;  %v6915_v60 = vmul.f32 %v6745_v45, %v10948_v26  ;;  %v6753_v44 = vmul.f32 %v6745_v45, %v10966_v27  ;;  %v6681_v15 = vld [vmem:[#allocation5 + $0x37] sm:$0xff] }
 0x86d   : > { %v6904_v22 = vadd.f32 %v11406_v38, %v6882_v18  ;;  %v6883_v13 = vadd.f32 %v6875_v57, %v6853_v55  ;;  %v6824_v33 = vadd.f32 %v6816_v35, %v6802_v32  ;;  %v6898_v40 = vmul.f32 %v11385_v4, %v6716_v36  ;;  %v6718_v57 = vld [vmem:[#allocation5 + $0x38] sm:$0xff] }
 0x86e   : > { %v6876_v38 = vmul.f32 %v11423_v51, %v6863_v53  ;;  %v6834_v24 = vmul.f32 %v6745_v45, %v10960_v37  ;;  %v6754_v56 = vmul.f32 %v6746_v41, %v10979_v30  ;;  %v6773_v50 = vadd.f32 %v6765_v16, %v6736_v19 }
 0x86f   : > { %v6934_v14 = vadd.f32 %v6926_v23, %v6904_v22  ;;  %v6905_v43 = vadd.f32 %v6897_v34, %v6883_v13  ;;  %v6854_v63 = vadd.f32 %v6846_v46, %v6824_v33  ;;  %v6730_v26 = vmul.f32 %v11371_v7, %v6717_v47  ;;  %v6748_v13 = vld [vmem:[#allocation5 + $0x41] sm:$0xff] }
 0x870   : > { %v6795_v52 = vmul.f32 %v11402_v17, %v6782_v62  ;;  %v6928_v23 = vmul.f32 %v11433_v29, %v6915_v60  ;;  %v6766_v35 = vmul.f32 %v11395_v31, %v6753_v44  ;;  %v6818_v36 = vmul.f32 %v11380_v10, %v6717_v47  ;;  %v6747_v60 = vld [vmem:[#allocation5 + $0x39] sm:$0xff] }
 0x871   : > { %6942 = vxpose.xlu0.b32.start [1/8] (short) (narrow) %v6934_v14, 16  ;;  %v6864_v0 = vmul.f32 %v6680_v8, %v10852_v9  ;;  %v6935_v48 = vadd.f32 %v6927_v21, %v6905_v43  ;;  %v6884_v39 = vadd.f32 %v6876_v38, %v6854_v63  ;;  %v6767_v16 = vmul.f32 %v11395_v31, %v6754_v56 }
 0x872   : > { %v6803_v2 = vadd.f32 %v6795_v52, %v6773_v50  ;;  %v6835_v34 = vmul.f32 %v6746_v41, %v10966_v27  ;;  %v6847_v20 = vmul.f32 %v11417_v11, %v6834_v24  ;;  %v6688_v18 = vmul.f32 %v6680_v8, %v10886_v1  ;;  %v6719_v50 = vld [vmem:[#allocation5 + $0x40] sm:$0xff] }
 0x873   : > { %v6783_v42 = vmul.f32 %v6680_v8, %v10869_v3  ;;  %v6906_v45 = vadd.f32 %v6898_v40, %v6884_v39  ;;  %v6916_v9 = vmul.f32 %v6746_v41, %v10960_v37  ;;  %v6689_v21 = vmul.f32 %v6681_v15, %v10903_v61 }
 0x874   : > { %v6825_v54 = vadd.f32 %v6817_v12, %v6803_v2  ;;  %v6877_v19 = vmul.f32 %v11423_v51, %v6864_v0  ;;  %v6899_v62 = vmul.f32 %v11385_v4, %v6717_v47  ;;  %v6701_v53 = vmul.f32 %v11366_v28, %v6688_v18 }
 0x875   : > { %6943 = vxpose.xlu0.b32.cont [2/8] (short) (narrow) %v6935_v48, 16  ;;  %v6774_v22 = vadd.f32 %v6766_v35, %v6737_v25  ;;  %v6936_v55 = vadd.f32 %v6928_v23, %v6906_v45  ;;  %v6731_v46 = vmul.f32 %v11371_v7, %v6718_v57  ;;  %v6796_v44 = vmul.f32 %v11402_v17, %v6783_v42  ;;  %v6682_v35 = vld [vmem:[#allocation5 + $0x3f] sm:$0xff]  ;;  %v6778_v42 = vld [vmem:[#allocation5 + $0x47] sm:$0xff] }
 0x876   : > { %v6855_v32 = vadd.f32 %v6847_v20, %v6825_v54  ;;  %v6738_v14 = vadd.f32 %v6730_v26, %v6701_v53  ;;  %v6702_v12 = vmul.f32 %v11366_v28, %v6689_v21  ;;  %v6784_v37 = vmul.f32 %v6681_v15, %v10886_v1 }
 0x877   : > { %v6865_v41 = vmul.f32 %v6681_v15, %v10869_v3  ;;  %v6929_v33 = vmul.f32 %v11433_v29, %v6916_v9  ;;  %v6804_v25 = vadd.f32 %v6796_v44, %v6774_v22  ;;  %v6848_v40 = vmul.f32 %v11417_v11, %v6835_v34  ;;  %v6808_v44 = vld [vmem:[#allocation5 + $0x48] sm:$0xff] }
 0x878   : > { %v6885_v47 = vadd.f32 %v6877_v19, %v6855_v32  ;;  %v6819_v8 = vmul.f32 %v11380_v10, %v6718_v57  ;;  %v6917_v38 = vmul.f32 %v6747_v60, %v10966_v27  ;;  %v6755_v24 = vmul.f32 %v6747_v60, %v10985_v6 }
 0x879   : > { %6944 = vxpose.xlu0.b32.cont [3/8] (short) (narrow) %v6936_v55, 16  ;;  %v6836_v56 = vmul.f32 %v6747_v60, %v10979_v30  ;;  %v6826_v63 = vadd.f32 %v6818_v36, %v6804_v25  ;;  %v6878_v3 = vmul.f32 %v11423_v51, %v6865_v41  ;;  %v6756_v26 = vmul.f32 %v6748_v13, %v10996_v58  ;;  %v6860_v41 = vld [vmem:[#allocation5 + $0x4f] sm:$0xff] }
 0x87a   : > { %v6907_v43 = vadd.f32 %v6899_v62, %v6885_v47  ;;  %v6739_v52 = vadd.f32 %v6731_v46, %v6702_v12  ;;  %v6768_v23 = vmul.f32 %v11395_v31, %v6755_v24  ;;  %v6775_v0 = vadd.f32 %v6767_v16, %v6738_v14  ;;  %v6830_v62 = vld [vmem:[#allocation5 + $0x49] sm:$0xff] }
 0x87b   : > { %v6797_v15 = vmul.f32 %v11402_v17, %v6784_v37  ;;  %v6856_v27 = vadd.f32 %v6848_v40, %v6826_v63  ;;  %v6900_v39 = vmul.f32 %v11385_v4, %v6718_v57  ;;  %v6732_v2 = vmul.f32 %v11371_v7, %v6719_v50 }
 0x87c   : > { %v6937_v48 = vadd.f32 %v6929_v33, %v6907_v43  ;;  %v6930_v34 = vmul.f32 %v11433_v29, %v6917_v38  ;;  %v6849_v20 = vmul.f32 %v11417_v11, %v6836_v56  ;;  %v6866_v18 = vmul.f32 %v6682_v35, %v10886_v1 }
 0x87d   : > { %v6805_v36 = vadd.f32 %v6797_v15, %v6775_v0  ;;  %v6886_v45 = vadd.f32 %v6878_v3, %v6856_v27  ;;  %v6769_v16 = vmul.f32 %v11395_v31, %v6756_v26  ;;  %v6837_v54 = vmul.f32 %v6748_v13, %v10985_v6  ;;  %v6912_v3 = vld [vmem:[#allocation5 + $0x51] sm:$0xff] }
 0x87e   : > { %6945 = vxpose.xlu0.b32.cont [4/8] (short) (narrow) %v6937_v48, 16  ;;  %v6690_v9 = vmul.f32 %v6682_v35, %v10918_v49  ;;  %v6918_v57 = vmul.f32 %v6748_v13, %v10979_v30  ;;  %v6785_v7 = vmul.f32 %v6682_v35, %v10903_v61  ;;  %v6776_v19 = vadd.f32 %v6768_v23, %v6739_v52 }
 0x87f   : > { %v6827_v21 = vadd.f32 %v6819_v8, %v6805_v36  ;;  %v6908_v53 = vadd.f32 %v6900_v39, %v6886_v45  ;;  %v6820_v22 = vmul.f32 %v11380_v10, %v6719_v50  ;;  %v6786_v55 = vmul.f32 %v6778_v42, %v10918_v49 }
 0x880   : > { %v6703_v1 = vmul.f32 %v11366_v28, %v6690_v9  ;;  %v6879_v31 = vmul.f32 %v11423_v51, %v6866_v18  ;;  %v6901_v46 = vmul.f32 %v11385_v4, %v6719_v50  ;;  %v6798_v60 = vmul.f32 %v11402_v17, %v6785_v7 }
 0x881   : > { %v6857_v32 = vadd.f32 %v6849_v20, %v6827_v21  ;;  %v6938_v30 = vadd.f32 %v6930_v34, %v6908_v53  ;;  %v6838_v12 = vmul.f32 %v6830_v62, %v10996_v58  ;;  %v6867_v37 = vmul.f32 %v6778_v42, %v10903_v61 }
 0x882   : > { %v6740_v14 = vadd.f32 %v6732_v2, %v6703_v1  ;;  %v6931_v28 = vmul.f32 %v11433_v29, %v6918_v57  ;;  %v6806_v47 = vadd.f32 %v6798_v60, %v6776_v19  ;;  %v6850_v33 = vmul.f32 %v11417_v11, %v6837_v54  ;;  %v7119_v57 = vpop.permute.xlu1 %7118 }
 0x883   : > { %v6887_v13 = vadd.f32 %v6879_v31, %v6857_v32  ;;  %6946 = vxpose.xlu0.b32.cont [5/8] (short) (narrow) %v6938_v30, 16  ;;  %v6821_v25 = vmul.f32 %v11380_v10, %v6808_v44  ;;  %v6919_v40 = vmul.f32 %v6830_v62, %v10985_v6  ;;  %v6799_v38 = vmul.f32 %v11402_v17, %v6786_v55  ;;  %v6890_v10 = vld [vmem:[#allocation5 + $0x50] sm:$0xff] }
 0x884   : > { %v6777_v8 = vadd.f32 %v6769_v16, %v6740_v14  ;;  %v6828_v56 = vadd.f32 %v6820_v22, %v6806_v47  ;;  %v6880_v50 = vmul.f32 %v11423_v51, %v6867_v37  ;;  %v6868_v61 = vmul.f32 %v6860_v41, %v10918_v49 }
 0x885   : > { %v6909_v24 = vadd.f32 %v6901_v46, %v6887_v13  ;;  %v6851_v63 = vmul.f32 %v11417_v11, %v6838_v12  ;;  %v6902_v23 = vmul.f32 %v11385_v4, %v6808_v44  ;;  %v6932_v0 = vmul.f32 %v11433_v29, %v6919_v40 }
 0x886   : > { %v6807_v43 = vadd.f32 %v6799_v38, %v6777_v8  ;;  %v6858_v52 = vadd.f32 %v6850_v33, %v6828_v56  ;;  %v6881_v6 = vmul.f32 %v11423_v51, %v6868_v61  ;;  %v6920_v15 = vmul.f32 %v6912_v3, %v10996_v58 }
 0x887   : > { %v6939_v26 = vadd.f32 %v6931_v28, %v6909_v24  ;;  %v6903_v49 = vmul.f32 %v11385_v4, %v6890_v10  ;;  %v7123_v9 = vsub.s32 0, %v11859_v59  ;;  %v8482_v32 = vmov 1966171168  }
 0x888   : > { %v6829_v35 = vadd.f32 %v6821_v25, %v6807_v43  ;;  %v6888_v17 = vadd.f32 %v6880_v50, %v6858_v52  ;;  %v6933_v2 = vmul.f32 %v11433_v29, %v6920_v15  ;;  %v7133_v31 = vunpack.c.l.s4 %v8482_v32 }
 0x889   : > { %6947 = vxpose.xlu0.b32.cont [6/8] (short) (narrow) %v6939_v26, 16  ;;  %v7124_v62 = vrot.slane %v7119_v57, %v7123_v9  ;;  %v11917_v37 = vlaneseq }
 0x88a   : > { %v6859_v48 = vadd.f32 %v6851_v63, %v6829_v35  ;;  %v6910_v27 = vadd.f32 %v6902_v23, %v6888_v17  ;;  %v7134_v46 = vunpack.c.0.s8 %v7133_v31 }
 0x88b   : > { %vm7149_vm1 = vcmp.lt.s32.totalorder %v11917_v37, 256 }
 0x88c   : > { %v6889_v11 = vadd.f32 %v6881_v6, %v6859_v48  ;;  %v6940_v39 = vadd.f32 %v6932_v0, %v6910_v27  ;;  %v7137_v44 = vsub.s32 %v7134_v46, %v11859_v59 }
 0x88e   : > { %v6911_v34 = vadd.f32 %v6903_v49, %v6889_v11  ;;  %6948 = vxpose.xlu0.b32.cont [7/8] (short) (narrow) %v6940_v39, 16 }
 0x890   : > { %v6941_v36 = vadd.f32 %v6933_v2, %v6911_v34 }
 0x892   : > { %6949 = vxpose.xlu0.b32.end [8/8] (short) (narrow) %v6941_v36, 16 }
 0x8f6   : > { %v6958_v20 = vpop.trf.xlu0 }
 0x8f7   : > { %7429 = vmatmul.mubr.msk.f32.vlgmr.msra.gmra.mrb[58].mxu1 %vm11915_vm12, %v6958_v20 }
 0x8f8   : > { %7094 = vmatprep.mubr.f32.mxu1 %v11898_v5 }
 0x8fa   : > { %v6959_v51 = vpop.trf.xlu0 }
 0x8ff   : > { %7430 = vmatmul.mubr.msk.f32.gmra.mrb[58].mxu1 %vm11916_vm13, %v6959_v51 }
 0x9d2   : > { %v7096_v58 = vpop.f32.mrb[58].mxu1 }
 0x9d3   : > { %v7102_v18 = vrot.slane %v7096_v58, 4  ;;  %v7098_v4 = vpop.f32.mrb[59].mxu1 }
 0x9d4   : > { %v7109_v42 = vrot.slane %v7098_v4, 4 }
 0x9d5   : > { %v7103_v45 = vadd.f32 %v7102_v18, %v7096_v58 }
 0x9d6   : > { %v7110_v16 = vadd.f32 %v7109_v42, %v7098_v4 }
 0x9d7   : > { %v7104_v54 = vrot.slane %v7103_v45, 2 }
 0x9d8   : > { %v7111_v29 = vrot.slane %v7110_v16, 2 }
 0x9d9   : > { %v7105_v21 = vadd.f32 %v7104_v54, %v7103_v45 }
 0x9da   : > { %v7112_v7 = vadd.f32 %v7111_v29, %v7110_v16 }
 0x9db   : > { %v7106_v19 = vrot.slane %v7105_v21, 1 }
 0x9dc   : > { %v7113_v5 = vrot.slane %v7112_v7, 1 }
 0x9dd   : > { %v7107_v53 = vadd.f32 %v7106_v19, %v7105_v21 }
 0x9de   : > { %v7114_v22 = vadd.f32 %v7113_v5, %v7112_v7 }
 0x9df   : > { %v7125_v1 = vadd.f32 %v7124_v62, %v7107_v53 }
 0x9e0   : > { %v7126_v55 = vadd.f32 %v7124_v62, %v7114_v22 }
 0x9e1   : > { %8450 = vtanh.f32 %v7125_v1 }
 0x9e2   : > { %8452 = vtanh.f32 %v7126_v55 }
 0x9eb   : > { %v8451_v60 = vpop.eup %8450 }
 0x9ec   : > { %v8453_v30 = vpop.eup %8452 }
 0x9ed   : > { %v7131_v14 = vcombine.low %v8451_v60, %v8453_v30 }
 0x9ef   : > { %v7138_v12 = vrot.slane %v7131_v14, %v7137_v44 }
 0x9f1   : > { %v7145_v41 = vrot.slane %v7138_v12, %v7137_v44 }
 0x9f3   : > { %7151 = vst.msk [vmem:[%s334_s28] sm:$0x3] %vm7149_vm1, %v7145_v41 }
 0x9f4 PF: > { %s21_s11 = sadd.s32 1, %s8476_s11  }
 0x9f5   : > { %p18_p5 = scmp.ge.s32.totalorder %s21_s11, 4  }
 0x9f7   :  { %20 = sbr.rel (!%p18_p5) target bundleno = 3 (0x3), region = 86 }

</bundles_post_ra>
